<compile_context>
chip_gen: v7x
topology: tpu7x:2x2x1
jax: 0.10.0
libtpu: 0.0.40
codegen_flags: <defaults>
</compile_context>

<pallas_src>
import jax
import jax.numpy as jnp
from jax.experimental import pallas as pl
from jax.experimental.pallas import tpu as pltpu

B, D_IN, H, L, M = 8, 16, 32, 16, 16
JITTER = 1e-4        # jitter on Kzz (matches typical GPyTorch behaviour)


def _default_row_tile():
    """128-row tiles fill v5e's 4x128^2 MXU; 256 fills v6e/v7x's 2x256^2."""
    try:
        kind = jax.devices()[0].device_kind.lower()
    except Exception:
        kind = ""
    if ("v6" in kind) or ("v7" in kind) or ("tpu7" in kind):
        return 256
    return 128


def _dot_t(a, b):
    """a @ b.T via dot_general contracting last axes (no explicit transpose)."""
    return jax.lax.dot_general(a, b, (((1,), (1,)), ((), ())),
                               preferred_element_type=jnp.float32)


# --------------------------- fused forward kernel ---------------------------
def fused_gp_kernel(xi_ref, xj_ref, w1_ref, b1_ref, w2_ref, b2_ref,
                    w3_ref, b3_ref, zs_ref, z2_ref, logosc_ref,
                    alpha_ref, wmat_ref,
                    mean_ref, cov_ref,
                    fi_scr, f2i_scr):
    qj = pl.program_id(1)

    def mlp(x):
        # bf16 MXU passes, f32 accumulation; biases added in f32.
        h1 = jnp.maximum(
            jnp.dot(x.astype(jnp.bfloat16), w1_ref[...],
                    preferred_element_type=jnp.float32) + b1_ref[...], 0.0)
        h2 = jnp.maximum(
            jnp.dot(h1.astype(jnp.bfloat16), w2_ref[...],
                    preferred_element_type=jnp.float32) + b2_ref[...], 0.0)
        return (jnp.dot(h2.astype(jnp.bfloat16), w3_ref[...],
                        preferred_element_type=jnp.float32) + b3_ref[...])

    l_dim = fi_scr.shape[1]
    ones_row = jnp.ones((1, l_dim), jnp.float32)

    # ---- row-block features + squared norms: hoisted across the qj axis ----
    # qj is the inner "arbitrary" (sequential) grid axis, so the scratch
    # written at qj == 0 is valid for all column tiles of this row block.
    @pl.when(qj == 0)
    def _():
        f_i = mlp(xi_ref[...])                                    # (tile, L)
        fi_scr[...] = f_i
        f2i_scr[...] = _dot_t(f_i * f_i, ones_row)                # (tile, 1), MXU matvec

    f_i = fi_scr[...]
    f2c_i = f2i_scr[...]

    # ---- column-block features (tiny MLP recomputed per tile) ----
    f_j = mlp(xj_ref[...])                                        # (tile, L)
    fsq_j = f_j * f_j
    f2c_j = _dot_t(fsq_j, ones_row)                               # (tile, 1)
    f2r_j = _dot_t(ones_row, fsq_j)                               # (1, tile)

    z2 = z2_ref[...]                                              # (1, M)
    zs = zs_ref[...]                                              # (M, L), pre-scaled by 1/ls

    # ---- unit-scale RBF cross-kernels (outputscale folded into alpha / W) ----
    e_xz_i = jnp.exp(-0.5 * jnp.maximum(f2c_i + z2 - 2.0 * _dot_t(f_i, zs), 0.0))
    e_xz_j = jnp.exp(-0.5 * jnp.maximum(f2c_j + z2 - 2.0 * _dot_t(f_j, zs), 0.0))

    # ---- predictive mean: MXU matvec, identical for every qj (idempotent) ----
    mean_ref[...] = jnp.dot(e_xz_i, alpha_ref[...],
                            preferred_element_type=jnp.float32)   # (tile, 1)

    # ---- K_xx tile: outputscale applied additively in the exponent ----
    sq_xx = jnp.maximum(f2c_i + f2r_j - 2.0 * _dot_t(f_i, f_j), 0.0)
    k_xx = jnp.exp(logosc_ref[...] - 0.5 * sq_xx)                 # (tile, tile)

    # ---- cov = K_xx + K_xz W K_zx  (W pre-scaled by outputscale^2) ----
    t = jnp.dot(e_xz_i, wmat_ref[...], preferred_element_type=jnp.float32)
    cov_ref[...] = k_xx + _dot_t(t, e_xz_j)                       # lane-dense store


# --------------------- x-independent GP precompute (JAX) ---------------------
def precompute_gp(params):
    """Parameter-only quantities (shared across forwards)."""
    z = params["inducing_points"]                          # (M, L)
    ls = params["lengthscale"][0, 0]
    osc = params["outputscale"][0, 0]
    m = z.shape[0]

    zs = z / ls
    diff = zs[:, None, :] - zs[None, :, :]                 # exact f32 distances
    k_zz = osc * jnp.exp(-0.5 * jnp.sum(diff * diff, axis=-1))
    k_zz = k_zz + JITTER * jnp.eye(m, dtype=jnp.float32)

    # TODO(synk): Cholesky factorization / triangular solves have no clean
    # Pallas TPU equivalent; they are x-independent, so they run once here in
    # plain JAX (tiny M x M problem) instead of on the per-batch path.
    chol = jnp.linalg.cholesky(k_zz)
    alpha = jax.scipy.linalg.cho_solve((chol, True), params["var_mean"])   # (M, 1)
    s_cov = params["var_chol"] @ params["var_chol"].T                      # (M, M)
    a = jax.scipy.linalg.cho_solve((chol, True), s_cov - k_zz)             # Kzz^-1 (S - Kzz)
    wmat = jax.scipy.linalg.cho_solve((chol, True), a.T)                   # Kzz^-1 (S - Kzz) Kzz^-1

    fe = params["fe"]
    return {
        # MLP weights: bf16 MXU operands; 1/lengthscale folded into layer 3.
        "w1": fe["w1"].astype(jnp.bfloat16),
        "b1": fe["b1"].astype(jnp.float32),
        "w2": fe["w2"].astype(jnp.bfloat16),
        "b2": fe["b2"].astype(jnp.float32),
        "w3": (fe["w3"] / ls).astype(jnp.bfloat16),
        "b3": (fe["b3"] / ls).astype(jnp.float32),
        # GP side: outputscale folded into alpha / wmat / log-exponent.
        "zs": zs.astype(jnp.float32),
        "z2": jnp.sum(zs * zs, axis=-1, keepdims=True).T.astype(jnp.float32),  # (1, M)
        "logosc": jnp.log(osc).reshape(1, 1).astype(jnp.float32),
        "alpha": (osc * alpha).astype(jnp.float32),
        "wmat": (osc * osc * wmat).astype(jnp.float32),
    }


# ------------------------------- full forward -------------------------------
def ft_deep_kernel_gp_forward(x, params, row_tile=None):
    pre = precompute_gp(params)
    n, d_in = x.shape
    tile = _default_row_tile() if row_tile is None else row_tile

    nb = pl.cdiv(n, tile)
    n_pad = nb * tile
    if n_pad != n:
        x_pad = jnp.concatenate(
            [x, jnp.zeros((n_pad - n, d_in), x.dtype)], axis=0)
    else:
        x_pad = x

    h_dim = pre["w1"].shape[1]
    l_dim = pre["zs"].shape[1]
    m_ind = pre["zs"].shape[0]

    # Advisory cost estimate (helps XLA overlap the cho_solve precompute).
    mlp_flops = 2 * tile * (d_in * h_dim + h_dim * h_dim + h_dim * l_dim)
    cell_flops = (2 * mlp_flops
                  + 2 * 2 * tile * m_ind * l_dim
                  + 2 * tile * tile * l_dim
                  + 2 * tile * m_ind * m_ind
                  + 2 * tile * tile * m_ind
                  + 2 * tile * m_ind)
    cost = pl.CostEstimate(
        flops=int(cell_flops * nb * nb),
        transcendentals=int((2 * tile * m_ind + tile * tile) * nb * nb),
        bytes_accessed=int(4 * (2 * nb * n_pad * d_in + n_pad * n_pad + n_pad)),
    )

    const = lambda qi, qj: (0, 0)   # parameter blocks: resident across the grid

    # NOTE on lane density: the dominant output (cov) is tiled lane-dense
    # (tile x tile, multiple of 128).  mean stays (n_pad, 1): its masked store
    # is negligible traffic, whereas padding it to a 128-wide slab would cost
    # 128x the HBM write bytes.
    grid_spec = pltpu.PrefetchScalarGridSpec(
        num_scalar_prefetch=0,
        grid=(nb, nb),
        in_specs=[
            pl.BlockSpec((tile, d_in), lambda qi, qj: (qi, 0)),     # x_i
            pl.BlockSpec((tile, d_in), lambda qi, qj: (qj, 0)),     # x_j
            pl.BlockSpec((d_in, h_dim), const),                     # w1 (bf16)
            pl.BlockSpec((1, h_dim), const),                        # b1
            pl.BlockSpec((h_dim, h_dim), const),                    # w2 (bf16)
            pl.BlockSpec((1, h_dim), const),                        # b2
            pl.BlockSpec((h_dim, l_dim), const),                    # w3 (bf16, /ls)
            pl.BlockSpec((1, l_dim), const),                        # b3 (/ls)
            pl.BlockSpec((m_ind, l_dim), const),                    # zs
            pl.BlockSpec((1, m_ind), const),                        # z2
            pl.BlockSpec((1, 1), const),                            # log(outputscale)
            pl.BlockSpec((m_ind, 1), const),                        # alpha (osc-folded)
            pl.BlockSpec((m_ind, m_ind), const),                    # wmat (osc^2-folded)
        ],
        out_specs=(
            pl.BlockSpec((tile, 1), lambda qi, qj: (qi, 0)),        # mean
            pl.BlockSpec((tile, tile), lambda qi, qj: (qi, qj)),    # cov (lane-dense)
        ),
        scratch_shapes=[
            pltpu.VMEM((tile, l_dim), jnp.float32),                 # feats_i hoist
            pltpu.VMEM((tile, 1), jnp.float32),                     # ||feats_i||^2 hoist
        ],
    )

    mean_pad, cov_pad = pl.pallas_call(
        fused_gp_kernel,
        out_shape=(jax.ShapeDtypeStruct((n_pad, 1), jnp.float32),
                   jax.ShapeDtypeStruct((n_pad, n_pad), jnp.float32)),
        grid_spec=grid_spec,
        compiler_params=pltpu.CompilerParams(
            # row-block axis parallel (feeds both v7x TensorCores); column
            # axis sequential so the per-row-block scratch hoist is valid.
            dimension_semantics=("parallel", "arbitrary"),
            vmem_limit_bytes=32 * 1024 * 1024,
        ),
        cost_estimate=cost,
    )(x_pad, x_pad,
      pre["w1"], pre["b1"], pre["w2"], pre["b2"], pre["w3"], pre["b3"],
      pre["zs"], pre["z2"], pre["logosc"], pre["alpha"], pre["wmat"])

    return mean_pad[:n, 0], cov_pad[:n, :n]


# ------------------------- pure-JAX reference (spec) -------------------------
def reference_forward(x, params):
    fe = params["fe"]
    hp = jax.lax.Precision.HIGHEST
    h1 = jnp.maximum(jnp.dot(x, fe["w1"], precision=hp) + fe["b1"], 0.0)
    h2 = jnp.maximum(jnp.dot(h1, fe["w2"], precision=hp) + fe["b2"], 0.0)
    feats = jnp.dot(h2, fe["w3"], precision=hp) + fe["b3"]

    z = params["inducing_points"]
    ls = params["lengthscale"][0, 0]
    osc = params["outputscale"][0, 0]

    def rbf(a, b):
        d = (a / ls)[:, None, :] - (b / ls)[None, :, :]
        return osc * jnp.exp(-0.5 * jnp.sum(d * d, axis=-1))

    k_xz = rbf(feats, z)
    k_zz = rbf(z, z) + JITTER * jnp.eye(z.shape[0], dtype=jnp.float32)
    k_xx = rbf(feats, feats)

    chol = jnp.linalg.cholesky(k_zz)
    alpha = jax.scipy.linalg.cho_solve((chol, True), params["var_mean"])
    bmat = jax.scipy.linalg.cho_solve((chol, True), k_xz.T)
    s_cov = params["var_chol"] @ params["var_chol"].T

    mean = (k_xz @ alpha)[:, 0]
    cov = k_xx - k_xz @ bmat + bmat.T @ s_cov @ bmat
    return mean, cov


# ------------------------ deterministic parameter init ------------------------
def init_params(key):
    ks = jax.random.split(key, 6)
    scale = 0.1
    fe = {
        "w1": scale * jax.random.normal(ks[0], (D_IN, H), jnp.float32),
        "b1": jnp.zeros((1, H), jnp.float32),
        "w2": scale * jax.random.normal(ks[1], (H, H), jnp.float32),
        "b2": jnp.zeros((1, H), jnp.float32),
        "w3": scale * jax.random.normal(ks[2], (H, L), jnp.float32),
        "b3": jnp.zeros((1, L), jnp.float32),
    }
    inducing_points = jax.random.normal(ks[3], (M, L), jnp.float32)
    var_mean = 0.1 * jax.random.normal(ks[4], (M, 1), jnp.float32)
    var_chol = (0.5 * jnp.eye(M, dtype=jnp.float32)
                + 0.01 * jnp.tril(jax.random.normal(ks[5], (M, M), jnp.float32), -1))
    return {
        "fe": fe,
        "inducing_points": inducing_points,
        "var_mean": var_mean,
        "var_chol": var_chol,
        "lengthscale": jnp.full((1, 1), 1.0, jnp.float32),
        "outputscale": jnp.full((1, 1), 1.0, jnp.float32),
    }


if __name__ == "__main__":
    key = jax.random.PRNGKey(0)
    kp, kx = jax.random.split(key)
    params = init_params(kp)
    x = jax.random.normal(kx, (B, D_IN), jnp.float32)

    fwd = jax.jit(ft_deep_kernel_gp_forward)
    mean, cov = fwd(x, params)
    jax.block_until_ready((mean, cov))

    assert mean.shape == (B,) and cov.shape == (B, B)
    assert bool(jnp.all(jnp.isfinite(mean))) and bool(jnp.all(jnp.isfinite(cov)))

    ref_mean, ref_cov = reference_forward(x, params)
    # bf16 MXU passes in the MLP (f32 accumulation) -> slightly looser tolerance
    # than the all-f32 reference; the RBF/exp path is still full f32.
    assert bool(jnp.allclose(mean, ref_mean, atol=2e-3, rtol=2e-2)), "mean mismatch"
    assert bool(jnp.allclose(cov, ref_cov, atol=2e-3, rtol=2e-2)), "cov mismatch"

    print("KERNEL_OK")
</pallas_src>

<mosaic_0001>
module attributes {stable_mosaic.version = 11 : i64} {
  func.func @fused_gp_kernel(%arg0: i32, %arg1: i32, %arg2: memref<128x16xf32, #tpu.memory_space<vmem>>, %arg3: memref<128x16xf32, #tpu.memory_space<vmem>>, %arg4: memref<16x32xbf16, #tpu.memory_space<vmem>>, %arg5: memref<1x32xf32, #tpu.memory_space<vmem>>, %arg6: memref<32x32xbf16, #tpu.memory_space<vmem>>, %arg7: memref<1x32xf32, #tpu.memory_space<vmem>>, %arg8: memref<32x16xbf16, #tpu.memory_space<vmem>>, %arg9: memref<1x16xf32, #tpu.memory_space<vmem>>, %arg10: memref<16x16xf32, #tpu.memory_space<vmem>>, %arg11: memref<1x16xf32, #tpu.memory_space<vmem>>, %arg12: memref<1x1xf32, #tpu.memory_space<vmem>>, %arg13: memref<16x1xf32, #tpu.memory_space<vmem>>, %arg14: memref<16x16xf32, #tpu.memory_space<vmem>>, %arg15: memref<128x1xf32, #tpu.memory_space<vmem>>, %arg16: memref<128x128xf32, #tpu.memory_space<vmem>>, %arg17: memref<128x16xf32, #tpu.memory_space<vmem>>, %arg18: memref<128x1xf32, #tpu.memory_space<vmem>>) attributes {dimension_semantics = [#tpu.dimension_semantics<parallel>, #tpu.dimension_semantics<arbitrary>], iteration_bounds = array<i64: 1, 1>, scalar_prefetch = 0 : i64, scratch_operands = 2 : i64, tpu.core_type = #tpu.core_type<tc>, window_params = [{transform_indices = @transform_0, window_bounds = array<i64: 128, 16>}, {transform_indices = @transform_1, window_bounds = array<i64: 128, 16>}, {pipeline_mode = #tpu.pipeline_mode<synchronous>, transform_indices = @transform_2, window_bounds = array<i64: 16, 32>}, {pipeline_mode = #tpu.pipeline_mode<synchronous>, transform_indices = @transform_3, window_bounds = array<i64: 1, 32>}, {pipeline_mode = #tpu.pipeline_mode<synchronous>, transform_indices = @transform_4, window_bounds = array<i64: 32, 32>}, {pipeline_mode = #tpu.pipeline_mode<synchronous>, transform_indices = @transform_5, window_bounds = array<i64: 1, 32>}, {pipeline_mode = #tpu.pipeline_mode<synchronous>, transform_indices = @transform_6, window_bounds = array<i64: 32, 16>}, {pipeline_mode = #tpu.pipeline_mode<synchronous>, transform_indices = @transform_7, window_bounds = array<i64: 1, 16>}, {pipeline_mode = #tpu.pipeline_mode<synchronous>, transform_indices = @transform_8, window_bounds = array<i64: 16, 16>}, {pipeline_mode = #tpu.pipeline_mode<synchronous>, transform_indices = @transform_9, window_bounds = array<i64: 1, 16>}, {pipeline_mode = #tpu.pipeline_mode<synchronous>, transform_indices = @transform_10, window_bounds = array<i64: 1, 1>}, {pipeline_mode = #tpu.pipeline_mode<synchronous>, transform_indices = @transform_11, window_bounds = array<i64: 16, 1>}, {pipeline_mode = #tpu.pipeline_mode<synchronous>, transform_indices = @transform_12, window_bounds = array<i64: 16, 16>}, {transform_indices = @transform_13, window_bounds = array<i64: 128, 1>}, {transform_indices = @transform_14, window_bounds = array<i64: 128, 128>}]} {
    %cst = arith.constant 1.000000e+00 : f32
    %0 = vector.broadcast %cst : f32 to vector<1x16xf32>
    %c0_i32 = arith.constant 0 : i32
    %1 = arith.cmpi eq, %arg1, %c0_i32 : i32
    %2 = arith.extui %1 : i1 to i32
    %c0_i32_0 = arith.constant 0 : i32
    %3 = arith.cmpi ne, %2, %c0_i32_0 : i32
    scf.if %3 {
      %c0_54 = arith.constant 0 : index
      %c0_55 = arith.constant 0 : index
      %81 = vector.load %arg2[%c0_54, %c0_55] : memref<128x16xf32, #tpu.memory_space<vmem>>, vector<128x16xf32>
      %82 = arith.truncf %81 : vector<128x16xf32> to vector<128x16xbf16>
      %c0_56 = arith.constant 0 : index
      %c0_57 = arith.constant 0 : index
      %83 = vector.load %arg4[%c0_56, %c0_57] : memref<16x32xbf16, #tpu.memory_space<vmem>>, vector<16x32xbf16>
      %cst_58 = arith.constant dense<0.000000e+00> : vector<128x32xf32>
      %84 = tpu.matmul %82, %83, %cst_58 {dimension_numbers = #tpu.dot_dimension_numbers<[1], [0], [0], [1], [0, 0, 1, 1], [], []>} : vector<128x16xbf16>, vector<16x32xbf16>, vector<128x32xf32> -> vector<128x32xf32>
      %c0_59 = arith.constant 0 : index
      %c0_60 = arith.constant 0 : index
      %85 = vector.load %arg5[%c0_59, %c0_60] : memref<1x32xf32, #tpu.memory_space<vmem>>, vector<1x32xf32>
      %86 = vector.broadcast %85 : vector<1x32xf32> to vector<128x32xf32>
      %87 = arith.addf %84, %86 : vector<128x32xf32>
      %cst_61 = arith.constant 0.000000e+00 : f32
      %88 = vector.broadcast %cst_61 : f32 to vector<128x32xf32>
      %89 = arith.maximumf %87, %88 : vector<128x32xf32>
      %90 = arith.truncf %89 : vector<128x32xf32> to vector<128x32xbf16>
      %c0_62 = arith.constant 0 : index
      %c0_63 = arith.constant 0 : index
      %91 = vector.load %arg6[%c0_62, %c0_63] : memref<32x32xbf16, #tpu.memory_space<vmem>>, vector<32x32xbf16>
      %cst_64 = arith.constant dense<0.000000e+00> : vector<128x32xf32>
      %92 = tpu.matmul %90, %91, %cst_64 {dimension_numbers = #tpu.dot_dimension_numbers<[1], [0], [0], [1], [0, 0, 1, 1], [], []>} : vector<128x32xbf16>, vector<32x32xbf16>, vector<128x32xf32> -> vector<128x32xf32>
      %c0_65 = arith.constant 0 : index
      %c0_66 = arith.constant 0 : index
      %93 = vector.load %arg7[%c0_65, %c0_66] : memref<1x32xf32, #tpu.memory_space<vmem>>, vector<1x32xf32>
      %94 = vector.broadcast %93 : vector<1x32xf32> to vector<128x32xf32>
      %95 = arith.addf %92, %94 : vector<128x32xf32>
      %cst_67 = arith.constant 0.000000e+00 : f32
      %96 = vector.broadcast %cst_67 : f32 to vector<128x32xf32>
      %97 = arith.maximumf %95, %96 : vector<128x32xf32>
      %98 = arith.truncf %97 : vector<128x32xf32> to vector<128x32xbf16>
      %c0_68 = arith.constant 0 : index
      %c0_69 = arith.constant 0 : index
      %99 = vector.load %arg8[%c0_68, %c0_69] : memref<32x16xbf16, #tpu.memory_space<vmem>>, vector<32x16xbf16>
      %cst_70 = arith.constant dense<0.000000e+00> : vector<128x16xf32>
      %100 = tpu.matmul %98, %99, %cst_70 {dimension_numbers = #tpu.dot_dimension_numbers<[1], [0], [0], [1], [0, 0, 1, 1], [], []>} : vector<128x32xbf16>, vector<32x16xbf16>, vector<128x16xf32> -> vector<128x16xf32>
      %c0_71 = arith.constant 0 : index
      %c0_72 = arith.constant 0 : index
      %101 = vector.load %arg9[%c0_71, %c0_72] : memref<1x16xf32, #tpu.memory_space<vmem>>, vector<1x16xf32>
      %102 = vector.broadcast %101 : vector<1x16xf32> to vector<128x16xf32>
      %103 = arith.addf %100, %102 : vector<128x16xf32>
      %c0_73 = arith.constant 0 : index
      %c0_74 = arith.constant 0 : index
      %104 = vector.load %arg17[%c0_73, %c0_74] : memref<128x16xf32, #tpu.memory_space<vmem>>, vector<128x16xf32>
      tpu.vector_store %arg17[%c0_73, %c0_74], %103 {strides = array<i32>} : memref<128x16xf32, #tpu.memory_space<vmem>>, vector<128x16xf32>,
      %105 = arith.mulf %103, %103 : vector<128x16xf32>
      %cst_75 = arith.constant dense<0.000000e+00> : vector<128x1xf32>
      %106 = tpu.matmul %105, %0, %cst_75 {dimension_numbers = #tpu.dot_dimension_numbers<[1], [1], [0], [0], [0, 0, 1, 0], [], []>} : vector<128x16xf32>, vector<1x16xf32>, vector<128x1xf32> -> vector<128x1xf32>
      %c0_76 = arith.constant 0 : index
      %c0_77 = arith.constant 0 : index
      %107 = vector.load %arg18[%c0_76, %c0_77] : memref<128x1xf32, #tpu.memory_space<vmem>>, vector<128x1xf32>
      tpu.vector_store %arg18[%c0_76, %c0_77], %106 {strides = array<i32>} : memref<128x1xf32, #tpu.memory_space<vmem>>, vector<128x1xf32>,
    } else {
    }
    %c0 = arith.constant 0 : index
    %c0_1 = arith.constant 0 : index
    %4 = vector.load %arg17[%c0, %c0_1] : memref<128x16xf32, #tpu.memory_space<vmem>>, vector<128x16xf32>
    %c0_2 = arith.constant 0 : index
    %c0_3 = arith.constant 0 : index
    %5 = vector.load %arg18[%c0_2, %c0_3] : memref<128x1xf32, #tpu.memory_space<vmem>>, vector<128x1xf32>
    %c0_4 = arith.constant 0 : index
    %c0_5 = arith.constant 0 : index
    %6 = vector.load %arg3[%c0_4, %c0_5] : memref<128x16xf32, #tpu.memory_space<vmem>>, vector<128x16xf32>
    %7 = arith.truncf %6 : vector<128x16xf32> to vector<128x16xbf16>
    %c0_6 = arith.constant 0 : index
    %c0_7 = arith.constant 0 : index
    %8 = vector.load %arg4[%c0_6, %c0_7] : memref<16x32xbf16, #tpu.memory_space<vmem>>, vector<16x32xbf16>
    %cst_8 = arith.constant dense<0.000000e+00> : vector<128x32xf32>
    %9 = tpu.matmul %7, %8, %cst_8 {dimension_numbers = #tpu.dot_dimension_numbers<[1], [0], [0], [1], [0, 0, 1, 1], [], []>} : vector<128x16xbf16>, vector<16x32xbf16>, vector<128x32xf32> -> vector<128x32xf32>
    %c0_9 = arith.constant 0 : index
    %c0_10 = arith.constant 0 : index
    %10 = vector.load %arg5[%c0_9, %c0_10] : memref<1x32xf32, #tpu.memory_space<vmem>>, vector<1x32xf32>
    %11 = vector.broadcast %10 : vector<1x32xf32> to vector<128x32xf32>
    %12 = arith.addf %9, %11 : vector<128x32xf32>
    %cst_11 = arith.constant 0.000000e+00 : f32
    %13 = vector.broadcast %cst_11 : f32 to vector<128x32xf32>
    %14 = arith.maximumf %12, %13 : vector<128x32xf32>
    %15 = arith.truncf %14 : vector<128x32xf32> to vector<128x32xbf16>
    %c0_12 = arith.constant 0 : index
    %c0_13 = arith.constant 0 : index
    %16 = vector.load %arg6[%c0_12, %c0_13] : memref<32x32xbf16, #tpu.memory_space<vmem>>, vector<32x32xbf16>
    %cst_14 = arith.constant dense<0.000000e+00> : vector<128x32xf32>
    %17 = tpu.matmul %15, %16, %cst_14 {dimension_numbers = #tpu.dot_dimension_numbers<[1], [0], [0], [1], [0, 0, 1, 1], [], []>} : vector<128x32xbf16>, vector<32x32xbf16>, vector<128x32xf32> -> vector<128x32xf32>
    %c0_15 = arith.constant 0 : index
    %c0_16 = arith.constant 0 : index
    %18 = vector.load %arg7[%c0_15, %c0_16] : memref<1x32xf32, #tpu.memory_space<vmem>>, vector<1x32xf32>
    %19 = vector.broadcast %18 : vector<1x32xf32> to vector<128x32xf32>
    %20 = arith.addf %17, %19 : vector<128x32xf32>
    %cst_17 = arith.constant 0.000000e+00 : f32
    %21 = vector.broadcast %cst_17 : f32 to vector<128x32xf32>
    %22 = arith.maximumf %20, %21 : vector<128x32xf32>
    %23 = arith.truncf %22 : vector<128x32xf32> to vector<128x32xbf16>
    %c0_18 = arith.constant 0 : index
    %c0_19 = arith.constant 0 : index
    %24 = vector.load %arg8[%c0_18, %c0_19] : memref<32x16xbf16, #tpu.memory_space<vmem>>, vector<32x16xbf16>
    %cst_20 = arith.constant dense<0.000000e+00> : vector<128x16xf32>
    %25 = tpu.matmul %23, %24, %cst_20 {dimension_numbers = #tpu.dot_dimension_numbers<[1], [0], [0], [1], [0, 0, 1, 1], [], []>} : vector<128x32xbf16>, vector<32x16xbf16>, vector<128x16xf32> -> vector<128x16xf32>
    %c0_21 = arith.constant 0 : index
    %c0_22 = arith.constant 0 : index
    %26 = vector.load %arg9[%c0_21, %c0_22] : memref<1x16xf32, #tpu.memory_space<vmem>>, vector<1x16xf32>
    %27 = vector.broadcast %26 : vector<1x16xf32> to vector<128x16xf32>
    %28 = arith.addf %25, %27 : vector<128x16xf32>
    %29 = arith.mulf %28, %28 : vector<128x16xf32>
    %cst_23 = arith.constant dense<0.000000e+00> : vector<128x1xf32>
    %30 = tpu.matmul %29, %0, %cst_23 {dimension_numbers = #tpu.dot_dimension_numbers<[1], [1], [0], [0], [0, 0, 1, 0], [], []>} : vector<128x16xf32>, vector<1x16xf32>, vector<128x1xf32> -> vector<128x1xf32>
    %cst_24 = arith.constant dense<0.000000e+00> : vector<1x128xf32>
    %31 = tpu.matmul %0, %29, %cst_24 {dimension_numbers = #tpu.dot_dimension_numbers<[1], [1], [0], [0], [0, 0, 1, 0], [], []>} : vector<1x16xf32>, vector<128x16xf32>, vector<1x128xf32> -> vector<1x128xf32>
    %c0_25 = arith.constant 0 : index
    %c0_26 = arith.constant 0 : index
    %32 = vector.load %arg11[%c0_25, %c0_26] : memref<1x16xf32, #tpu.memory_space<vmem>>, vector<1x16xf32>
    %c0_27 = arith.constant 0 : index
    %c0_28 = arith.constant 0 : index
    %33 = vector.load %arg10[%c0_27, %c0_28] : memref<16x16xf32, #tpu.memory_space<vmem>>, vector<16x16xf32>
    %34 = vector.broadcast %5 : vector<128x1xf32> to vector<128x16xf32>
    %35 = vector.broadcast %32 : vector<1x16xf32> to vector<128x16xf32>
    %36 = arith.addf %34, %35 : vector<128x16xf32>
    %cst_29 = arith.constant dense<0.000000e+00> : vector<128x16xf32>
    %37 = tpu.matmul %4, %33, %cst_29 {dimension_numbers = #tpu.dot_dimension_numbers<[1], [1], [0], [0], [0, 0, 1, 0], [], []>} : vector<128x16xf32>, vector<16x16xf32>, vector<128x16xf32> -> vector<128x16xf32>
    %cst_30 = arith.constant 2.000000e+00 : f32
    %38 = vector.broadcast %cst_30 : f32 to vector<128x16xf32>
    %39 = arith.mulf %38, %37 : vector<128x16xf32>
    %40 = arith.subf %36, %39 : vector<128x16xf32>
    %cst_31 = arith.constant 0.000000e+00 : f32
    %41 = vector.broadcast %cst_31 : f32 to vector<128x16xf32>
    %42 = arith.maximumf %40, %41 : vector<128x16xf32>
    %cst_32 = arith.constant -5.000000e-01 : f32
    %43 = vector.broadcast %cst_32 : f32 to vector<128x16xf32>
    %44 = arith.mulf %43, %42 : vector<128x16xf32>
    %45 = math.exp %44 : vector<128x16xf32>
    %46 = vector.broadcast %30 : vector<128x1xf32> to vector<128x16xf32>
    %47 = vector.broadcast %32 : vector<1x16xf32> to vector<128x16xf32>
    %48 = arith.addf %46, %47 : vector<128x16xf32>
    %cst_33 = arith.constant dense<0.000000e+00> : vector<128x16xf32>
    %49 = tpu.matmul %28, %33, %cst_33 {dimension_numbers = #tpu.dot_dimension_numbers<[1], [1], [0], [0], [0, 0, 1, 0], [], []>} : vector<128x16xf32>, vector<16x16xf32>, vector<128x16xf32> -> vector<128x16xf32>
    %cst_34 = arith.constant 2.000000e+00 : f32
    %50 = vector.broadcast %cst_34 : f32 to vector<128x16xf32>
    %51 = arith.mulf %50, %49 : vector<128x16xf32>
    %52 = arith.subf %48, %51 : vector<128x16xf32>
    %cst_35 = arith.constant 0.000000e+00 : f32
    %53 = vector.broadcast %cst_35 : f32 to vector<128x16xf32>
    %54 = arith.maximumf %52, %53 : vector<128x16xf32>
    %cst_36 = arith.constant -5.000000e-01 : f32
    %55 = vector.broadcast %cst_36 : f32 to vector<128x16xf32>
    %56 = arith.mulf %55, %54 : vector<128x16xf32>
    %57 = math.exp %56 : vector<128x16xf32>
    %c0_37 = arith.constant 0 : index
    %c0_38 = arith.constant 0 : index
    %58 = vector.load %arg13[%c0_37, %c0_38] : memref<16x1xf32, #tpu.memory_space<vmem>>, vector<16x1xf32>
    %cst_39 = arith.constant dense<0.000000e+00> : vector<128x1xf32>
    %59 = tpu.matmul %45, %58, %cst_39 {dimension_numbers = #tpu.dot_dimension_numbers<[1], [0], [0], [1], [0, 0, 1, 1], [], []>} : vector<128x16xf32>, vector<16x1xf32>, vector<128x1xf32> -> vector<128x1xf32>
    %c0_40 = arith.constant 0 : index
    %c0_41 = arith.constant 0 : index
    %60 = vector.load %arg15[%c0_40, %c0_41] : memref<128x1xf32, #tpu.memory_space<vmem>>, vector<128x1xf32>
    tpu.vector_store %arg15[%c0_40, %c0_41], %59 {strides = array<i32>} : memref<128x1xf32, #tpu.memory_space<vmem>>, vector<128x1xf32>,
    %61 = vector.broadcast %5 : vector<128x1xf32> to vector<128x128xf32>
    %62 = vector.broadcast %31 : vector<1x128xf32> to vector<128x128xf32>
    %63 = arith.addf %61, %62 : vector<128x128xf32>
    %cst_42 = arith.constant dense<0.000000e+00> : vector<128x128xf32>
    %64 = tpu.matmul %4, %28, %cst_42 {dimension_numbers = #tpu.dot_dimension_numbers<[1], [1], [0], [0], [0, 0, 1, 0], [], []>} : vector<128x16xf32>, vector<128x16xf32>, vector<128x128xf32> -> vector<128x128xf32>
    %cst_43 = arith.constant 2.000000e+00 : f32
    %65 = vector.broadcast %cst_43 : f32 to vector<128x128xf32>
    %66 = arith.mulf %65, %64 : vector<128x128xf32>
    %67 = arith.subf %63, %66 : vector<128x128xf32>
    %cst_44 = arith.constant 0.000000e+00 : f32
    %68 = vector.broadcast %cst_44 : f32 to vector<128x128xf32>
    %69 = arith.maximumf %67, %68 : vector<128x128xf32>
    %c0_45 = arith.constant 0 : index
    %c0_46 = arith.constant 0 : index
    %70 = vector.load %arg12[%c0_45, %c0_46] : memref<1x1xf32, #tpu.memory_space<vmem>>, vector<1x1xf32>
    %cst_47 = arith.constant 5.000000e-01 : f32
    %71 = vector.broadcast %cst_47 : f32 to vector<128x128xf32>
    %72 = arith.mulf %71, %69 : vector<128x128xf32>
    %73 = vector.broadcast %70 : vector<1x1xf32> to vector<128x128xf32>
    %74 = arith.subf %73, %72 : vector<128x128xf32>
    %75 = math.exp %74 : vector<128x128xf32>
    %c0_48 = arith.constant 0 : index
    %c0_49 = arith.constant 0 : index
    %76 = vector.load %arg14[%c0_48, %c0_49] : memref<16x16xf32, #tpu.memory_space<vmem>>, vector<16x16xf32>
    %cst_50 = arith.constant dense<0.000000e+00> : vector<128x16xf32>
    %77 = tpu.matmul %45, %76, %cst_50 {dimension_numbers = #tpu.dot_dimension_numbers<[1], [0], [0], [1], [0, 0, 1, 1], [], []>} : vector<128x16xf32>, vector<16x16xf32>, vector<128x16xf32> -> vector<128x16xf32>
    %cst_51 = arith.constant dense<0.000000e+00> : vector<128x128xf32>
    %78 = tpu.matmul %77, %57, %cst_51 {dimension_numbers = #tpu.dot_dimension_numbers<[1], [1], [0], [0], [0, 0, 1, 0], [], []>} : vector<128x16xf32>, vector<128x16xf32>, vector<128x128xf32> -> vector<128x128xf32>
    %79 = arith.addf %75, %78 : vector<128x128xf32>
    %c0_52 = arith.constant 0 : index
    %c0_53 = arith.constant 0 : index
    %80 = vector.load %arg16[%c0_52, %c0_53] : memref<128x128xf32, #tpu.memory_space<vmem>>, vector<128x128xf32>
    tpu.vector_store %arg16[%c0_52, %c0_53], %79 {strides = array<i32>} : memref<128x128xf32, #tpu.memory_space<vmem>>, vector<128x128xf32>,
    return
  }
  func.func @transform_0(%arg0: i32, %arg1: i32) -> (i32, i32) {
    %c0_i32 = arith.constant 0 : i32
    %c0_i32_0 = arith.constant 0 : i32
    return %arg0, %c0_i32 : i32, i32
  }
  func.func @transform_1(%arg0: i32, %arg1: i32) -> (i32, i32) {
    %c0_i32 = arith.constant 0 : i32
    %c0_i32_0 = arith.constant 0 : i32
    return %arg1, %c0_i32 : i32, i32
  }
  func.func @transform_2(%arg0: i32, %arg1: i32) -> (i32, i32) {
    %c0_i32 = arith.constant 0 : i32
    %c0_i32_0 = arith.constant 0 : i32
    %c0_i32_1 = arith.constant 0 : i32
    return %c0_i32, %c0_i32_0 : i32, i32
  }
  func.func @transform_3(%arg0: i32, %arg1: i32) -> (i32, i32) {
    %c0_i32 = arith.constant 0 : i32
    %c0_i32_0 = arith.constant 0 : i32
    %c0_i32_1 = arith.constant 0 : i32
    return %c0_i32, %c0_i32_0 : i32, i32
  }
  func.func @transform_4(%arg0: i32, %arg1: i32) -> (i32, i32) {
    %c0_i32 = arith.constant 0 : i32
    %c0_i32_0 = arith.constant 0 : i32
    %c0_i32_1 = arith.constant 0 : i32
    return %c0_i32, %c0_i32_0 : i32, i32
  }
  func.func @transform_5(%arg0: i32, %arg1: i32) -> (i32, i32) {
    %c0_i32 = arith.constant 0 : i32
    %c0_i32_0 = arith.constant 0 : i32
    %c0_i32_1 = arith.constant 0 : i32
    return %c0_i32, %c0_i32_0 : i32, i32
  }
  func.func @transform_6(%arg0: i32, %arg1: i32) -> (i32, i32) {
    %c0_i32 = arith.constant 0 : i32
    %c0_i32_0 = arith.constant 0 : i32
    %c0_i32_1 = arith.constant 0 : i32
    return %c0_i32, %c0_i32_0 : i32, i32
  }
  func.func @transform_7(%arg0: i32, %arg1: i32) -> (i32, i32) {
    %c0_i32 = arith.constant 0 : i32
    %c0_i32_0 = arith.constant 0 : i32
    %c0_i32_1 = arith.constant 0 : i32
    return %c0_i32, %c0_i32_0 : i32, i32
  }
  func.func @transform_8(%arg0: i32, %arg1: i32) -> (i32, i32) {
    %c0_i32 = arith.constant 0 : i32
    %c0_i32_0 = arith.constant 0 : i32
    %c0_i32_1 = arith.constant 0 : i32
    return %c0_i32, %c0_i32_0 : i32, i32
  }
  func.func @transform_9(%arg0: i32, %arg1: i32) -> (i32, i32) {
    %c0_i32 = arith.constant 0 : i32
    %c0_i32_0 = arith.constant 0 : i32
    %c0_i32_1 = arith.constant 0 : i32
    return %c0_i32, %c0_i32_0 : i32, i32
  }
  func.func @transform_10(%arg0: i32, %arg1: i32) -> (i32, i32) {
    %c0_i32 = arith.constant 0 : i32
    %c0_i32_0 = arith.constant 0 : i32
    %c0_i32_1 = arith.constant 0 : i32
    return %c0_i32, %c0_i32_0 : i32, i32
  }
  func.func @transform_11(%arg0: i32, %arg1: i32) -> (i32, i32) {
    %c0_i32 = arith.constant 0 : i32
    %c0_i32_0 = arith.constant 0 : i32
    %c0_i32_1 = arith.constant 0 : i32
    return %c0_i32, %c0_i32_0 : i32, i32
  }
  func.func @transform_12(%arg0: i32, %arg1: i32) -> (i32, i32) {
    %c0_i32 = arith.constant 0 : i32
    %c0_i32_0 = arith.constant 0 : i32
    %c0_i32_1 = arith.constant 0 : i32
    return %c0_i32, %c0_i32_0 : i32, i32
  }
  func.func @transform_13(%arg0: i32, %arg1: i32) -> (i32, i32) {
    %c0_i32 = arith.constant 0 : i32
    %c0_i32_0 = arith.constant 0 : i32
    return %arg0, %c0_i32 : i32, i32
  }
  func.func @transform_14(%arg0: i32, %arg1: i32) -> (i32, i32) {
    %c0_i32 = arith.constant 0 : i32
    return %arg0, %arg1 : i32, i32
  }
}

</mosaic_0001>

<bundles_post_ra>
// kernel: custom-call.10
= control target key start
LH: loop header
LB: loop body
LE: loop exit
PB: predicated region body
PF: predicated region fallthrough
CT: control target
= control target key end

     0   :  { %v592_v0 = vmov 0.0   ;;  %vm41_vm0 = vcmask 7168   ;;  %vm72_vm1 = vcmask 15368   ;;  %vm89_vm2 = vcmask 1047553   ;;  %s676_s0 = inlined_call_operand.vmem [shape: f32[16,16], index: 0, kind: input, shape index: {}]   ;;  %s677_s1 = inlined_call_operand.vmem [shape: f32[16,16], index: 1, kind: output, shape index: {}]  }
   0x1   :  { %38 = vst [vmem:[#allocation1] sm:$0xff] %v592_v0  ;;  %v606_v4 = vld [vmem:[%s676_s0] sm:$0xff]  ;;  %v612_v5 = vld [vmem:[%s676_s0 + $0x8] sm:$0xff]  ;;  %vm90_vm3 = vmand %vm72_vm1, %vm89_vm2  ;;  %vm107_vm4 = vcmask 23568   ;;  %vm124_vm5 = vcmask 1047554   ;;  %vm142_vm7 = vcmask 31768  }
   0x2   :  { %32 = vst [vmem:[#allocation0] sm:$0xff] %v606_v4  ;;  %34 = vst [vmem:[#allocation0 + $0x8] sm:$0xff] %v612_v5  ;;  %vm159_vm8 = vcmask 1047555   ;;  %vm177_vm10 = vcmask 39968   ;;  %vm194_vm11 = vcmask 1047556   ;;  %vm212_vm13 = vcmask 48168  }
   0x3   :  { %vm125_vm6 = vmand %vm107_vm4, %vm124_vm5  ;;  %vm229_vm14 = vcmask 1047557  }
   0x4   :  { %vm160_vm9 = vmand %vm142_vm7, %vm159_vm8 }
   0x5   :  { %vm195_vm12 = vmand %vm177_vm10, %vm194_vm11 }
   0x6   :  { %vm230_vm15 = vmand %vm212_vm13, %vm229_vm14 }
   0x8   :  { %v42_v1 = vld [vmem:[#allocation1] ss:$0 sm:$0xff] }
   0x9   :  { %v44_v2 = vmul.f32 %v42_v1, %v42_v1  ;;  %v63_v3 = vmul.f32 0.0, %v42_v1  ;;  %v43_v6 = vld [vmem:[#allocation0] ss:$0 sm:$0xff]  ;;  %v76_v22 = vld [vmem:[#allocation0 + $0x1] ss:$0 sm:$0xff] }
   0xa   :  { %v111_v40 = vld [vmem:[#allocation0 + $0x2] ss:$0 sm:$0xff]  ;;  %v146_v58 = vld [vmem:[#allocation0 + $0x3] ss:$0 sm:$0xff] }
   0xb   :  { %45 = vadd.xlane.f32.xlu0 %v44_v2  ;;  %64 = vadd.xlane.f32.xlu1 %v63_v3 }
   0xf   :  { %52 = vadd.xlane.f32.xlu0 %v63_v3 }
  0x98   :  { %v46_v7 = vpop.xlane.xlu0 %45  ;;  %v65_v13 = vpop.xlane.xlu1 %64 }
  0x99   :  { %v47_v8 = vsub.f32 %v43_v6, %v46_v7  ;;  %v66_v15 = vsub.f32 %v612_v5, %v65_v13 }
  0x9b   :  { %560 = vrsqrt.f32 %v47_v8 }
  0x9c   :  { %v53_v9 = vpop.xlane.xlu0 %52 }
  0x9d   :  { %v54_v10 = vsub.f32 %v606_v4, %v53_v9 }
  0xa5   :  { %v561_v11 = vpop.eup %560 }
  0xa6   :  { %v55_v12 = vmul.f32 %v561_v11, %v54_v10  ;;  %v67_v16 = vmul.f32 %v561_v11, %v66_v15 }
  0xa8   :  { %v56_v14 = vsel %vm41_vm0, %v55_v12, 0.0  ;;  %v68_v17 = vsel %vm41_vm0, %v67_v16, 0.0  ;;  %vm247_vm0 = vcmask 56368  }
  0xa9   :  { %58 = vst [vmem:[#allocation1] sm:$0xff] %v56_v14 }
  0xb0   :  { %v74_v18 = vld [vmem:[#allocation1 + $0x1] ss:$0 sm:$0xff] }
  0xb1   :  { %v84_v19 = vmul.f32 %v74_v18, %v56_v14  ;;  %v77_v20 = vmul.f32 %v74_v18, %v74_v18  ;;  %v98_v21 = vmul.f32 %v74_v18, %v68_v17 }
  0xb3   :  { %85 = vadd.xlane.f32.xlu0 %v84_v19  ;;  %78 = vadd.xlane.f32.xlu1 %v77_v20 }
  0xb7   :  { %99 = vadd.xlane.f32.xlu1 %v98_v21 }
 0x140   :  { %v79_v23 = vpop.xlane.xlu1 %78  ;;  %v86_v25 = vpop.xlane.xlu0 %85 }
 0x141   :  { %v80_v24 = vsub.f32 %v76_v22, %v79_v23  ;;  %v87_v26 = vsub.f32 %v606_v4, %v86_v25 }
 0x143   :  { %562 = vrsqrt.f32 %v80_v24 }
 0x144   :  { %v100_v31 = vpop.xlane.xlu1 %99 }
 0x145   :  { %v101_v32 = vsub.f32 %v612_v5, %v100_v31 }
 0x14d   :  { %v563_v27 = vpop.eup %562 }
 0x14e   :  { %v88_v28 = vmul.f32 %v563_v27, %v87_v26  ;;  %v102_v33 = vmul.f32 %v563_v27, %v101_v32  ;;  %v216_v32 = vld [vmem:[#allocation0 + $0x5] ss:$0 sm:$0xff] }
 0x150   :  { %v91_v29 = vsel %vm90_vm3, %v88_v28, 0.0  ;;  %v103_v34 = vsel %vm72_vm1, %v102_v33, 0.0  ;;  %vm264_vm1 = vcmask 1047558  }
 0x151   :  { %v92_v30 = vadd.f32 %v91_v29, %v56_v14  ;;  %v104_v38 = vadd.f32 %v103_v34, %v68_v17  ;;  %v181_v14 = vld [vmem:[#allocation0 + $0x4] ss:$0 sm:$0xff]  ;;  %vm265_vm3 = vmand %vm247_vm0, %vm264_vm1 }
 0x153   :  { %93 = vst [vmem:[#allocation1] sm:$0xff] %v92_v30 }
 0x15a   :  { %v109_v35 = vld [vmem:[#allocation1 + $0x2] ss:$0 sm:$0xff] }
 0x15b   :  { %v119_v36 = vmul.f32 %v109_v35, %v92_v30  ;;  %v112_v37 = vmul.f32 %v109_v35, %v109_v35  ;;  %v133_v39 = vmul.f32 %v109_v35, %v104_v38 }
 0x15d   :  { %120 = vadd.xlane.f32.xlu1 %v119_v36  ;;  %113 = vadd.xlane.f32.xlu0 %v112_v37 }
 0x161   :  { %134 = vadd.xlane.f32.xlu0 %v133_v39 }
 0x1ea   :  { %v114_v41 = vpop.xlane.xlu0 %113  ;;  %v121_v43 = vpop.xlane.xlu1 %120 }
 0x1eb   :  { %v115_v42 = vsub.f32 %v111_v40, %v114_v41  ;;  %v122_v44 = vsub.f32 %v606_v4, %v121_v43 }
 0x1ed   :  { %564 = vrsqrt.f32 %v115_v42 }
 0x1ee   :  { %v135_v49 = vpop.xlane.xlu0 %134 }
 0x1ef   :  { %v136_v50 = vsub.f32 %v612_v5, %v135_v49 }
 0x1f7   :  { %v565_v45 = vpop.eup %564 }
 0x1f8   :  { %v123_v46 = vmul.f32 %v565_v45, %v122_v44  ;;  %v137_v51 = vmul.f32 %v565_v45, %v136_v50  ;;  %v251_v50 = vld [vmem:[#allocation0 + $0x6] ss:$0 sm:$0xff] }
 0x1fa   :  { %v126_v47 = vsel %vm125_vm6, %v123_v46, 0.0  ;;  %v138_v52 = vsel %vm107_vm4, %v137_v51, 0.0  ;;  %vm282_vm4 = vcmask 64568   ;;  %vm317_vm6 = vcmask 72768  }
 0x1fb   :  { %v127_v48 = vadd.f32 %v126_v47, %v92_v30  ;;  %v139_v56 = vadd.f32 %v138_v52, %v104_v38 }
 0x1fd   :  { %128 = vst [vmem:[#allocation1] sm:$0xff] %v127_v48 }
 0x204   :  { %v144_v53 = vld [vmem:[#allocation1 + $0x3] ss:$0 sm:$0xff] }
 0x205   :  { %v154_v54 = vmul.f32 %v144_v53, %v127_v48  ;;  %v147_v55 = vmul.f32 %v144_v53, %v144_v53  ;;  %v168_v57 = vmul.f32 %v144_v53, %v139_v56 }
 0x207   :  { %155 = vadd.xlane.f32.xlu0 %v154_v54  ;;  %148 = vadd.xlane.f32.xlu1 %v147_v55 }
 0x20b   :  { %169 = vadd.xlane.f32.xlu1 %v168_v57 }
 0x294   :  { %v149_v59 = vpop.xlane.xlu1 %148  ;;  %v156_v61 = vpop.xlane.xlu0 %155 }
 0x295   :  { %v150_v60 = vsub.f32 %v146_v58, %v149_v59  ;;  %v157_v62 = vsub.f32 %v606_v4, %v156_v61 }
 0x297   :  { %566 = vrsqrt.f32 %v150_v60 }
 0x298   :  { %v170_v3 = vpop.xlane.xlu1 %169 }
 0x299   :  { %v171_v6 = vsub.f32 %v612_v5, %v170_v3  ;;  %v286_v3 = vld [vmem:[#allocation0 + $0x7] ss:$0 sm:$0xff] }
 0x2a1   :  { %v567_v63 = vpop.eup %566 }
 0x2a2   :  { %v158_v0 = vmul.f32 %v567_v63, %v157_v62  ;;  %v172_v7 = vmul.f32 %v567_v63, %v171_v6 }
 0x2a4   :  { %v161_v1 = vsel %vm160_vm9, %v158_v0, 0.0  ;;  %v173_v8 = vsel %vm142_vm7, %v172_v7, 0.0  ;;  %vm340_vm7 = vcmask 80968  }
 0x2a5   :  { %v162_v2 = vadd.f32 %v161_v1, %v127_v48  ;;  %v174_v12 = vadd.f32 %v173_v8, %v139_v56  ;;  %vm360_vm9 = vmand %vm340_vm7, %vm89_vm2 }
 0x2a7   :  { %163 = vst [vmem:[#allocation1] sm:$0xff] %v162_v2 }
 0x2ae   :  { %v179_v9 = vld [vmem:[#allocation1 + $0x4] ss:$0 sm:$0xff] }
 0x2af   :  { %v189_v10 = vmul.f32 %v179_v9, %v162_v2  ;;  %v182_v11 = vmul.f32 %v179_v9, %v179_v9  ;;  %v203_v13 = vmul.f32 %v179_v9, %v174_v12 }
 0x2b1   :  { %190 = vadd.xlane.f32.xlu1 %v189_v10  ;;  %183 = vadd.xlane.f32.xlu0 %v182_v11 }
 0x2b5   :  { %204 = vadd.xlane.f32.xlu0 %v203_v13 }
 0x33e   :  { %v184_v15 = vpop.xlane.xlu0 %183  ;;  %v191_v17 = vpop.xlane.xlu1 %190 }
 0x33f   :  { %v185_v16 = vsub.f32 %v181_v14, %v184_v15  ;;  %v192_v18 = vsub.f32 %v606_v4, %v191_v17  ;;  %v321_v17 = vld [vmem:[#allocation0 + $0x8] ss:$0 sm:$0xff] }
 0x341   :  { %568 = vrsqrt.f32 %v185_v16 }
 0x342   :  { %v205_v23 = vpop.xlane.xlu0 %204 }
 0x343   :  { %v206_v24 = vsub.f32 %v612_v5, %v205_v23 }
 0x34b   :  { %v569_v19 = vpop.eup %568 }
 0x34c   :  { %v193_v20 = vmul.f32 %v569_v19, %v192_v18  ;;  %v207_v25 = vmul.f32 %v569_v19, %v206_v24 }
 0x34e   :  { %v196_v21 = vsel %vm195_vm12, %v193_v20, 0.0  ;;  %v208_v26 = vsel %vm177_vm10, %v207_v25, 0.0  ;;  %vm365_vm10 = vcmask 89168   ;;  %vm390_vm12 = vcmask 97368  }
 0x34f   :  { %v197_v22 = vadd.f32 %v196_v21, %v162_v2  ;;  %v209_v30 = vadd.f32 %v208_v26, %v174_v12  ;;  %vm385_vm2 = vmand %vm365_vm10, %vm124_vm5 }
 0x350   :  { %vm410_vm5 = vmand %vm390_vm12, %vm159_vm8 }
 0x351   :  { %198 = vst [vmem:[#allocation1] sm:$0xff] %v197_v22 }
 0x358   :  { %v214_v27 = vld [vmem:[#allocation1 + $0x5] ss:$0 sm:$0xff] }
 0x359   :  { %v224_v28 = vmul.f32 %v214_v27, %v197_v22  ;;  %v217_v29 = vmul.f32 %v214_v27, %v214_v27  ;;  %v238_v31 = vmul.f32 %v214_v27, %v209_v30 }
 0x35b   :  { %225 = vadd.xlane.f32.xlu0 %v224_v28  ;;  %218 = vadd.xlane.f32.xlu1 %v217_v29  ;;  %v344_v29 = vld [vmem:[#allocation0 + $0x9] ss:$0 sm:$0xff] }
 0x35f   :  { %239 = vadd.xlane.f32.xlu1 %v238_v31 }
 0x3e8   :  { %v219_v33 = vpop.xlane.xlu1 %218  ;;  %v226_v35 = vpop.xlane.xlu0 %225 }
 0x3e9   :  { %v220_v34 = vsub.f32 %v216_v32, %v219_v33  ;;  %v227_v36 = vsub.f32 %v606_v4, %v226_v35 }
 0x3eb   :  { %570 = vrsqrt.f32 %v220_v34 }
 0x3ec   :  { %v240_v41 = vpop.xlane.xlu1 %239 }
 0x3ed   :  { %v241_v42 = vsub.f32 %v612_v5, %v240_v41  ;;  %v369_v41 = vld [vmem:[#allocation0 + $0xa] ss:$0 sm:$0xff] }
 0x3f5   :  { %v571_v37 = vpop.eup %570 }
 0x3f6   :  { %v228_v38 = vmul.f32 %v571_v37, %v227_v36  ;;  %v242_v43 = vmul.f32 %v571_v37, %v241_v42 }
 0x3f8   :  { %v231_v39 = vsel %vm230_vm15, %v228_v38, 0.0  ;;  %v243_v44 = vsel %vm212_vm13, %v242_v43, 0.0  ;;  %vm415_vm13 = vcmask 105568   ;;  %vm440_vm15 = vcmask 113768  }
 0x3f9   :  { %v232_v40 = vadd.f32 %v231_v39, %v197_v22  ;;  %v244_v48 = vadd.f32 %v243_v44, %v209_v30  ;;  %vm435_vm8 = vmand %vm415_vm13, %vm194_vm11 }
 0x3fa   :  { %vm460_vm11 = vmand %vm440_vm15, %vm229_vm14 }
 0x3fb   :  { %233 = vst [vmem:[#allocation1] sm:$0xff] %v232_v40 }
 0x402   :  { %v249_v45 = vld [vmem:[#allocation1 + $0x6] ss:$0 sm:$0xff] }
 0x403   :  { %v259_v46 = vmul.f32 %v249_v45, %v232_v40  ;;  %v252_v47 = vmul.f32 %v249_v45, %v249_v45  ;;  %v273_v49 = vmul.f32 %v249_v45, %v244_v48 }
 0x405   :  { %260 = vadd.xlane.f32.xlu1 %v259_v46  ;;  %253 = vadd.xlane.f32.xlu0 %v252_v47 }
 0x409   :  { %274 = vadd.xlane.f32.xlu0 %v273_v49 }
 0x492   :  { %v254_v51 = vpop.xlane.xlu0 %253  ;;  %v261_v53 = vpop.xlane.xlu1 %260 }
 0x493   :  { %v255_v52 = vsub.f32 %v251_v50, %v254_v51  ;;  %v262_v54 = vsub.f32 %v606_v4, %v261_v53  ;;  %v394_v53 = vld [vmem:[#allocation0 + $0xb] ss:$0 sm:$0xff] }
 0x495   :  { %572 = vrsqrt.f32 %v255_v52 }
 0x496   :  { %v275_v56 = vpop.xlane.xlu0 %274 }
 0x497   :  { %v276_v59 = vsub.f32 %v612_v5, %v275_v56 }
 0x49f   :  { %v573_v55 = vpop.eup %572 }
 0x4a0   :  { %v263_v57 = vmul.f32 %v573_v55, %v262_v54  ;;  %v277_v61 = vmul.f32 %v573_v55, %v276_v59 }
 0x4a2   :  { %v266_v58 = vsel %vm265_vm3, %v263_v57, 0.0  ;;  %v278_v62 = vsel %vm247_vm0, %v277_v61, 0.0  ;;  %vm299_vm0 = vcmask 1047559   ;;  %vm465_vm3 = vcmask 121968  }
 0x4a3   :  { %v635_v60 = vadd.f32 %v266_v58, %v232_v40  ;;  %v279_v63 = vadd.f32 %v278_v62, %v244_v48  ;;  %vm300_vm14 = vmand %vm282_vm4, %vm299_vm0 }
 0x4a5   :  { %268 = vst [vmem:[#allocation1] sm:$0xff] %v635_v60 }
 0x4ac   :  { %v638_v0 = vld [vmem:[#allocation1 + $0x7] ss:$0 sm:$0xff] }
 0x4ad   :  { %v308_v1 = vmul.f32 %v638_v0, %v279_v63  ;;  %v287_v2 = vmul.f32 %v638_v0, %v638_v0 }
 0x4af   :  { %309 = vadd.xlane.f32.xlu0 %v308_v1  ;;  %288 = vadd.xlane.f32.xlu1 %v287_v2 }
 0x53c   :  { %v289_v6 = vpop.xlane.xlu1 %288  ;;  %v310_v8 = vpop.xlane.xlu0 %309 }
 0x53d   :  { %v290_v7 = vsub.f32 %v286_v3, %v289_v6  ;;  %v311_v9 = vsub.f32 %v612_v5, %v310_v8  ;;  %v419_v3 = vld [vmem:[#allocation0 + $0xc] ss:$0 sm:$0xff] }
 0x53f   :  { %574 = vrsqrt.f32 %v290_v7 }
 0x549   :  { %v644_v10 = vpop.eup %574 }
 0x54a   :  { %v312_v11 = vmul.f32 %v644_v10, %v311_v9 }
 0x54c   :  { %v313_v12 = vsel %vm282_vm4, %v312_v11, 0.0  ;;  %vm490_vm4 = vcmask 130168  }
 0x54d   :  { %v314_v13 = vadd.f32 %v313_v12, %v279_v63 }
 0x54f   :  { %316 = vst [vmem:[#allocation1 + $0x8] sm:$0xff] %v314_v13 }
 0x556   :  { %v319_v14 = vld [vmem:[#allocation1 + $0x8] ss:$0 sm:$0xff] }
 0x557   :  { %v331_v15 = vmul.f32 %v319_v14, %v314_v13  ;;  %v322_v16 = vmul.f32 %v319_v14, %v319_v14 }
 0x559   :  { %332 = vadd.xlane.f32.xlu0 %v331_v15  ;;  %323 = vadd.xlane.f32.xlu1 %v322_v16 }
 0x5e6   :  { %v324_v18 = vpop.xlane.xlu1 %323  ;;  %v333_v20 = vpop.xlane.xlu0 %332 }
 0x5e7   :  { %v325_v19 = vsub.f32 %v321_v17, %v324_v18  ;;  %v334_v21 = vsub.f32 %v612_v5, %v333_v20  ;;  %v444_v18 = vld [vmem:[#allocation0 + $0xd] ss:$0 sm:$0xff] }
 0x5e9   :  { %576 = vrsqrt.f32 %v325_v19 }
 0x5f3   :  { %v577_v22 = vpop.eup %576 }
 0x5f4   :  { %v335_v23 = vmul.f32 %v577_v22, %v334_v21 }
 0x5f6   :  { %v336_v24 = vsel %vm317_vm6, %v335_v23, 0.0  ;;  %vm485_vm6 = vmand %vm465_vm3, %vm264_vm1 }
 0x5f7   :  { %v337_v25 = vadd.f32 %v336_v24, %v314_v13  ;;  %vm510_vm1 = vmand %vm490_vm4, %vm299_vm0 }
 0x5f9   :  { %339 = vst [vmem:[#allocation1 + $0x8] sm:$0xff] %v337_v25 }
 0x600   :  { %v342_v26 = vld [vmem:[#allocation1 + $0x9] ss:$0 sm:$0xff] }
 0x601   :  { %v354_v27 = vmul.f32 %v342_v26, %v337_v25  ;;  %v345_v28 = vmul.f32 %v342_v26, %v342_v26 }
 0x603   :  { %355 = vadd.xlane.f32.xlu0 %v354_v27  ;;  %346 = vadd.xlane.f32.xlu1 %v345_v28 }
 0x690   :  { %v347_v30 = vpop.xlane.xlu1 %346  ;;  %v356_v32 = vpop.xlane.xlu0 %355 }
 0x691   :  { %v348_v31 = vsub.f32 %v344_v29, %v347_v30  ;;  %v357_v33 = vsub.f32 %v612_v5, %v356_v32  ;;  %v294_v30 = vmul.f32 %v638_v0, %v635_v60 }
 0x693   :  { %578 = vrsqrt.f32 %v348_v31  ;;  %v469_v31 = vld [vmem:[#allocation0 + $0xe] ss:$0 sm:$0xff] }
 0x69d   :  { %v579_v34 = vpop.eup %578 }
 0x69e   :  { %v358_v35 = vmul.f32 %v579_v34, %v357_v33 }
 0x6a0   :  { %v361_v36 = vsel %vm360_vm9, %v358_v35, 0.0 }
 0x6a1   :  { %v362_v37 = vadd.f32 %v361_v36, %v337_v25 }
 0x6a3   :  { %364 = vst [vmem:[#allocation1 + $0x8] sm:$0xff] %v362_v37 }
 0x6aa   :  { %v367_v38 = vld [vmem:[#allocation1 + $0xa] ss:$0 sm:$0xff] }
 0x6ab   :  { %v379_v39 = vmul.f32 %v367_v38, %v362_v37  ;;  %v370_v40 = vmul.f32 %v367_v38, %v367_v38 }
 0x6ad   :  { %380 = vadd.xlane.f32.xlu0 %v379_v39  ;;  %371 = vadd.xlane.f32.xlu1 %v370_v40 }
 0x73a   :  { %v372_v42 = vpop.xlane.xlu1 %371  ;;  %v381_v44 = vpop.xlane.xlu0 %380 }
 0x73b   :  { %v373_v43 = vsub.f32 %v369_v41, %v372_v42  ;;  %v382_v45 = vsub.f32 %v612_v5, %v381_v44 }
 0x73d   :  { %580 = vrsqrt.f32 %v373_v43 }
 0x747   :  { %v581_v46 = vpop.eup %580 }
 0x748   :  { %v383_v47 = vmul.f32 %v581_v46, %v382_v45 }
 0x74a   :  { %v386_v48 = vsel %vm385_vm2, %v383_v47, 0.0 }
 0x74b   :  { %v387_v49 = vadd.f32 %v386_v48, %v362_v37 }
 0x74d   :  { %389 = vst [vmem:[#allocation1 + $0x8] sm:$0xff] %v387_v49 }
 0x754   :  { %v392_v50 = vld [vmem:[#allocation1 + $0xb] ss:$0 sm:$0xff] }
 0x755   :  { %v404_v51 = vmul.f32 %v392_v50, %v387_v49  ;;  %v395_v52 = vmul.f32 %v392_v50, %v392_v50 }
 0x757   :  { %405 = vadd.xlane.f32.xlu0 %v404_v51  ;;  %396 = vadd.xlane.f32.xlu1 %v395_v52 }
 0x7e4   :  { %v397_v54 = vpop.xlane.xlu1 %396  ;;  %v406_v56 = vpop.xlane.xlu0 %405 }
 0x7e5   :  { %v398_v55 = vsub.f32 %v394_v53, %v397_v54  ;;  %v407_v57 = vsub.f32 %v612_v5, %v406_v56 }
 0x7e7   :  { %582 = vrsqrt.f32 %v398_v55 }
 0x7f1   :  { %v583_v58 = vpop.eup %582 }
 0x7f2   :  { %v408_v59 = vmul.f32 %v583_v58, %v407_v57 }
 0x7f4   :  { %v411_v61 = vsel %vm410_vm5, %v408_v59, 0.0 }
 0x7f5   :  { %v412_v62 = vadd.f32 %v411_v61, %v387_v49 }
 0x7f7   :  { %414 = vst [vmem:[#allocation1 + $0x8] sm:$0xff] %v412_v62 }
 0x7fe   :  { %v417_v63 = vld [vmem:[#allocation1 + $0xc] ss:$0 sm:$0xff] }
 0x7ff   :  { %v429_v1 = vmul.f32 %v417_v63, %v412_v62  ;;  %v420_v2 = vmul.f32 %v417_v63, %v417_v63 }
 0x801   :  { %430 = vadd.xlane.f32.xlu0 %v429_v1  ;;  %421 = vadd.xlane.f32.xlu1 %v420_v2 }
 0x88e   :  { %v422_v6 = vpop.xlane.xlu1 %421  ;;  %v431_v8 = vpop.xlane.xlu0 %430 }
 0x88f   :  { %v423_v7 = vsub.f32 %v419_v3, %v422_v6  ;;  %v432_v9 = vsub.f32 %v612_v5, %v431_v8 }
 0x891   :  { %584 = vrsqrt.f32 %v423_v7 }
 0x89b   :  { %v585_v11 = vpop.eup %584 }
 0x89c   :  { %v433_v12 = vmul.f32 %v585_v11, %v432_v9 }
 0x89e   :  { %v436_v13 = vsel %vm435_vm8, %v433_v12, 0.0 }
 0x89f   :  { %v437_v14 = vadd.f32 %v436_v13, %v412_v62 }
 0x8a1   :  { %439 = vst [vmem:[#allocation1 + $0x8] sm:$0xff] %v437_v14 }
 0x8a8   :  { %v442_v15 = vld [vmem:[#allocation1 + $0xd] ss:$0 sm:$0xff] }
 0x8a9   :  { %v454_v16 = vmul.f32 %v442_v15, %v437_v14  ;;  %v445_v17 = vmul.f32 %v442_v15, %v442_v15 }
 0x8ab   :  { %455 = vadd.xlane.f32.xlu0 %v454_v16  ;;  %446 = vadd.xlane.f32.xlu1 %v445_v17 }
 0x938   :  { %v447_v19 = vpop.xlane.xlu1 %446  ;;  %v456_v21 = vpop.xlane.xlu0 %455 }
 0x939   :  { %v448_v20 = vsub.f32 %v444_v18, %v447_v19  ;;  %v457_v22 = vsub.f32 %v612_v5, %v456_v21 }
 0x93b   :  { %586 = vrsqrt.f32 %v448_v20 }
 0x945   :  { %v587_v23 = vpop.eup %586 }
 0x946   :  { %v458_v24 = vmul.f32 %v587_v23, %v457_v22 }
 0x948   :  { %v461_v25 = vsel %vm460_vm11, %v458_v24, 0.0 }
 0x949   :  { %v462_v26 = vadd.f32 %v461_v25, %v437_v14 }
 0x94b   :  { %464 = vst [vmem:[#allocation1 + $0x8] sm:$0xff] %v462_v26 }
 0x952   :  { %v467_v27 = vld [vmem:[#allocation1 + $0xe] ss:$0 sm:$0xff] }
 0x953   :  { %v479_v28 = vmul.f32 %v467_v27, %v462_v26  ;;  %v470_v29 = vmul.f32 %v467_v27, %v467_v27 }
 0x955   :  { %480 = vadd.xlane.f32.xlu0 %v479_v28  ;;  %471 = vadd.xlane.f32.xlu1 %v470_v29 }
 0x959   :  { %295 = vadd.xlane.f32.xlu0 %v294_v30 }
 0x9e2   :  { %v481_v32 = vpop.xlane.xlu0 %480  ;;  %v472_v33 = vpop.xlane.xlu1 %471 }
 0x9e3   :  { %v473_v34 = vsub.f32 %v469_v31, %v472_v33  ;;  %v482_v0 = vsub.f32 %v612_v5, %v481_v32 }
 0x9e5   :  { %588 = vrsqrt.f32 %v473_v34 }
 0x9e6   :  { %v296_v35 = vpop.xlane.xlu0 %295 }
 0x9e7   :  { %v297_v36 = vsub.f32 %v606_v4, %v296_v35 }
 0x9e9   :  { %v298_v37 = vmul.f32 %v644_v10, %v297_v36 }
 0x9eb   :  { %v301_v38 = vsel %vm300_vm14, %v298_v37, 0.0 }
 0x9ec   :  { %v302_v39 = vadd.f32 %v301_v38, %v635_v60  ;;  %v494_v60 = vld [vmem:[#allocation0 + $0xf] ss:$0 sm:$0xff] }
 0x9ee   :  { %303 = vst [vmem:[#allocation1] sm:$0xff] %v302_v39  ;;  %545 = vst [vmem:[%s677_s1] sm:$0xff] %v302_v39 }
 0x9ef   :  { %v589_v40 = vpop.eup %588 }
 0x9f0   :  { %v483_v4 = vmul.f32 %v589_v40, %v482_v0 }
 0x9f2   :  { %v486_v41 = vsel %vm485_vm6, %v483_v4, 0.0 }
 0x9f3   :  { %v487_v42 = vadd.f32 %v486_v41, %v462_v26 }
 0x9f5   :  { %489 = vst [vmem:[#allocation1 + $0x8] sm:$0xff] %v487_v42 }
 0x9fc   :  { %v492_v43 = vld [vmem:[#allocation1 + $0xf] ss:$0 sm:$0xff] }
 0x9fd   :  { %v495_v10 = vmul.f32 %v492_v43, %v492_v43  ;;  %v504_v44 = vmul.f32 %v492_v43, %v487_v42 }
 0x9ff   :  { %496 = vadd.xlane.f32.xlu1 %v495_v10 }
 0xa03   :  { %505 = vadd.xlane.f32.xlu1 %v504_v44 }
 0xa8c   :  { %v497_v45 = vpop.xlane.xlu1 %496 }
 0xa8d   :  { %v498_v46 = vsub.f32 %v494_v60, %v497_v45 }
 0xa8f   :  { %590 = vrsqrt.f32 %v498_v46 }
 0xa90   :  { %v506_v47 = vpop.xlane.xlu1 %505 }
 0xa91   :  { %v507_v48 = vsub.f32 %v612_v5, %v506_v47 }
 0xa99   :  { %v591_v49 = vpop.eup %590 }
 0xa9a   :  { %v508_v50 = vmul.f32 %v591_v49, %v507_v48 }
 0xa9c   :  { %v511_v51 = vsel %vm510_vm1, %v508_v50, 0.0 }
 0xa9d   :  { %v512_v52 = vadd.f32 %v511_v51, %v487_v42 }
 0xa9f   :  { %514 = vst [vmem:[#allocation1 + $0x8] sm:$0xff] %v512_v52  ;;  %547 = vst [vmem:[%s677_s1 + $0x8] sm:$0xff] %v512_v52 }

// kernel: custom-call.11
= control target key start
LH: loop header
LB: loop body
LE: loop exit
PB: predicated region body
PF: predicated region fallthrough
CT: control target
= control target key end

     0   :  { %v38_v0 = vlaneseq  ;;  %v332_v9 = vmov -1.0   ;;  %v333_v53 = vmov 0.0   ;;  %s401_s0 = inlined_call_operand.vmem [shape: f32[1,16,16], index: 0, kind: input, shape index: {}]   ;;  %s402_s1 = inlined_call_operand.vmem [shape: f32[1,16,16], index: 1, kind: output, shape index: {}]  }
   0x1   :  { %v31_v1 = vld [vmem:[%s401_s0] sm:$0xff]  ;;  %v33_v36 = vld [vmem:[%s401_s0 + $0x8] sm:$0xff] }
   0x2   :  { %v347_v2 = vand.u32 127, %v38_v0  ;;  %v42_v3 = vshrl.u32 %v38_v0, 7 }
   0x4   :  { %vm44_vm0 = vcmp.eq.s32.totalorder %v42_v3, %v347_v2  ;;  %vm40_vm1 = vcmp.lt.s32.totalorder %v347_v2, 16  ;;  %vm49_vm2 = vcmp.ge.s32.totalorder %v42_v3, %v347_v2  ;;  %vm79_vm4 = vcmp.eq.s32.totalorder %v347_v2, 0 }
   0x5   :  { %v46_v4 = vsel %vm44_vm0, %v31_v1, 0.0  ;;  %vm50_vm3 = vmand %vm49_vm2, %vm40_vm1  ;;  %vm76_vm5 = vcmp.eq.s32.totalorder %v347_v2, %v42_v3  ;;  %v80_v10 = vsel %vm79_vm4, 1.0, %v332_v9  ;;  %vm94_vm6 = vcmp.eq.s32.totalorder %v347_v2, 1 }
   0x6   :  { %47 = vadd.xlane.f32.xlu0 %v46_v4  ;;  %v51_v6 = vsel %vm50_vm3, %v31_v1, 0.0  ;;  %v81_v11 = vsel %vm76_vm5, %v80_v10, 0.0  ;;  %vm104_vm7 = vcmp.eq.s32.totalorder %v347_v2, 2  ;;  %vm114_vm8 = vcmp.eq.s32.totalorder %v347_v2, 3 }
   0x7   :  { %vm124_vm9 = vcmp.eq.s32.totalorder %v347_v2, 4  ;;  %v59_v31 = vadd.s32 8, %v42_v3  ;;  %vm134_vm11 = vcmp.eq.s32.totalorder %v347_v2, 5  ;;  %vm144_vm14 = vcmp.eq.s32.totalorder %v347_v2, 6 }
   0x8   :  { %vm154_vm0 = vcmp.eq.s32.totalorder %v347_v2, 7  ;;  %vm178_vm2 = vcmp.eq.s32.totalorder %v347_v2, 9  ;;  %vm192_vm3 = vcmp.eq.s32.totalorder %v347_v2, 10  ;;  %vm206_vm4 = vcmp.eq.s32.totalorder %v347_v2, 11 }
   0x9   :  { %vm60_vm10 = vcmp.eq.s32.totalorder %v59_v31, %v347_v2  ;;  %vm65_vm12 = vcmp.ge.s32.totalorder %v59_v31, %v347_v2  ;;  %vm87_vm15 = vcmp.eq.s32.totalorder %v347_v2, %v59_v31  ;;  %vm220_vm5 = vcmp.eq.s32.totalorder %v347_v2, 12 }
   0xa   :  { %v62_v37 = vsel %vm60_vm10, %v33_v36, 0.0  ;;  %vm66_vm13 = vmand %vm65_vm12, %vm40_vm1  ;;  %v88_v54 = vsel %vm87_vm15, -1.0, %v333_v53  ;;  %vm164_vm1 = vcmp.eq.s32.totalorder %v347_v2, 8 }
   0xb   :  { %v67_v44 = vsel %vm66_vm13, %v33_v36, 0.0 }
  0x93   :  { %v350_v5 = vpop.xlane.xlu0 %47 }
  0x94   :  { %328 = vrcp.f32 %v350_v5  ;;  %vm273_vm10 = vweird.f32 %v350_v5 }
  0x9e   :  { %v357_v7 = vpop.eup %328 }
  0x9f   :  { %v53_v8 = vmul.f32 %v357_v7, %v51_v6 }
  0xa1   :  { %54 = vst [vmem:[#allocation2] sm:$0xff] %v53_v8 }
  0xa8   :  { %v90_v12 = vld [vmem:[#allocation2 + $0x1] ss:$0 sm:$0xff]  ;;  %v100_v15 = vld [vmem:[#allocation2 + $0x2] ss:$0 sm:$0xff]  ;;  %v110_v20 = vld [vmem:[#allocation2 + $0x3] ss:$0 sm:$0xff] }
  0xa9   :  { %v91_v13 = vxor.u32 2147483648, %v90_v12  ;;  %v101_v17 = vxor.u32 2147483648, %v100_v15  ;;  %v111_v22 = vxor.u32 2147483648, %v110_v20  ;;  %v120_v25 = vld [vmem:[#allocation2 + $0x4] ss:$0 sm:$0xff] }
  0xaa   :  { %v121_v27 = vxor.u32 2147483648, %v120_v25  ;;  %v130_v30 = vld [vmem:[#allocation2 + $0x5] ss:$0 sm:$0xff]  ;;  %v140_v38 = vld [vmem:[#allocation2 + $0x6] ss:$0 sm:$0xff] }
  0xab   :  { %v95_v14 = vmul.f32 %v91_v13, %v81_v11  ;;  %v131_v33 = vxor.u32 2147483648, %v130_v30  ;;  %v141_v40 = vxor.u32 2147483648, %v140_v38  ;;  %v150_v47 = vld [vmem:[#allocation2 + $0x7] ss:$0 sm:$0xff] }
  0xac   :  { %v151_v50 = vxor.u32 2147483648, %v150_v47 }
  0xad   :  { %96 = vadd.xlane.f32.xlu0 %v95_v14 }
 0x13a   :  { %v97_v16 = vpop.xlane.xlu0 %96 }
 0x13b   :  { %v98_v18 = vsel %vm94_vm6, %v97_v16, %v81_v11  ;;  %vm234_vm6 = vcmp.eq.s32.totalorder %v347_v2, 13 }
 0x13c   :  { %v105_v19 = vmul.f32 %v101_v17, %v98_v18 }
 0x13e   :  { %106 = vadd.xlane.f32.xlu1 %v105_v19 }
 0x1cb   :  { %v107_v21 = vpop.xlane.xlu1 %106 }
 0x1cc   :  { %v108_v23 = vsel %vm104_vm7, %v107_v21, %v98_v18  ;;  %vm248_vm7 = vcmp.eq.s32.totalorder %v347_v2, 14 }
 0x1cd   :  { %v115_v24 = vmul.f32 %v111_v22, %v108_v23 }
 0x1cf   :  { %116 = vadd.xlane.f32.xlu1 %v115_v24 }
 0x25c   :  { %v117_v26 = vpop.xlane.xlu1 %116 }
 0x25d   :  { %v118_v28 = vsel %vm114_vm8, %v117_v26, %v108_v23  ;;  %vm262_vm8 = vcmp.eq.s32.totalorder %v347_v2, 15 }
 0x25e   :  { %v125_v29 = vmul.f32 %v121_v27, %v118_v28 }
 0x260   :  { %126 = vadd.xlane.f32.xlu0 %v125_v29 }
 0x2ed   :  { %v127_v32 = vpop.xlane.xlu0 %126 }
 0x2ee   :  { %v128_v34 = vsel %vm124_vm9, %v127_v32, %v118_v28 }
 0x2ef   :  { %v135_v35 = vmul.f32 %v131_v33, %v128_v34 }
 0x2f1   :  { %136 = vadd.xlane.f32.xlu1 %v135_v35 }
 0x2f5   :  { %63 = vadd.xlane.f32.xlu1 %v62_v37 }
 0x37e   :  { %v137_v39 = vpop.xlane.xlu1 %136 }
 0x37f   :  { %v138_v41 = vsel %vm134_vm11, %v137_v39, %v128_v34 }
 0x380   :  { %v145_v42 = vmul.f32 %v141_v40, %v138_v41 }
 0x382   :  { %146 = vadd.xlane.f32.xlu0 %v145_v42  ;;  %v371_v43 = vpop.xlane.xlu1 %63 }
 0x383   :  { %330 = vrcp.f32 %v371_v43  ;;  %vm278_vm9 = vweird.f32 %v371_v43 }
 0x38d   :  { %v377_v45 = vpop.eup %330 }
 0x38e   :  { %v69_v46 = vmul.f32 %v377_v45, %v67_v44 }
 0x390   :  { %70 = vst [vmem:[#allocation2 + $0x8] sm:$0xff] %v69_v46 }
 0x397   :  { %v160_v48 = vld [vmem:[#allocation2 + $0x8] ss:$0 sm:$0xff]  ;;  %v174_v59 = vld [vmem:[#allocation2 + $0x9] ss:$0 sm:$0xff]  ;;  %v188_v4 = vld [vmem:[#allocation2 + $0xa] ss:$0 sm:$0xff] }
 0x398   :  { %v161_v51 = vxor.u32 2147483648, %v160_v48  ;;  %v175_v62 = vxor.u32 2147483648, %v174_v59  ;;  %v189_v9 = vxor.u32 2147483648, %v188_v4  ;;  %v202_v14 = vld [vmem:[#allocation2 + $0xb] ss:$0 sm:$0xff] }
 0x399   :  { %v203_v17 = vxor.u32 2147483648, %v202_v14  ;;  %v216_v22 = vld [vmem:[#allocation2 + $0xc] ss:$0 sm:$0xff]  ;;  %v230_v30 = vld [vmem:[#allocation2 + $0xd] ss:$0 sm:$0xff] }
 0x39a   :  { %v169_v56 = vmul.f32 %v161_v51, %v88_v54  ;;  %v217_v25 = vxor.u32 2147483648, %v216_v22  ;;  %v231_v33 = vxor.u32 2147483648, %v230_v30  ;;  %v244_v38 = vld [vmem:[#allocation2 + $0xe] ss:$0 sm:$0xff]  ;;  %v258_v48 = vld [vmem:[#allocation2 + $0xf] ss:$0 sm:$0xff] }
 0x40f   :  { %v147_v49 = vpop.xlane.xlu0 %146 }
 0x410   :  { %v148_v52 = vsel %vm144_vm14, %v147_v49, %v138_v41  ;;  %v245_v41 = vxor.u32 2147483648, %v244_v38 }
 0x411   :  { %v155_v55 = vmul.f32 %v151_v50, %v148_v52 }
 0x413   :  { %156 = vadd.xlane.f32.xlu0 %v155_v55 }
 0x417   :  { %170 = vadd.xlane.f32.xlu0 %v169_v56 }
 0x4a0   :  { %v157_v57 = vpop.xlane.xlu0 %156 }
 0x4a1   :  { %v158_v58 = vsel %vm154_vm0, %v157_v57, %v148_v52 }
 0x4a2   :  { %v165_v60 = vmul.f32 %v161_v51, %v158_v58  ;;  %v259_v51 = vxor.u32 2147483648, %v258_v48 }
 0x4a4   :  { %v171_v61 = vpop.xlane.xlu0 %170  ;;  %166 = vadd.xlane.f32.xlu1 %v165_v60 }
 0x4a5   :  { %v172_v63 = vsel %vm164_vm1, %v171_v61, %v88_v54 }
 0x4a6   :  { %v183_v0 = vmul.f32 %v175_v62, %v172_v63 }
 0x4a8   :  { %184 = vadd.xlane.f32.xlu0 %v183_v0 }
 0x531   :  { %v167_v1 = vpop.xlane.xlu1 %166 }
 0x532   :  { %v168_v3 = vsel %vm164_vm1, %v167_v1, %v158_v58 }
 0x533   :  { %v179_v6 = vmul.f32 %v175_v62, %v168_v3 }
 0x535   :  { %v185_v8 = vpop.xlane.xlu0 %184  ;;  %180 = vadd.xlane.f32.xlu1 %v179_v6 }
 0x536   :  { %v186_v10 = vsel %vm178_vm2, %v185_v8, %v172_v63 }
 0x537   :  { %v197_v11 = vmul.f32 %v189_v9, %v186_v10 }
 0x539   :  { %198 = vadd.xlane.f32.xlu0 %v197_v11 }
 0x5c2   :  { %v181_v12 = vpop.xlane.xlu1 %180 }
 0x5c3   :  { %v182_v13 = vsel %vm178_vm2, %v181_v12, %v168_v3 }
 0x5c4   :  { %v193_v15 = vmul.f32 %v189_v9, %v182_v13 }
 0x5c6   :  { %v199_v16 = vpop.xlane.xlu0 %198  ;;  %194 = vadd.xlane.f32.xlu1 %v193_v15 }
 0x5c7   :  { %v200_v18 = vsel %vm192_vm3, %v199_v16, %v186_v10 }
 0x5c8   :  { %v211_v19 = vmul.f32 %v203_v17, %v200_v18 }
 0x5ca   :  { %212 = vadd.xlane.f32.xlu0 %v211_v19 }
 0x653   :  { %v195_v20 = vpop.xlane.xlu1 %194 }
 0x654   :  { %v196_v21 = vsel %vm192_vm3, %v195_v20, %v182_v13 }
 0x655   :  { %v207_v23 = vmul.f32 %v203_v17, %v196_v21 }
 0x657   :  { %v213_v24 = vpop.xlane.xlu0 %212  ;;  %208 = vadd.xlane.f32.xlu1 %v207_v23 }
 0x658   :  { %v214_v26 = vsel %vm206_vm4, %v213_v24, %v200_v18 }
 0x659   :  { %v225_v27 = vmul.f32 %v217_v25, %v214_v26 }
 0x65b   :  { %226 = vadd.xlane.f32.xlu0 %v225_v27 }
 0x6e4   :  { %v209_v28 = vpop.xlane.xlu1 %208 }
 0x6e5   :  { %v210_v29 = vsel %vm206_vm4, %v209_v28, %v196_v21 }
 0x6e6   :  { %v221_v31 = vmul.f32 %v217_v25, %v210_v29 }
 0x6e8   :  { %v227_v32 = vpop.xlane.xlu0 %226  ;;  %222 = vadd.xlane.f32.xlu1 %v221_v31 }
 0x6e9   :  { %v228_v34 = vsel %vm220_vm5, %v227_v32, %v214_v26 }
 0x6ea   :  { %v239_v35 = vmul.f32 %v231_v33, %v228_v34 }
 0x6ec   :  { %240 = vadd.xlane.f32.xlu0 %v239_v35 }
 0x775   :  { %v223_v36 = vpop.xlane.xlu1 %222 }
 0x776   :  { %v224_v37 = vsel %vm220_vm5, %v223_v36, %v210_v29 }
 0x777   :  { %v235_v39 = vmul.f32 %v231_v33, %v224_v37 }
 0x779   :  { %v241_v40 = vpop.xlane.xlu0 %240  ;;  %236 = vadd.xlane.f32.xlu1 %v235_v39 }
 0x77a   :  { %v242_v42 = vsel %vm234_vm6, %v241_v40, %v228_v34 }
 0x77b   :  { %v253_v44 = vmul.f32 %v245_v41, %v242_v42 }
 0x77d   :  { %254 = vadd.xlane.f32.xlu0 %v253_v44 }
 0x806   :  { %v237_v46 = vpop.xlane.xlu1 %236 }
 0x807   :  { %v238_v47 = vsel %vm234_vm6, %v237_v46, %v224_v37 }
 0x808   :  { %v249_v49 = vmul.f32 %v245_v41, %v238_v47 }
 0x80a   :  { %v255_v50 = vpop.xlane.xlu0 %254  ;;  %250 = vadd.xlane.f32.xlu1 %v249_v49 }
 0x80b   :  { %v256_v52 = vsel %vm248_vm7, %v255_v50, %v242_v42 }
 0x80c   :  { %v267_v53 = vmul.f32 %v259_v51, %v256_v52 }
 0x80e   :  { %268 = vadd.xlane.f32.xlu0 %v267_v53 }
 0x897   :  { %v251_v54 = vpop.xlane.xlu1 %250 }
 0x898   :  { %v252_v55 = vsel %vm248_vm7, %v251_v54, %v238_v47 }
 0x899   :  { %v263_v56 = vmul.f32 %v259_v51, %v252_v55 }
 0x89b   :  { %v269_v57 = vpop.xlane.xlu0 %268  ;;  %264 = vadd.xlane.f32.xlu1 %v263_v56 }
 0x89c   :  { %v270_v58 = vsel %vm262_vm8, %v269_v57, %v256_v52 }
 0x89d   :  { %v277_v59 = vmul.f32 %v377_v45, %v270_v58 }
 0x89f   :  { %v279_v60 = vsel %vm278_vm9, %v270_v58, %v277_v59 }
 0x8a0   :  { %314 = vst [vmem:[%s402_s1 + $0x8] sm:$0xff] %v279_v60 }
 0x928   :  { %v265_v61 = vpop.xlane.xlu1 %264 }
 0x929   :  { %v266_v62 = vsel %vm262_vm8, %v265_v61, %v252_v55 }
 0x92a   :  { %v272_v63 = vmul.f32 %v357_v7, %v266_v62 }
 0x92c   :  { %v274_v2 = vsel %vm273_vm10, %v266_v62, %v272_v63 }
 0x92d   :  { %312 = vst [vmem:[%s402_s1] sm:$0xff] %v274_v2 }

// kernel: ft_deep_kernel_gp_forward.1
= control target key start
LH: loop header
LB: loop body
LE: loop exit
PB: predicated region body
PF: predicated region fallthrough
CT: control target
= control target key end

     0   :  { %vm92_vm0 = vcmask 130048   ;;  %vm261_vm1 = vcmask 261120   ;;  %vm631_vm3 = vcmask 7168   ;;  %vm4063_vm4 = vmmov 0   ;;  %s5142_s2 = inlined_call_operand.vmem [shape: bf16[16,32], index: 2, kind: input, shape index: {}]   ;;  %s5143_s0 = inlined_call_operand.vmem [shape: f32[128,16], index: 0, kind: input, shape index: {}, may-alias: {0,1}]   ;;  %s5144_s4 = inlined_call_operand.vmem [shape: bf16[32,32], index: 4, kind: input, shape index: {}]   ;;  %s5145_s6 = inlined_call_operand.vmem [shape: bf16[32,16], index: 6, kind: input, shape index: {}]   ;;  %s5146_s3 = inlined_call_operand.vmem [shape: f32[1,32], index: 3, kind: input, shape index: {}]   ;;  %s5147_s1 = inlined_call_operand.vmem [shape: f32[128,16], index: 1, kind: input, shape index: {}, may-alias: {0,1}]   ;;  %s5148_s5 = inlined_call_operand.vmem [shape: f32[1,32], index: 5, kind: input, shape index: {}]   ;;  %s5149_s8 = inlined_call_operand.vmem [shape: f32[16,16], index: 8, kind: input, shape index: {}]   ;;  %s5150_s7 = inlined_call_operand.vmem [shape: f32[1,16], index: 7, kind: input, shape index: {}]   ;;  %s5151_s10 = inlined_call_operand.<no memory space> [shape: f32[1,1], index: 10, kind: input, shape index: {}]   ;;  %s5152_s12 = inlined_call_operand.vmem [shape: f32[16,16], index: 12, kind: input, shape index: {}]   ;;  %s5153_s9 = inlined_call_operand.vmem [shape: f32[1,16], index: 9, kind: input, shape index: {}]   ;;  %s5154_s11 = inlined_call_operand.vmem [shape: f32[16,1], index: 11, kind: input, shape index: {}]   ;;  %s5155_s13 = inlined_call_operand.vmem [shape: f32[128,1], index: 13, kind: output, shape index: {0}]   ;;  %s5156_s14 = inlined_call_operand.vmem [shape: f32[128,128], index: 14, kind: output, shape index: {1}]  }
   0x1   :  { %v3955_v0 = vld [vmem:[%s5142_s2] sm:$0xff]   ;;  %v54_v2 = vld [vmem:[%s5143_s0 + $0x8] sm:$0xff]  ;;  %v55_v3 = vld [vmem:[%s5143_s0 + $0x10] sm:$0xff] }
   0x2   :  { %v53_v1 = vld [vmem:[%s5143_s0] sm:$0xff]  ;;  %3421 = vmatprep.subr.bf16.mxu0 %v3955_v0  ;;  %v56_v5 = vld [vmem:[%s5143_s0 + $0x18] sm:$0xff]  ;;  %v58_v7 = vld [vmem:[%s5143_s0 + $0x28] sm:$0xff] }
   0x3   :  { %v69_v4 = vpack.c.bf16 %v54_v2, %v53_v1  ;;  %v57_v6 = vld [vmem:[%s5143_s0 + $0x20] sm:$0xff]  ;;  %3422 = vmatpush3.bf16.msra.mxu0 %v3955_v0  ;;  %v70_v8 = vpack.c.bf16 %v56_v5, %v55_v3  ;;  %v59_v10 = vld [vmem:[%s5143_s0 + $0x30] sm:$0xff]  ;;  %v60_v11 = vld [vmem:[%s5143_s0 + $0x38] sm:$0xff] }
   0x4   :  { %v71_v9 = vpack.c.bf16 %v58_v7, %v57_v6  ;;  %v61_v12 = vld [vmem:[%s5143_s0 + $0x40] sm:$0xff]  ;;  %v62_v13 = vld [vmem:[%s5143_s0 + $0x48] sm:$0xff]  ;;  %v72_v16 = vpack.c.bf16 %v60_v11, %v59_v10  ;;  %v63_v18 = vld [vmem:[%s5143_s0 + $0x50] sm:$0xff] }
   0x5   :  { %3423 = vmatprep.mubr.msk.bf16.mxu0 %vm92_vm0, %v69_v4  ;;  %v3956_v14 = vld [vmem:[%s5144_s4] sm:$0xff]   ;;  %v3957_v15 = vld [vmem:[%s5144_s4 + $0x8] sm:$0xff]   ;;  %v73_v17 = vpack.c.bf16 %v62_v13, %v61_v12  ;;  %v64_v19 = vld [vmem:[%s5143_s0 + $0x58] sm:$0xff] }
   0x6   :  { %3424 = vmatmul.mubr.msk.bf16.vlgmr.msra.gmra.mrb[0].mxu0 %vm92_vm0, %v70_v8  ;;  %3439 = vmatprep.subr.bf16.mxu0 %v3956_v14  ;;  %v65_v20 = vld [vmem:[%s5143_s0 + $0x60] sm:$0xff]  ;;  %v66_v21 = vld [vmem:[%s5143_s0 + $0x68] sm:$0xff]  ;;  %v74_v22 = vpack.c.bf16 %v64_v19, %v63_v18  ;;  %v67_v24 = vld [vmem:[%s5143_s0 + $0x70] sm:$0xff] }
   0x7   :  { %3427 = vmatprep.mubr.msk.bf16.mxu0 %vm92_vm0, %v71_v9  ;;  %3944 = vmatprep.subr.bf16.mxu1 %v3956_v14  ;;  %v75_v23 = vpack.c.bf16 %v66_v21, %v65_v20  ;;  %v68_v25 = vld [vmem:[%s5143_s0 + $0x78] sm:$0xff]  ;;  %v4209_v27 = vld [vmem:[%s5142_s2] sm:$0xff]   ;;  %v681_v19 = vld [vmem:[%s5147_s1 + $0x8] sm:$0xff] }
   0x8   :  { %3440 = vmatpush3.bf16.msra.mxu0 %v3956_v14  ;;  %3946 = vmatpush3.bf16.msra.mxu1 %v3956_v14  ;;  %v76_v26 = vpack.c.bf16 %v68_v25, %v67_v24  ;;  %v3959_v28 = vld [vmem:[%s5145_s6] sm:$0xff]   ;;  %v682_v25 = vld [vmem:[%s5147_s1 + $0x10] sm:$0xff]  ;;  %vm4379_vm2 = vmpackc.low %vm92_vm0, %vm92_vm0 }
   0x9   :  { %3441 = vmatprep.subr.bf16.mxu0 %v3957_v15  ;;  %3945 = vmatprep.subr.bf16.mxu1 %v3957_v15  ;;  %v4218_v29 = vld [vmem:[%s5146_s3] ss:$0 sm:$0xff] }
   0xa   :  { %v680_v18 = vld [vmem:[%s5147_s1] sm:$0xff] }
   0xb   :  { %v696_v24 = vpack.c.bf16 %v681_v19, %v680_v18 }
   0xc   :  { %3947 = vmatpush3.bf16.msra.mxu1 %v3957_v15  ;;  %3442 = vmatpush3.bf16.msra.mxu0 %v3957_v15 }
   0xd   :  { %3479 = vmatprep.subr.bf16.mxu1 %v4209_v27  ;;  %3459 = vmatprep.subr.bf16.mxu0 %v3959_v28 }
   0xe   :  { %3428 = vmatmul.mubr.msk.bf16.gmra.mrb[4].mxu0 %vm92_vm0, %v72_v16 }
   0xf   :  { %3431 = vmatprep.mubr.msk.bf16.mxu0 %vm92_vm0, %v73_v17 }
  0x16   :  { %3432 = vmatmul.mubr.msk.bf16.gmra.mrb[8].mxu0 %vm92_vm0, %v74_v22 }
  0x17   :  { %3435 = vmatprep.mubr.msk.bf16.mxu0 %vm92_vm0, %v75_v23 }
  0x1e   :  { %3436 = vmatmul.mubr.msk.bf16.gmra.mrb[12].mxu0 %vm92_vm0, %v76_v26  ;;  %v683_v26 = vld [vmem:[%s5147_s1 + $0x18] sm:$0xff] }
  0xd9   :  { %v3425_v30 = vpop.f32.mrb[0].mxu0 }
  0xda   :  { %v160_v31 = vadd.f32 %v3425_v30, %v4218_v29  ;;  %v151_v32 = vpop.f32.mrb[1].mxu0  ;;  %v697_v30 = vpack.c.bf16 %v683_v26, %v682_v25 }
  0xdb   :  { %v152_v33 = vadd.f32 %v4218_v29, %v151_v32  ;;  %v3426_v34 = vpop.f32.mrb[2].mxu0  ;;  %v686_v32 = vld [vmem:[%s5147_s1 + $0x30] sm:$0xff] }
  0xdc   :  { %v163_v35 = vadd.f32 %v3426_v34, %v4218_v29  ;;  %v154_v36 = vpop.f32.mrb[3].mxu0  ;;  %v216_v38 = vmax.f32 %v160_v31, 0.0  ;;  %v688_v34 = vld [vmem:[%s5147_s1 + $0x40] sm:$0xff] }
  0xdd   :  { %v155_v37 = vadd.f32 %v4218_v29, %v154_v36  ;;  %v214_v40 = vmax.f32 %v152_v33, 0.0  ;;  %v687_v33 = vld [vmem:[%s5147_s1 + $0x38] sm:$0xff] }
  0xde   :  { %v217_v39 = vmax.f32 %v163_v35, 0.0  ;;  %v689_v35 = vld [vmem:[%s5147_s1 + $0x48] sm:$0xff]  ;;  %v699_v36 = vpack.c.bf16 %v687_v33, %v686_v32 }
  0xdf   :  { %v215_v41 = vmax.f32 %v155_v37, 0.0  ;;  %v700_v37 = vpack.c.bf16 %v689_v35, %v688_v34 }
  0xe0   :  { %v231_v42 = vpack.c.bf16 %v217_v39, %v216_v38  ;;  %v690_v38 = vld [vmem:[%s5147_s1 + $0x50] sm:$0xff]  ;;  %v691_v39 = vld [vmem:[%s5147_s1 + $0x58] sm:$0xff] }
  0xe1   :  { %v230_v43 = vpack.c.bf16 %v215_v41, %v214_v40  ;;  %v3429_v44 = vpop.f32.mrb[4].mxu0  ;;  %v692_v40 = vld [vmem:[%s5147_s1 + $0x60] sm:$0xff]  ;;  %v693_v41 = vld [vmem:[%s5147_s1 + $0x68] sm:$0xff] }
  0xe2   :  { %v176_v45 = vadd.f32 %v3429_v44, %v4218_v29  ;;  %v167_v46 = vpop.f32.mrb[5].mxu0  ;;  %v694_v44 = vld [vmem:[%s5147_s1 + $0x70] sm:$0xff] }
  0xe3   :  { %v168_v47 = vadd.f32 %v4218_v29, %v167_v46  ;;  %v3430_v48 = vpop.f32.mrb[6].mxu0  ;;  %3443 = vmatprep.mubr.msk.bf16.mxu0 %vm261_vm1, %v230_v43  ;;  %v702_v43 = vpack.c.bf16 %v693_v41, %v692_v40 }
  0xe4   :  { %v179_v49 = vadd.f32 %v3430_v48, %v4218_v29  ;;  %v170_v50 = vpop.f32.mrb[7].mxu0  ;;  %3444 = vmatmul.mubr.msk.bf16.vlgmr.msra.gmra.mrb[16].mxu0 %vm261_vm1, %v231_v42  ;;  %v220_v52 = vmax.f32 %v176_v45, 0.0  ;;  %v701_v42 = vpack.c.bf16 %v691_v39, %v690_v38  ;;  %v695_v45 = vld [vmem:[%s5147_s1 + $0x78] sm:$0xff]  ;;  %v3961_v48 = vld [vmem:[%s5144_s4] sm:$0xff]  }
  0xe5   :  { %v171_v51 = vadd.f32 %v4218_v29, %v170_v50  ;;  %3460 = vmatpush3.bf16.msra.mxu0 %v3959_v28  ;;  %v218_v54 = vmax.f32 %v168_v47, 0.0  ;;  %v685_v28 = vld [vmem:[%s5147_s1 + $0x28] sm:$0xff]  ;;  %v703_v46 = vpack.c.bf16 %v695_v45, %v694_v44 }
  0xe6   :  { %v221_v53 = vmax.f32 %v179_v49, 0.0  ;;  %v3960_v47 = vld [vmem:[%s5145_s6 + $0x8] sm:$0xff]   ;;  %v4310_v49 = vld [vmem:[%s5148_s5] ss:$0 sm:$0xff] }
  0xe7   :  { %v219_v55 = vmax.f32 %v171_v51, 0.0  ;;  %3461 = vmatprep.subr.bf16.mxu0 %v3960_v47 }
  0xe8   :  { %v233_v56 = vpack.c.bf16 %v221_v53, %v220_v52 }
  0xe9   :  { %v232_v57 = vpack.c.bf16 %v219_v55, %v218_v54  ;;  %v3433_v58 = vpop.f32.mrb[8].mxu0  ;;  %3462 = vmatpush3.bf16.msra.mxu0 %v3960_v47 }
  0xea   :  { %v192_v59 = vadd.f32 %v3433_v58, %v4218_v29  ;;  %v183_v60 = vpop.f32.mrb[9].mxu0  ;;  %3497 = vmatprep.subr.bf16.mxu0 %v3961_v48 }
  0xeb   :  { %v184_v61 = vadd.f32 %v4218_v29, %v183_v60  ;;  %v3434_v62 = vpop.f32.mrb[10].mxu0  ;;  %3447 = vmatprep.mubr.msk.bf16.mxu0 %vm261_vm1, %v232_v57 }
  0xec   :  { %v195_v63 = vadd.f32 %v3434_v62, %v4218_v29  ;;  %v186_v0 = vpop.f32.mrb[11].mxu0  ;;  %3448 = vmatmul.mubr.msk.bf16.gmra.mrb[20].mxu0 %vm261_vm1, %v233_v56  ;;  %v224_v2 = vmax.f32 %v192_v59, 0.0 }
  0xed   :  { %v187_v1 = vadd.f32 %v4218_v29, %v186_v0  ;;  %v222_v4 = vmax.f32 %v184_v61, 0.0 }
  0xee   :  { %v225_v3 = vmax.f32 %v195_v63, 0.0 }
  0xef   :  { %v223_v5 = vmax.f32 %v187_v1, 0.0 }
  0xf0   :  { %v235_v6 = vpack.c.bf16 %v225_v3, %v224_v2  ;;  %v3962_v3 = vld [vmem:[%s5144_s4 + $0x8] sm:$0xff]  }
  0xf1   :  { %v3437_v7 = vpop.f32.mrb[12].mxu0  ;;  %v234_v8 = vpack.c.bf16 %v223_v5, %v222_v4 }
  0xf2   :  { %v208_v9 = vadd.f32 %v3437_v7, %v4218_v29  ;;  %v199_v10 = vpop.f32.mrb[13].mxu0 }
  0xf3   :  { %v200_v11 = vadd.f32 %v4218_v29, %v199_v10  ;;  %v3438_v12 = vpop.f32.mrb[14].mxu0  ;;  %3451 = vmatprep.mubr.msk.bf16.mxu1 %vm261_vm1, %v234_v8 }
  0xf4   :  { %v211_v13 = vadd.f32 %v3438_v12, %v4218_v29  ;;  %v202_v14 = vpop.f32.mrb[15].mxu0  ;;  %3452 = vmatmul.mubr.msk.bf16.vlgmr.msra.gmra.mrb[0].mxu1 %vm261_vm1, %v235_v6  ;;  %v228_v16 = vmax.f32 %v208_v9, 0.0 }
  0xf5   :  { %v203_v15 = vadd.f32 %v4218_v29, %v202_v14  ;;  %3480 = vmatpush3.bf16.msra.mxu1 %v4209_v27  ;;  %v226_v20 = vmax.f32 %v200_v11, 0.0  ;;  %v684_v27 = vld [vmem:[%s5147_s1 + $0x20] sm:$0xff] }
  0xf6   :  { %v229_v17 = vmax.f32 %v211_v13, 0.0  ;;  %v698_v31 = vpack.c.bf16 %v685_v28, %v684_v27 }
  0xf7   :  { %v227_v21 = vmax.f32 %v203_v15, 0.0 }
  0xf8   :  { %v237_v22 = vpack.c.bf16 %v229_v17, %v228_v16 }
  0xf9   :  { %v236_v23 = vpack.c.bf16 %v227_v21, %v226_v20 }
  0xfb   :  { %3455 = vmatprep.mubr.msk.bf16.mxu1 %vm261_vm1, %v236_v23 }
  0xfc   :  { %3456 = vmatmul.mubr.msk.bf16.gmra.mrb[4].mxu1 %vm261_vm1, %v237_v22 }
  0xfd   :  { %3481 = vmatprep.mubr.msk.bf16.mxu1 %vm92_vm0, %v696_v24 }
 0x104   :  { %3482 = vmatmul.mubr.msk.bf16.vlgmr.msra.gmra.mrb[8].mxu1 %vm92_vm0, %v697_v30 }
 0x105   :  { %3485 = vmatprep.mubr.msk.bf16.mxu1 %vm92_vm0, %v698_v31 }
 0x10c   :  { %3486 = vmatmul.mubr.msk.bf16.gmra.mrb[12].mxu1 %vm92_vm0, %v699_v36 }
 0x10d   :  { %3489 = vmatprep.mubr.msk.bf16.mxu1 %vm92_vm0, %v700_v37 }
 0x114   :  { %3490 = vmatmul.mubr.msk.bf16.gmra.mrb[16].mxu1 %vm92_vm0, %v701_v42 }
 0x115   :  { %3493 = vmatprep.mubr.msk.bf16.mxu1 %vm92_vm0, %v702_v43 }
 0x11c   :  { %3494 = vmatmul.mubr.msk.bf16.gmra.mrb[20].mxu1 %vm92_vm0, %v703_v46 }
 0x1b7   :  { %v3445_v50 = vpop.f32.mrb[16].mxu0 }
 0x1b8   :  { %v329_v51 = vadd.f32 %v3445_v50, %v4310_v49  ;;  %v320_v52 = vpop.f32.mrb[17].mxu0 }
 0x1b9   :  { %v321_v53 = vadd.f32 %v4310_v49, %v320_v52  ;;  %v3446_v54 = vpop.f32.mrb[18].mxu0 }
 0x1ba   :  { %v332_v55 = vadd.f32 %v3446_v54, %v4310_v49  ;;  %v323_v56 = vpop.f32.mrb[19].mxu0  ;;  %v385_v58 = vmax.f32 %v329_v51, 0.0 }
 0x1bb   :  { %v324_v57 = vadd.f32 %v4310_v49, %v323_v56  ;;  %v383_v60 = vmax.f32 %v321_v53, 0.0 }
 0x1bc   :  { %v386_v59 = vmax.f32 %v332_v55, 0.0 }
 0x1bd   :  { %v384_v61 = vmax.f32 %v324_v57, 0.0 }
 0x1be   :  { %v400_v62 = vpack.c.bf16 %v386_v59, %v385_v58 }
 0x1bf   :  { %v399_v63 = vpack.c.bf16 %v384_v61, %v383_v60  ;;  %v3449_v0 = vpop.f32.mrb[20].mxu0 }
 0x1c0   :  { %v345_v1 = vadd.f32 %v3449_v0, %v4310_v49  ;;  %v336_v2 = vpop.f32.mrb[21].mxu0 }
 0x1c1   :  { %v337_v4 = vadd.f32 %v4310_v49, %v336_v2  ;;  %v3450_v5 = vpop.f32.mrb[22].mxu0  ;;  %3463 = vmatprep.mubr.msk.bf16.mxu0 %vm261_vm1, %v399_v63 }
 0x1c2   :  { %v348_v6 = vadd.f32 %v3450_v5, %v4310_v49  ;;  %v339_v7 = vpop.f32.mrb[23].mxu0  ;;  %3464 = vmatmul.mubr.msk.bf16.vlgmr.msra.gmra.mrb[24].mxu0 %vm261_vm1, %v400_v62  ;;  %v389_v9 = vmax.f32 %v345_v1, 0.0 }
 0x1c3   :  { %v340_v8 = vadd.f32 %v4310_v49, %v339_v7  ;;  %3498 = vmatpush3.bf16.msra.mxu0 %v3961_v48  ;;  %v387_v11 = vmax.f32 %v337_v4, 0.0 }
 0x1c4   :  { %v390_v10 = vmax.f32 %v348_v6, 0.0  ;;  %3499 = vmatprep.subr.bf16.mxu0 %v3962_v3 }
 0x1c5   :  { %v388_v12 = vmax.f32 %v340_v8, 0.0 }
 0x1c6   :  { %v402_v13 = vpack.c.bf16 %v390_v10, %v389_v9 }
 0x1c7   :  { %v401_v14 = vpack.c.bf16 %v388_v12, %v387_v11  ;;  %v3453_v15 = vpop.f32.mrb[0].mxu1  ;;  %3500 = vmatpush3.bf16.msra.mxu0 %v3962_v3 }
 0x1c8   :  { %v361_v16 = vadd.f32 %v3453_v15, %v4310_v49  ;;  %v352_v17 = vpop.f32.mrb[1].mxu1 }
 0x1c9   :  { %v353_v18 = vadd.f32 %v4310_v49, %v352_v17  ;;  %v3454_v19 = vpop.f32.mrb[2].mxu1  ;;  %3467 = vmatprep.mubr.msk.bf16.mxu0 %vm261_vm1, %v401_v14 }
 0x1ca   :  { %v364_v20 = vadd.f32 %v3454_v19, %v4310_v49  ;;  %v355_v21 = vpop.f32.mrb[3].mxu1  ;;  %3468 = vmatmul.mubr.msk.bf16.gmra.mrb[28].mxu0 %vm261_vm1, %v402_v13  ;;  %v393_v23 = vmax.f32 %v361_v16, 0.0 }
 0x1cb   :  { %v356_v22 = vadd.f32 %v4310_v49, %v355_v21  ;;  %v391_v25 = vmax.f32 %v353_v18, 0.0 }
 0x1cc   :  { %v394_v24 = vmax.f32 %v364_v20, 0.0 }
 0x1cd   :  { %v392_v26 = vmax.f32 %v356_v22, 0.0 }
 0x1ce   :  { %v404_v27 = vpack.c.bf16 %v394_v24, %v393_v23 }
 0x1cf   :  { %v403_v28 = vpack.c.bf16 %v392_v26, %v391_v25  ;;  %v3457_v30 = vpop.f32.mrb[4].mxu1 }
 0x1d0   :  { %v377_v31 = vadd.f32 %v3457_v30, %v4310_v49  ;;  %v368_v32 = vpop.f32.mrb[5].mxu1 }
 0x1d1   :  { %v369_v33 = vadd.f32 %v4310_v49, %v368_v32  ;;  %v3458_v34 = vpop.f32.mrb[6].mxu1  ;;  %3471 = vmatprep.mubr.msk.bf16.mxu0 %vm261_vm1, %v403_v28 }
 0x1d2   :  { %v380_v35 = vadd.f32 %v3458_v34, %v4310_v49  ;;  %v371_v36 = vpop.f32.mrb[7].mxu1  ;;  %3472 = vmatmul.mubr.msk.bf16.gmra.mrb[32].mxu0 %vm261_vm1, %v404_v27  ;;  %v397_v38 = vmax.f32 %v377_v31, 0.0 }
 0x1d3   :  { %v372_v37 = vadd.f32 %v4310_v49, %v371_v36  ;;  %v395_v40 = vmax.f32 %v369_v33, 0.0 }
 0x1d4   :  { %v398_v39 = vmax.f32 %v380_v35, 0.0 }
 0x1d5   :  { %v396_v41 = vmax.f32 %v372_v37, 0.0 }
 0x1d6   :  { %v406_v42 = vpack.c.bf16 %v398_v39, %v397_v38  ;;  %v3963_v38 = vld [vmem:[%s5145_s6] sm:$0xff]   ;;  %v3964_v39 = vld [vmem:[%s5145_s6 + $0x8] sm:$0xff]  }
 0x1d7   :  { %v405_v43 = vpack.c.bf16 %v396_v41, %v395_v40  ;;  %v3483_v44 = vpop.f32.mrb[8].mxu1  ;;  %3517 = vmatprep.subr.bf16.mxu1 %v3963_v38  ;;  %v1365_v40 = vld [vmem:[%s5149_s8 + $0x8] sm:$0xff] }
 0x1d8   :  { %v787_v45 = vadd.f32 %v3483_v44, %v4218_v29  ;;  %v778_v46 = vpop.f32.mrb[9].mxu1  ;;  %3518 = vmatpush3.bf16.msra.mxu1 %v3963_v38 }
 0x1d9   :  { %v779_v47 = vadd.f32 %v4218_v29, %v778_v46  ;;  %3475 = vmatprep.mubr.msk.bf16.mxu0 %vm261_vm1, %v405_v43  ;;  %v3484_v48 = vpop.f32.mrb[10].mxu1  ;;  %3519 = vmatprep.subr.bf16.mxu1 %v3964_v39  ;;  %v4389_v43 = vld [vmem:[%s5150_s7] ss:$0 sm:$0xff] }
 0x1da   :  { %v790_v50 = vadd.f32 %v3484_v48, %v4218_v29  ;;  %3476 = vmatmul.mubr.msk.bf16.gmra.mrb[36].mxu0 %vm261_vm1, %v406_v42  ;;  %v781_v51 = vpop.f32.mrb[11].mxu1  ;;  %v843_v53 = vmax.f32 %v787_v45, 0.0 }
 0x1db   :  { %v782_v52 = vadd.f32 %v4218_v29, %v781_v51  ;;  %v841_v55 = vmax.f32 %v779_v47, 0.0 }
 0x1dc   :  { %v844_v54 = vmax.f32 %v790_v50, 0.0  ;;  %3520 = vmatpush3.bf16.msra.mxu1 %v3964_v39 }
 0x1dd   :  { %v842_v56 = vmax.f32 %v782_v52, 0.0 }
 0x1de   :  { %v858_v57 = vpack.c.bf16 %v844_v54, %v843_v53 }
 0x1df   :  { %v857_v58 = vpack.c.bf16 %v842_v56, %v841_v55  ;;  %v3487_v59 = vpop.f32.mrb[12].mxu1 }
 0x1e0   :  { %v803_v60 = vadd.f32 %v3487_v59, %v4218_v29  ;;  %v794_v61 = vpop.f32.mrb[13].mxu1 }
 0x1e1   :  { %v795_v62 = vadd.f32 %v4218_v29, %v794_v61  ;;  %v3488_v63 = vpop.f32.mrb[14].mxu1  ;;  %3501 = vmatprep.mubr.msk.bf16.mxu0 %vm261_vm1, %v857_v58 }
 0x1e2   :  { %v847_v0 = vmax.f32 %v803_v60, 0.0  ;;  %v806_v1 = vadd.f32 %v3488_v63, %v4218_v29  ;;  %v797_v2 = vpop.f32.mrb[15].mxu1  ;;  %3502 = vmatmul.mubr.msk.bf16.vlgmr.msra.gmra.mrb[40].mxu0 %vm261_vm1, %v858_v57 }
 0x1e3   :  { %v845_v3 = vmax.f32 %v795_v62, 0.0  ;;  %v798_v4 = vadd.f32 %v4218_v29, %v797_v2 }
 0x1e4   :  { %v848_v5 = vmax.f32 %v806_v1, 0.0 }
 0x1e5   :  { %v846_v6 = vmax.f32 %v798_v4, 0.0 }
 0x1e6   :  { %v860_v7 = vpack.c.bf16 %v848_v5, %v847_v0 }
 0x1e7   :  { %v859_v8 = vpack.c.bf16 %v846_v6, %v845_v3  ;;  %v3491_v9 = vpop.f32.mrb[16].mxu1 }
 0x1e8   :  { %v819_v10 = vadd.f32 %v3491_v9, %v4218_v29  ;;  %v810_v11 = vpop.f32.mrb[17].mxu1 }
 0x1e9   :  { %v811_v12 = vadd.f32 %v4218_v29, %v810_v11  ;;  %v3492_v13 = vpop.f32.mrb[18].mxu1  ;;  %3505 = vmatprep.mubr.msk.bf16.mxu0 %vm261_vm1, %v859_v8 }
 0x1ea   :  { %v851_v14 = vmax.f32 %v819_v10, 0.0  ;;  %v822_v15 = vadd.f32 %v3492_v13, %v4218_v29  ;;  %v813_v16 = vpop.f32.mrb[19].mxu1  ;;  %3506 = vmatmul.mubr.msk.bf16.gmra.mrb[44].mxu0 %vm261_vm1, %v860_v7 }
 0x1eb   :  { %v849_v17 = vmax.f32 %v811_v12, 0.0  ;;  %v814_v18 = vadd.f32 %v4218_v29, %v813_v16 }
 0x1ec   :  { %v852_v19 = vmax.f32 %v822_v15, 0.0 }
 0x1ed   :  { %v850_v20 = vmax.f32 %v814_v18, 0.0 }
 0x1ee   :  { %v862_v21 = vpack.c.bf16 %v852_v19, %v851_v14 }
 0x1ef   :  { %v861_v22 = vpack.c.bf16 %v850_v20, %v849_v17  ;;  %v3495_v23 = vpop.f32.mrb[20].mxu1 }
 0x1f0   :  { %v835_v24 = vadd.f32 %v3495_v23, %v4218_v29  ;;  %v826_v25 = vpop.f32.mrb[21].mxu1 }
 0x1f1   :  { %v827_v26 = vadd.f32 %v4218_v29, %v826_v25  ;;  %v3496_v27 = vpop.f32.mrb[22].mxu1  ;;  %3509 = vmatprep.mubr.msk.bf16.mxu0 %vm261_vm1, %v861_v22 }
 0x1f2   :  { %v855_v28 = vmax.f32 %v835_v24, 0.0  ;;  %v838_v30 = vadd.f32 %v3496_v27, %v4218_v29  ;;  %v829_v31 = vpop.f32.mrb[23].mxu1  ;;  %3510 = vmatmul.mubr.msk.bf16.gmra.mrb[48].mxu0 %vm261_vm1, %v862_v21 }
 0x1f3   :  { %v853_v32 = vmax.f32 %v827_v26, 0.0  ;;  %v830_v33 = vadd.f32 %v4218_v29, %v829_v31  ;;  %v1364_v29 = vld [vmem:[%s5149_s8] sm:$0xff] }
 0x1f4   :  { %v856_v34 = vmax.f32 %v838_v30, 0.0  ;;  %v4375_v41 = vpack.c.bf16 %v1365_v40, %v1364_v29 }
 0x1f5   :  { %v854_v35 = vmax.f32 %v830_v33, 0.0 }
 0x1f6   :  { %v864_v36 = vpack.c.bf16 %v856_v34, %v855_v28  ;;  %3830 = vmatprep.subr.msk.bf16.mxu1 %vm4379_vm2, %v4375_v41  ;;  %v4061_v34 = vmov 0  }
 0x1f7   :  { %v863_v37 = vpack.c.bf16 %v854_v35, %v853_v32  ;;  %3954 = vset.pattern.permute.xlu1 %v4061_v34  ;;  %3953 = vset.pattern.permute.xlu0 %v4061_v34 }
 0x1f9   :  { %3513 = vmatprep.mubr.msk.bf16.mxu0 %vm261_vm1, %v863_v37 }
 0x1fa   :  { %3514 = vmatmul.mubr.msk.bf16.gmra.mrb[52].mxu0 %vm261_vm1, %v864_v36 }
 0x295   :  { %v3465_v44 = vpop.f32.mrb[24].mxu0 }
 0x296   :  { %v497_v45 = vadd.f32 %v3465_v44, %v4389_v43  ;;  %v488_v46 = vpop.f32.mrb[25].mxu0 }
 0x297   :  { %v489_v47 = vadd.f32 %v4389_v43, %v488_v46  ;;  %v3466_v48 = vpop.f32.mrb[26].mxu0 }
 0x298   :  { %553 = vst.msk [vmem:[#allocation2 + $0x10] sm:$0xff] %vm92_vm0, %v497_v45  ;;  %v500_v50 = vadd.f32 %v3466_v48, %v4389_v43  ;;  %v491_v51 = vpop.f32.mrb[27].mxu0  ;;  %v569_v52 = vmul.f32 %v497_v45, %v497_v45 }
 0x299   :  { %551 = vst.msk [vmem:[#allocation2] sm:$0xff] %vm92_vm0, %v489_v47  ;;  %v492_v53 = vadd.f32 %v4389_v43, %v491_v51  ;;  %v567_v54 = vmul.f32 %v489_v47, %v489_v47 }
 0x29a   :  { %554 = vst.msk [vmem:[#allocation2 + $0x18] sm:$0xff] %vm92_vm0, %v500_v50  ;;  %v589_v55 = vsel %vm92_vm0, %v569_v52, 0.0  ;;  %v570_v56 = vmul.f32 %v500_v50, %v500_v50 }
 0x29b   :  { %552 = vst.msk [vmem:[#allocation2 + $0x8] sm:$0xff] %vm92_vm0, %v492_v53  ;;  %590 = vadd.xlane.f32.xlu1 %v589_v55  ;;  %v583_v57 = vsel %vm92_vm0, %v567_v54, 0.0  ;;  %v568_v58 = vmul.f32 %v492_v53, %v492_v53 }
 0x29c   :  { %584 = vadd.xlane.f32.xlu0 %v583_v57  ;;  %v592_v62 = vsel %vm92_vm0, %v570_v56, 0.0 }
 0x29d   :  { %v3469_v59 = vpop.f32.mrb[28].mxu0  ;;  %v586_v1 = vsel %vm92_vm0, %v568_v58, 0.0 }
 0x29e   :  { %v513_v60 = vadd.f32 %v3469_v59, %v4389_v43  ;;  %v504_v61 = vpop.f32.mrb[29].mxu0 }
 0x29f   :  { %v505_v63 = vadd.f32 %v4389_v43, %v504_v61  ;;  %593 = vadd.xlane.f32.xlu1 %v592_v62  ;;  %v3470_v0 = vpop.f32.mrb[30].mxu0 }
 0x2a0   :  { %557 = vst.msk [vmem:[#allocation2 + $0x30] sm:$0xff] %vm92_vm0, %v513_v60  ;;  %v516_v2 = vadd.f32 %v3470_v0, %v4389_v43  ;;  %v507_v3 = vpop.f32.mrb[31].mxu0  ;;  %587 = vadd.xlane.f32.xlu0 %v586_v1  ;;  %v573_v8 = vmul.f32 %v513_v60, %v513_v60 }
 0x2a1   :  { %555 = vst.msk [vmem:[#allocation2 + $0x20] sm:$0xff] %vm92_vm0, %v505_v63  ;;  %v508_v4 = vadd.f32 %v4389_v43, %v507_v3  ;;  %v571_v5 = vmul.f32 %v505_v63, %v505_v63 }
 0x2a2   :  { %558 = vst.msk [vmem:[#allocation2 + $0x38] sm:$0xff] %vm92_vm0, %v516_v2  ;;  %v574_v11 = vmul.f32 %v516_v2, %v516_v2  ;;  %v601_v16 = vsel %vm92_vm0, %v573_v8, 0.0 }
 0x2a3   :  { %556 = vst.msk [vmem:[#allocation2 + $0x28] sm:$0xff] %vm92_vm0, %v508_v4  ;;  %v595_v6 = vsel %vm92_vm0, %v571_v5, 0.0  ;;  %v572_v7 = vmul.f32 %v508_v4, %v508_v4 }
 0x2a4   :  { %596 = vadd.xlane.f32.xlu0 %v595_v6  ;;  %v604_v20 = vsel %vm92_vm0, %v574_v11, 0.0 }
 0x2a5   :  { %v3473_v9 = vpop.f32.mrb[32].mxu0  ;;  %v598_v10 = vsel %vm92_vm0, %v572_v7, 0.0 }
 0x2a6   :  { %v529_v12 = vadd.f32 %v3473_v9, %v4389_v43  ;;  %v520_v13 = vpop.f32.mrb[33].mxu0  ;;  %599 = vadd.xlane.f32.xlu1 %v598_v10 }
 0x2a7   :  { %v521_v14 = vadd.f32 %v4389_v43, %v520_v13  ;;  %v3474_v15 = vpop.f32.mrb[34].mxu0 }
 0x2a8   :  { %561 = vst.msk [vmem:[#allocation2 + $0x50] sm:$0xff] %vm92_vm0, %v529_v12  ;;  %v532_v17 = vadd.f32 %v3474_v15, %v4389_v43  ;;  %v523_v18 = vpop.f32.mrb[35].mxu0  ;;  %602 = vadd.xlane.f32.xlu0 %v601_v16  ;;  %v577_v24 = vmul.f32 %v529_v12, %v529_v12 }
 0x2a9   :  { %559 = vst.msk [vmem:[#allocation2 + $0x40] sm:$0xff] %vm92_vm0, %v521_v14  ;;  %v524_v19 = vadd.f32 %v4389_v43, %v523_v18  ;;  %v575_v21 = vmul.f32 %v521_v14, %v521_v14 }
 0x2aa   :  { %562 = vst.msk [vmem:[#allocation2 + $0x58] sm:$0xff] %vm92_vm0, %v532_v17  ;;  %605 = vadd.xlane.f32.xlu1 %v604_v20  ;;  %v578_v27 = vmul.f32 %v532_v17, %v532_v17  ;;  %v613_v33 = vsel %vm92_vm0, %v577_v24, 0.0 }
 0x2ab   :  { %560 = vst.msk [vmem:[#allocation2 + $0x48] sm:$0xff] %vm92_vm0, %v524_v19  ;;  %v607_v22 = vsel %vm92_vm0, %v575_v21, 0.0  ;;  %v576_v23 = vmul.f32 %v524_v19, %v524_v19 }
 0x2ac   :  { %608 = vadd.xlane.f32.xlu0 %v607_v22  ;;  %v616_v38 = vsel %vm92_vm0, %v578_v27, 0.0 }
 0x2ad   :  { %v3477_v25 = vpop.f32.mrb[36].mxu0  ;;  %v610_v26 = vsel %vm92_vm0, %v576_v23, 0.0 }
 0x2ae   :  { %v545_v28 = vadd.f32 %v3477_v25, %v4389_v43  ;;  %v536_v30 = vpop.f32.mrb[37].mxu0  ;;  %611 = vadd.xlane.f32.xlu1 %v610_v26 }
 0x2af   :  { %v537_v31 = vadd.f32 %v4389_v43, %v536_v30  ;;  %v3478_v32 = vpop.f32.mrb[38].mxu0 }
 0x2b0   :  { %565 = vst.msk [vmem:[#allocation2 + $0x70] sm:$0xff] %vm92_vm0, %v545_v28  ;;  %v548_v35 = vadd.f32 %v3478_v32, %v4389_v43  ;;  %v539_v36 = vpop.f32.mrb[39].mxu0  ;;  %614 = vadd.xlane.f32.xlu0 %v613_v33  ;;  %v581_v44 = vmul.f32 %v545_v28, %v545_v28 }
 0x2b1   :  { %563 = vst.msk [vmem:[#allocation2 + $0x60] sm:$0xff] %vm92_vm0, %v537_v31  ;;  %v540_v37 = vadd.f32 %v4389_v43, %v539_v36  ;;  %v579_v39 = vmul.f32 %v537_v31, %v537_v31 }
 0x2b2   :  { %566 = vst.msk [vmem:[#allocation2 + $0x78] sm:$0xff] %vm92_vm0, %v548_v35  ;;  %617 = vadd.xlane.f32.xlu1 %v616_v38  ;;  %v582_v47 = vmul.f32 %v548_v35, %v548_v35  ;;  %v625_v53 = vsel %vm92_vm0, %v581_v44, 0.0 }
 0x2b3   :  { %564 = vst.msk [vmem:[#allocation2 + $0x68] sm:$0xff] %vm92_vm0, %v540_v37  ;;  %v619_v29 = vsel %vm92_vm0, %v579_v39, 0.0  ;;  %v580_v40 = vmul.f32 %v540_v37, %v540_v37 }
 0x2b4   :  { %620 = vadd.xlane.f32.xlu0 %v619_v29  ;;  %v628_v57 = vsel %vm92_vm0, %v582_v47, 0.0  ;;  %v4477_v47 = vld [vmem:[#allocation2 + $0x10] sm:$0xff] }
 0x2b5   :  { %v3503_v45 = vpop.f32.mrb[40].mxu0  ;;  %v622_v46 = vsel %vm92_vm0, %v580_v40, 0.0 }
 0x2b6   :  { %v956_v48 = vadd.f32 %v3503_v45, %v4310_v49  ;;  %v947_v50 = vpop.f32.mrb[41].mxu0  ;;  %623 = vadd.xlane.f32.xlu1 %v622_v46  ;;  %v4469_v45 = vld [vmem:[#allocation2] sm:$0xff]  ;;  %v4473_v46 = vld [vmem:[#allocation2 + $0x8] sm:$0xff] }
 0x2b7   :  { %v948_v51 = vadd.f32 %v4310_v49, %v947_v50  ;;  %v3504_v52 = vpop.f32.mrb[42].mxu0  ;;  %v4492_v50 = vld [vmem:[#allocation2 + $0x28] sm:$0xff] }
 0x2b8   :  { %v959_v54 = vadd.f32 %v3504_v52, %v4310_v49  ;;  %v950_v55 = vpop.f32.mrb[43].mxu0  ;;  %626 = vadd.xlane.f32.xlu0 %v625_v53  ;;  %v1012_v58 = vmax.f32 %v956_v48, 0.0  ;;  %v4488_v48 = vld [vmem:[#allocation2 + $0x20] sm:$0xff]  ;;  %v4508_v53 = vld [vmem:[#allocation2 + $0x48] sm:$0xff] }
 0x2b9   :  { %v951_v56 = vadd.f32 %v4310_v49, %v950_v55  ;;  %v1010_v60 = vmax.f32 %v948_v51, 0.0  ;;  %v4496_v51 = vld [vmem:[#allocation2 + $0x30] sm:$0xff]  ;;  %v4504_v52 = vld [vmem:[#allocation2 + $0x40] sm:$0xff]  ;;  %v4516_v55 = vld [vmem:[#allocation2 + $0x58] sm:$0xff] }
 0x2ba   :  { %v1013_v59 = vmax.f32 %v959_v54, 0.0  ;;  %629 = vadd.xlane.f32.xlu1 %v628_v57  ;;  %v4512_v54 = vld [vmem:[#allocation2 + $0x50] sm:$0xff]  ;;  %v4524_v57 = vld [vmem:[#allocation2 + $0x68] sm:$0xff] }
 0x2bb   :  { %v1011_v61 = vmax.f32 %v951_v56, 0.0  ;;  %v4520_v56 = vld [vmem:[#allocation2 + $0x60] sm:$0xff] }
 0x2bc   :  { %v1027_v62 = vpack.c.bf16 %v1013_v59, %v1012_v58  ;;  %v4528_v58 = vld [vmem:[#allocation2 + $0x70] sm:$0xff]  ;;  %v4532_v59 = vld [vmem:[#allocation2 + $0x78] sm:$0xff] }
 0x2bd   :  { %v1026_v63 = vpack.c.bf16 %v1011_v61, %v1010_v60  ;;  %v3507_v0 = vpop.f32.mrb[44].mxu0  ;;  %v5157_v60 = vmov 0.0|0.0  }
 0x2be   :  { %v972_v1 = vadd.f32 %v3507_v0, %v4310_v49  ;;  %v963_v2 = vpop.f32.mrb[45].mxu0  ;;  %3796 = vmatprep.subr.bf16.mxu0 %v5157_v60 }
 0x2bf   :  { %v964_v3 = vadd.f32 %v4310_v49, %v963_v2  ;;  %v3508_v4 = vpop.f32.mrb[46].mxu0  ;;  %3521 = vmatprep.mubr.msk.bf16.mxu1 %vm261_vm1, %v1026_v63 }
 0x2c0   :  { %v1016_v5 = vmax.f32 %v972_v1, 0.0  ;;  %v975_v6 = vadd.f32 %v3508_v4, %v4310_v49  ;;  %v966_v7 = vpop.f32.mrb[47].mxu0  ;;  %3522 = vmatmul.mubr.msk.bf16.vlgmr.msra.gmra.mrb[24].mxu1 %vm261_vm1, %v1027_v62 }
 0x2c1   :  { %v1014_v8 = vmax.f32 %v964_v3, 0.0  ;;  %v967_v9 = vadd.f32 %v4310_v49, %v966_v7  ;;  %3833 = vmatpush3.bf16.xpose.msk.msra.mxu1 %vm4379_vm2, %v4375_v41 }
 0x2c2   :  { %v1017_v10 = vmax.f32 %v975_v6, 0.0  ;;  %3836 = vmatprep.subr.msk.bf16.mxu1 %vm4379_vm2, %v4375_v41 }
 0x2c3   :  { %v1015_v11 = vmax.f32 %v967_v9, 0.0 }
 0x2c4   :  { %v1029_v12 = vpack.c.bf16 %v1017_v10, %v1016_v5 }
 0x2c5   :  { %v1028_v13 = vpack.c.bf16 %v1015_v11, %v1014_v8  ;;  %v3511_v14 = vpop.f32.mrb[48].mxu0 }
 0x2c6   :  { %v988_v15 = vadd.f32 %v3511_v14, %v4310_v49  ;;  %v979_v16 = vpop.f32.mrb[49].mxu0 }
 0x2c7   :  { %v980_v17 = vadd.f32 %v4310_v49, %v979_v16  ;;  %v3512_v18 = vpop.f32.mrb[50].mxu0  ;;  %3525 = vmatprep.mubr.msk.bf16.mxu1 %vm261_vm1, %v1028_v13 }
 0x2c8   :  { %v1020_v19 = vmax.f32 %v988_v15, 0.0  ;;  %v991_v20 = vadd.f32 %v3512_v18, %v4310_v49  ;;  %v982_v21 = vpop.f32.mrb[51].mxu0  ;;  %3526 = vmatmul.mubr.msk.bf16.gmra.mrb[28].mxu1 %vm261_vm1, %v1029_v12 }
 0x2c9   :  { %v1018_v22 = vmax.f32 %v980_v17, 0.0  ;;  %v983_v23 = vadd.f32 %v4310_v49, %v982_v21 }
 0x2ca   :  { %v1021_v24 = vmax.f32 %v991_v20, 0.0  ;;  %v20_v20 = vstv %s5151_s10 }
 0x2cb   :  { %v1019_v25 = vmax.f32 %v983_v23, 0.0  ;;  %21 = vst [vmem:[#allocation4] sm:$0x1] %v20_v20  ;;  %v2567_v23 = vld [vmem:[%s5152_s12] sm:$0xff] }
 0x2cc   :  { %v1031_v26 = vpack.c.bf16 %v1021_v24, %v1020_v19  ;;  %v2568_v24 = vld [vmem:[%s5152_s12 + $0x8] sm:$0xff] }
 0x2cd   :  { %v1030_v27 = vpack.c.bf16 %v1019_v25, %v1018_v22  ;;  %v3515_v28 = vpop.f32.mrb[52].mxu0 }
 0x2ce   :  { %v1004_v30 = vadd.f32 %v3515_v28, %v4310_v49  ;;  %v995_v31 = vpop.f32.mrb[53].mxu0 }
 0x2cf   :  { %v996_v32 = vadd.f32 %v4310_v49, %v995_v31  ;;  %v3516_v33 = vpop.f32.mrb[54].mxu0  ;;  %3529 = vmatprep.mubr.msk.bf16.mxu1 %vm261_vm1, %v1030_v27 }
 0x2d0   :  { %v1024_v34 = vmax.f32 %v1004_v30, 0.0  ;;  %v1007_v35 = vadd.f32 %v3516_v33, %v4310_v49  ;;  %v998_v36 = vpop.f32.mrb[55].mxu0  ;;  %3530 = vmatmul.mubr.msk.bf16.gmra.mrb[32].mxu1 %vm261_vm1, %v1031_v26  ;;  %v3892_v26 = vpack.c.bf16 %v2568_v24, %v2567_v23 }
 0x2d1   :  { %v1022_v37 = vmax.f32 %v996_v32, 0.0  ;;  %v999_v38 = vadd.f32 %v4310_v49, %v998_v36  ;;  %v4484_v49 = vld [vmem:[#allocation2 + $0x18] sm:$0xff] }
 0x2d2   :  { %v1025_v39 = vmax.f32 %v1007_v35, 0.0 }
 0x2d3   :  { %v1023_v29 = vmax.f32 %v999_v38, 0.0 }
 0x2d4   :  { %v1033_v40 = vpack.c.bf16 %v1025_v39, %v1024_v34  ;;  %v4064_v34 = vmov 0.0  }
 0x2d5   :  { %v1032_v44 = vpack.c.bf16 %v1023_v29, %v1022_v37  ;;  %3569 = vmatprep.mubr.msk.f32.mxu0 %vm4063_vm4, %v4064_v34 }
 0x2d7   :  { %3533 = vmatprep.mubr.msk.bf16.mxu1 %vm261_vm1, %v1032_v44 }
 0x2d8   :  { %3534 = vmatmul.mubr.msk.bf16.gmra.mrb[36].mxu1 %vm261_vm1, %v1033_v40 }
 0x2d9   :  { %3576 = vmatprep.mubr.msk.f32.mxu1 %vm92_vm0, %v4469_v45 }
 0x2e0   :  { %3577 = vmatmul.mubr.msk.f32.vlgmr.msra.gmra.mrb[40].mxu1 %vm92_vm0, %v4473_v46 }
 0x2e1   :  { %3579 = vmatprep.mubr.msk.f32.mxu1 %vm92_vm0, %v4477_v47  ;;  %3839 = vmatpush3.bf16.xpose.msk.msra.mxu1 %vm4379_vm2, %v4375_v41  ;;  %v4500_v41 = vld [vmem:[#allocation2 + $0x38] sm:$0xff] }
 0x2e2   :  { %3893 = vmatprep.subr.bf16.mxu1 %v3892_v26 }
 0x2e4   :  { %3580 = vmatmul.mubr.msk.f32.gmra.mrb[42].mxu1 %vm92_vm0, %v4484_v49 }
 0x2e5   :  { %3582 = vmatprep.mubr.msk.f32.mxu1 %vm92_vm0, %v4488_v48 }
 0x2e8   :  { %3583 = vmatmul.mubr.msk.f32.gmra.mrb[44].mxu1 %vm92_vm0, %v4492_v50 }
 0x2e9   :  { %3585 = vmatprep.mubr.msk.f32.mxu1 %vm92_vm0, %v4496_v51 }
 0x2ec   :  { %3586 = vmatmul.mubr.msk.f32.gmra.mrb[46].mxu1 %vm92_vm0, %v4500_v41 }
 0x2ed   :  { %3588 = vmatprep.mubr.msk.f32.mxu1 %vm92_vm0, %v4504_v52 }
 0x2f0   :  { %3589 = vmatmul.mubr.msk.f32.gmra.mrb[48].mxu1 %vm92_vm0, %v4508_v53 }
 0x2f1   :  { %3591 = vmatprep.mubr.msk.f32.mxu1 %vm92_vm0, %v4512_v54 }
 0x2f4   :  { %3592 = vmatmul.mubr.msk.f32.gmra.mrb[50].mxu1 %vm92_vm0, %v4516_v55 }
 0x2f5   :  { %3594 = vmatprep.mubr.msk.f32.mxu1 %vm92_vm0, %v4520_v56 }
 0x2f8   :  { %3595 = vmatmul.mubr.msk.f32.gmra.mrb[52].mxu1 %vm92_vm0, %v4524_v57 }
 0x2f9   :  { %3597 = vmatprep.mubr.msk.f32.mxu1 %vm92_vm0, %v4528_v58 }
 0x2fc   :  { %3598 = vmatmul.mubr.msk.f32.gmra.mrb[54].mxu1 %vm92_vm0, %v4532_v59 }
 0x328   :  { %v591_v61 = vpop.xlane.xlu1 %590 }
 0x329   :  { %634 = vst.msk [vmem:[#allocation3 + $0x10] sm:$0xff] %vm631_vm3, %v591_v61  ;;  %v585_v62 = vpop.xlane.xlu0 %584 }
 0x32a   :  { %632 = vst.msk [vmem:[#allocation3] sm:$0xff] %vm631_vm3, %v585_v62 }
 0x32c   :  { %v594_v63 = vpop.xlane.xlu1 %593 }
 0x32d   :  { %635 = vst.msk [vmem:[#allocation3 + $0x18] sm:$0xff] %vm631_vm3, %v594_v63  ;;  %v588_v0 = vpop.xlane.xlu0 %587 }
 0x32e   :  { %633 = vst.msk [vmem:[#allocation3 + $0x8] sm:$0xff] %vm631_vm3, %v588_v0 }
 0x330   :  { %v666_v1 = vld [vmem:[#allocation3 + $0x10] sm:$0xff] }
 0x331   :  { %1378 = vperm.xlu1 %3954, %v666_v1   ;;  %v597_v2 = vpop.xlane.xlu0 %596  ;;  %v664_v3 = vld [vmem:[#allocation3] sm:$0xff] }
 0x332   :  { %636 = vst.msk [vmem:[#allocation3 + $0x20] sm:$0xff] %vm631_vm3, %v597_v2  ;;  %1368 = vperm.xlu0 %3953, %v664_v3  }
 0x333   :  { %v600_v4 = vpop.xlane.xlu1 %599 }
 0x334   :  { %637 = vst.msk [vmem:[#allocation3 + $0x28] sm:$0xff] %vm631_vm3, %v600_v4  ;;  %v667_v5 = vld [vmem:[#allocation3 + $0x18] sm:$0xff] }
 0x335   :  { %1383 = vperm.xlu1 %3954, %v667_v5   ;;  %v603_v6 = vpop.xlane.xlu0 %602  ;;  %v665_v8 = vld [vmem:[#allocation3 + $0x8] sm:$0xff] }
 0x336   :  { %638 = vst.msk [vmem:[#allocation3 + $0x30] sm:$0xff] %vm631_vm3, %v603_v6 }
 0x337   :  { %v606_v7 = vpop.xlane.xlu1 %605 }
 0x338   :  { %639 = vst.msk [vmem:[#allocation3 + $0x38] sm:$0xff] %vm631_vm3, %v606_v7 }
 0x339   :  { %1373 = vperm.xlu1 %3954, %v665_v8   ;;  %v609_v9 = vpop.xlane.xlu0 %608  ;;  %v668_v15 = vld [vmem:[#allocation3 + $0x20] sm:$0xff] }
 0x33a   :  { %640 = vst.msk [vmem:[#allocation3 + $0x40] sm:$0xff] %vm631_vm3, %v609_v9 }
 0x33b   :  { %v612_v10 = vpop.xlane.xlu1 %611  ;;  %v669_v19 = vld [vmem:[#allocation3 + $0x28] sm:$0xff] }
 0x33c   :  { %641 = vst.msk [vmem:[#allocation3 + $0x48] sm:$0xff] %vm631_vm3, %v612_v10 }
 0x33d   :  { %v615_v11 = vpop.xlane.xlu0 %614  ;;  %v670_v12 = vld [vmem:[#allocation3 + $0x30] sm:$0xff] }
 0x33e   :  { %642 = vst.msk [vmem:[#allocation3 + $0x50] sm:$0xff] %vm631_vm3, %v615_v11  ;;  %1398 = vperm.xlu1 %3954, %v670_v12  }
 0x33f   :  { %v618_v13 = vpop.xlane.xlu1 %617  ;;  %v671_v25 = vld [vmem:[#allocation3 + $0x38] sm:$0xff] }
 0x340   :  { %643 = vst.msk [vmem:[#allocation3 + $0x58] sm:$0xff] %vm631_vm3, %v618_v13 }
 0x341   :  { %v621_v14 = vpop.xlane.xlu0 %620  ;;  %v672_v28 = vld [vmem:[#allocation3 + $0x40] sm:$0xff] }
 0x342   :  { %644 = vst.msk [vmem:[#allocation3 + $0x60] sm:$0xff] %vm631_vm3, %v621_v14  ;;  %1388 = vperm.xlu1 %3954, %v668_v15  }
 0x343   :  { %v624_v16 = vpop.xlane.xlu1 %623  ;;  %v673_v17 = vld [vmem:[#allocation3 + $0x48] sm:$0xff] }
 0x344   :  { %645 = vst.msk [vmem:[#allocation3 + $0x68] sm:$0xff] %vm631_vm3, %v624_v16  ;;  %1413 = vperm.xlu0 %3953, %v673_v17  }
 0x345   :  { %v627_v18 = vpop.xlane.xlu0 %626  ;;  %v674_v31 = vld [vmem:[#allocation3 + $0x50] sm:$0xff] }
 0x346   :  { %646 = vst.msk [vmem:[#allocation3 + $0x70] sm:$0xff] %vm631_vm3, %v627_v18  ;;  %1393 = vperm.xlu1 %3954, %v669_v19  }
 0x347   :  { %v630_v21 = vpop.xlane.xlu1 %629  ;;  %v675_v22 = vld [vmem:[#allocation3 + $0x58] sm:$0xff] }
 0x348   :  { %647 = vst.msk [vmem:[#allocation3 + $0x78] sm:$0xff] %vm631_vm3, %v630_v21  ;;  %1423 = vperm.xlu0 %3953, %v675_v22  }
 0x349   :  { %v676_v32 = vld [vmem:[#allocation3 + $0x60] sm:$0xff] }
 0x34a   :  { %1403 = vperm.xlu1 %3954, %v671_v25  }
 0x34b   :  { %v677_v27 = vld [vmem:[#allocation3 + $0x68] sm:$0xff] }
 0x34c   :  { %1433 = vperm.xlu0 %3953, %v677_v27  }
 0x34d   :  { %v678_v33 = vld [vmem:[#allocation3 + $0x70] sm:$0xff] }
 0x34e   :  { %1408 = vperm.xlu1 %3954, %v672_v28  }
 0x34f   :  { %v679_v30 = vld [vmem:[#allocation3 + $0x78] sm:$0xff] }
 0x350   :  { %1443 = vperm.xlu0 %3953, %v679_v30  }
 0x352   :  { %1418 = vperm.xlu1 %3954, %v674_v31  }
 0x356   :  { %1428 = vperm.xlu1 %3954, %v676_v32  }
 0x35a   :  { %1438 = vperm.xlu1 %3954, %v678_v33  }
 0x393   :  { %v3523_v35 = vpop.f32.mrb[24].mxu1 }
 0x394   :  { %v1124_v36 = vadd.f32 %v3523_v35, %v4389_v43  ;;  %v1115_v37 = vpop.f32.mrb[25].mxu1 }
 0x395   :  { %v1116_v38 = vadd.f32 %v4389_v43, %v1115_v37  ;;  %v3524_v39 = vpop.f32.mrb[26].mxu1 }
 0x396   :  { %v1127_v29 = vadd.f32 %v3524_v39, %v4389_v43  ;;  %v1118_v40 = vpop.f32.mrb[27].mxu1  ;;  %v1180_v0 = vmul.f32 %v1124_v36, %v1124_v36 }
 0x397   :  { %v1119_v44 = vadd.f32 %v4389_v43, %v1118_v40  ;;  %3604 = vmatprep.mubr.msk.f32.mxu1 %vm92_vm0, %v1116_v38  ;;  %v1178_v61 = vmul.f32 %v1116_v38, %v1116_v38 }
 0x398   :  { %v4567_v62 = vpack.c.bf16 %v1127_v29, %v1124_v36  ;;  %v1181_v63 = vmul.f32 %v1127_v29, %v1127_v29  ;;  %v1200_v16 = vsel %vm92_vm0, %v1180_v0, 0.0 }
 0x399   :  { %v4569_v1 = vpack.c.bf16 %v1119_v44, %v1116_v38  ;;  %3605 = vmatmul.mubr.msk.f32.vlgmr.msra.gmra.mrb[56].mxu1 %vm92_vm0, %v1119_v44  ;;  %v1194_v2 = vsel %vm92_vm0, %v1178_v61, 0.0  ;;  %v1179_v3 = vmul.f32 %v1119_v44, %v1119_v44 }
 0x39a   :  { %1195 = vadd.xlane.f32.xlu1 %v1194_v2  ;;  %3607 = vmatprep.mubr.msk.f32.mxu1 %vm92_vm0, %v1124_v36  ;;  %v3801_v4 = vpack.c.bf16 %v1181_v63, %v1180_v0  ;;  %v1203_v12 = vsel %vm92_vm0, %v1181_v63, 0.0 }
 0x39b   :  { %v3527_v5 = vpop.f32.mrb[28].mxu1  ;;  %v1197_v6 = vsel %vm92_vm0, %v1179_v3, 0.0  ;;  %v3797_v7 = vpack.c.bf16 %v1179_v3, %v1178_v61  ;;  %3895 = vmatpush3.bf16.msra.mxu1 %v3892_v26 }
 0x39c   :  { %v1140_v8 = vadd.f32 %v3527_v5, %v4389_v43  ;;  %v1131_v9 = vpop.f32.mrb[29].mxu1  ;;  %1198 = vadd.xlane.f32.xlu0 %v1197_v6 }
 0x39d   :  { %v1132_v10 = vadd.f32 %v4389_v43, %v1131_v9  ;;  %v3528_v11 = vpop.f32.mrb[30].mxu1  ;;  %3799 = vmatpush3.bf16.xpose.msk.msra.mxu0 %vm4379_vm2, %v3797_v7  ;;  %3608 = vmatmul.mubr.msk.f32.gmra.mrb[58].mxu1 %vm92_vm0, %v1127_v29 }
 0x39e   :  { %v1143_v13 = vadd.f32 %v3528_v11, %v4389_v43  ;;  %v1134_v14 = vpop.f32.mrb[31].mxu1  ;;  %1204 = vadd.xlane.f32.xlu1 %v1203_v12  ;;  %3800 = vmatprep.subr.bf16.mxu0 %v5157_v60  ;;  %v4588_v19 = vmul.f32 %v1140_v8, %v1140_v8 }
 0x39f   :  { %v1135_v15 = vadd.f32 %v4389_v43, %v1134_v14  ;;  %3610 = vmatprep.mubr.msk.f32.mxu1 %vm92_vm0, %v1132_v10  ;;  %v1182_v17 = vmul.f32 %v1132_v10, %v1132_v10 }
 0x3a0   :  { %v4586_v18 = vpack.c.bf16 %v1143_v13, %v1140_v8  ;;  %1201 = vadd.xlane.f32.xlu0 %v1200_v16  ;;  %v4590_v20 = vmul.f32 %v1143_v13, %v1143_v13  ;;  %v1212_v37 = vsel %vm92_vm0, %v4588_v19, 0.0 }
 0x3a1   :  { %v4592_v21 = vpack.c.bf16 %v1135_v15, %v1132_v10  ;;  %3611 = vmatmul.mubr.msk.f32.gmra.mrb[60].mxu1 %vm92_vm0, %v1135_v15  ;;  %v1183_v22 = vmul.f32 %v1135_v15, %v1135_v15  ;;  %v1206_v25 = vsel %vm92_vm0, %v1182_v17, 0.0 }
 0x3a2   :  { %3613 = vmatprep.mubr.msk.f32.mxu1 %vm92_vm0, %v1140_v8  ;;  %v3809_v23 = vpack.c.bf16 %v4590_v20, %v4588_v19  ;;  %v1215_v38 = vsel %vm92_vm0, %v4590_v20, 0.0 }
 0x3a3   :  { %v3531_v24 = vpop.f32.mrb[32].mxu1  ;;  %v1209_v26 = vsel %vm92_vm0, %v1183_v22, 0.0  ;;  %v3805_v27 = vpack.c.bf16 %v1183_v22, %v1182_v17 }
 0x3a4   :  { %v1156_v28 = vadd.f32 %v3531_v24, %v4389_v43  ;;  %v1147_v30 = vpop.f32.mrb[33].mxu1  ;;  %1207 = vadd.xlane.f32.xlu0 %v1206_v25  ;;  %1210 = vadd.xlane.f32.xlu1 %v1209_v26  ;;  %v4668_v26 = vld [vmem:[%s5153_s9] ss:$0 sm:$0xff] }
 0x3a5   :  { %v1148_v31 = vadd.f32 %v4389_v43, %v1147_v30  ;;  %v3532_v32 = vpop.f32.mrb[34].mxu1  ;;  %3803 = vmatpush3.bf16.xpose.msk.msra.mxu0 %vm4379_vm2, %v3801_v4  ;;  %3614 = vmatmul.mubr.msk.f32.gmra.mrb[62].mxu1 %vm92_vm0, %v1143_v13 }
 0x3a6   :  { %v1159_v33 = vadd.f32 %v3532_v32, %v4389_v43  ;;  %v1150_v34 = vpop.f32.mrb[35].mxu1  ;;  %3804 = vmatprep.subr.bf16.mxu0 %v5157_v60  ;;  %v4607_v35 = vmul.f32 %v1156_v28, %v1156_v28 }
 0x3a7   :  { %v1151_v36 = vadd.f32 %v4389_v43, %v1150_v34  ;;  %3616 = vmatprep.mubr.msk.f32.mxu1 %vm92_vm0, %v1148_v31  ;;  %v4615_v39 = vmul.f32 %v1148_v31, %v1148_v31 }
 0x3a8   :  { %v4617_v29 = vpack.c.bf16 %v1159_v33, %v1156_v28  ;;  %1213 = vadd.xlane.f32.xlu0 %v1212_v37  ;;  %1216 = vadd.xlane.f32.xlu1 %v1215_v38  ;;  %v4619_v40 = vmul.f32 %v1159_v33, %v1159_v33  ;;  %v1224_v9 = vsel %vm92_vm0, %v4607_v35, 0.0 }
 0x3a9   :  { %v4621_v44 = vpack.c.bf16 %v1151_v36, %v1148_v31  ;;  %3617 = vmatmul.mubr.msk.f32.gmra.mrb[64].mxu1 %vm92_vm0, %v1151_v36  ;;  %v1218_v61 = vsel %vm92_vm0, %v4615_v39, 0.0  ;;  %v4626_v63 = vmul.f32 %v1151_v36, %v1151_v36 }
 0x3aa   :  { %3619 = vmatprep.mubr.msk.f32.mxu1 %vm92_vm0, %v1156_v28  ;;  %v3817_v0 = vpack.c.bf16 %v4619_v40, %v4607_v35  ;;  %v1227_v10 = vsel %vm92_vm0, %v4619_v40, 0.0 }
 0x3ab   :  { %v3535_v2 = vpop.f32.mrb[36].mxu1  ;;  %v1221_v3 = vsel %vm92_vm0, %v4626_v63, 0.0  ;;  %v3813_v4 = vpack.c.bf16 %v4626_v63, %v4615_v39 }
 0x3ac   :  { %v1172_v5 = vadd.f32 %v3535_v2, %v4389_v43  ;;  %v1163_v6 = vpop.f32.mrb[37].mxu1  ;;  %1219 = vadd.xlane.f32.xlu0 %v1218_v61  ;;  %1222 = vadd.xlane.f32.xlu1 %v1221_v3 }
 0x3ad   :  { %v1164_v7 = vadd.f32 %v4389_v43, %v1163_v6  ;;  %v3536_v8 = vpop.f32.mrb[38].mxu1  ;;  %3807 = vmatpush3.bf16.xpose.msk.msra.mxu0 %vm4379_vm2, %v3805_v27  ;;  %3620 = vmatmul.mubr.msk.f32.gmra.mrb[66].mxu1 %vm92_vm0, %v1159_v33 }
 0x3ae   :  { %v1175_v11 = vadd.f32 %v3536_v8, %v4389_v43  ;;  %v1166_v12 = vpop.f32.mrb[39].mxu1  ;;  %3808 = vmatprep.subr.bf16.mxu0 %v5157_v60  ;;  %v4654_v17 = vmul.f32 %v1172_v5, %v1172_v5 }
 0x3af   :  { %v1167_v13 = vadd.f32 %v4389_v43, %v1166_v12  ;;  %3622 = vmatprep.mubr.msk.f32.mxu1 %vm92_vm0, %v1164_v7  ;;  %v4648_v14 = vmul.f32 %v1164_v7, %v1164_v7 }
 0x3b0   :  { %v4650_v15 = vpack.c.bf16 %v1175_v11, %v1172_v5  ;;  %v4652_v16 = vpop.permute.xlu1 %1378  ;;  %1225 = vadd.xlane.f32.xlu0 %v1224_v9  ;;  %1228 = vadd.xlane.f32.xlu1 %v1227_v10  ;;  %v4656_v22 = vmul.f32 %v1175_v11, %v1175_v11  ;;  %v1236_v38 = vsel %vm92_vm0, %v4654_v17, 0.0 }
 0x3b1   :  { %v4658_v24 = vpack.c.bf16 %v1167_v13, %v1164_v7  ;;  %3623 = vmatmul.mubr.msk.f32.gmra.mrb[68].mxu1 %vm92_vm0, %v1167_v13  ;;  %v1230_v43 = vsel %vm92_vm0, %v4648_v14, 0.0  ;;  %v4663_v25 = vmul.f32 %v1167_v13, %v1167_v13  ;;  %v4670_v27 = vpop.permute.xlu0 %1368 }
 0x3b2   :  { %3625 = vmatprep.mubr.msk.f32.mxu1 %vm92_vm0, %v1172_v5  ;;  %v1452_v36 = vadd.f32 %v4668_v26, %v4670_v27  ;;  %v1239_v61 = vsel %vm92_vm0, %v4656_v22, 0.0  ;;  %v1454_v5 = vadd.f32 %v4668_v26, %v4652_v16 }
 0x3b3   :  { %v3578_v30 = vpop.f32.mrb[40].mxu1  ;;  %v1233_v31 = vsel %vm92_vm0, %v4663_v25, 0.0 }
 0x3b4   :  { %v4679_v33 = vpop.permute.xlu1 %1383  ;;  %1231 = vadd.xlane.f32.xlu0 %v1230_v43  ;;  %v1588_v34 = vpop.f32.mrb[41].mxu1  ;;  %1234 = vadd.xlane.f32.xlu1 %v1233_v31  ;;  %v1668_v7 = vmul.f32 2.0, %v3578_v30 }
 0x3b5   :  { %v1667_v37 = vmul.f32 2.0, %v1588_v34  ;;  %3811 = vmatpush3.bf16.xpose.msk.msra.mxu0 %vm4379_vm2, %v3809_v23  ;;  %3626 = vmatmul.mubr.msk.f32.gmra.mrb[70].mxu1 %vm92_vm0, %v1175_v11  ;;  %v1455_v19 = vadd.f32 %v4668_v26, %v4679_v33 }
 0x3b6   :  { %3812 = vmatprep.subr.bf16.mxu0 %v5157_v60 }
 0x3b7   :  { %v1683_v2 = vsub.f32 %v1452_v36, %v1667_v37  ;;  %v3581_v3 = vpop.f32.mrb[42].mxu1 }
 0x3b8   :  { %v1670_v20 = vmul.f32 2.0, %v3581_v3  ;;  %1237 = vadd.xlane.f32.xlu0 %v1236_v38  ;;  %v4698_v23 = vpop.permute.xlu1 %1373  ;;  %v1598_v6 = vpop.f32.mrb[43].mxu1  ;;  %1240 = vadd.xlane.f32.xlu1 %v1239_v61 }
 0x3b9   :  { %v1699_v8 = vmax.f32 %v1683_v2, 0.0  ;;  %v1453_v9 = vadd.f32 %v4668_v26, %v4698_v23  ;;  %v1669_v10 = vmul.f32 2.0, %v1598_v6 }
 0x3ba   :  { %v1686_v11 = vsub.f32 %v1455_v19, %v1670_v20 }
 0x3bb   :  { %v1715_v12 = vmul.f32 -0.5, %v1699_v8  ;;  %v1684_v13 = vsub.f32 %v1453_v9, %v1668_v7  ;;  %v1685_v43 = vsub.f32 %v1454_v5, %v1669_v10  ;;  %v3584_v31 = vpop.f32.mrb[44].mxu1 }
 0x3bc   :  { %v1702_v34 = vmax.f32 %v1686_v11, 0.0  ;;  %v1608_v36 = vpop.f32.mrb[45].mxu1 }
 0x3bd   :  { %v1731_v37 = vmul.f32 1.442695, %v1715_v12  ;;  %v1700_v3 = vmax.f32 %v1684_v13, 0.0  ;;  %v1701_v38 = vmax.f32 %v1685_v43, 0.0  ;;  %3815 = vmatpush3.bf16.xpose.msk.msra.mxu0 %vm4379_vm2, %v3813_v4  ;;  %v4707_v30 = vpop.permute.xlu1 %1398  ;;  %v1671_v63 = vmul.f32 2.0, %v1608_v36 }
 0x3be   :  { %5168 = vst [vmem:[#allocation5_spill] sm:$0xff] %v4707_v30  ;;  %3816 = vmatprep.subr.bf16.mxu0 %v5157_v60  ;;  %v1718_v61 = vmul.f32 -0.5, %v1702_v34  ;;  %v1458_v8 = vadd.f32 %v4668_v26, %v4707_v30 }
 0x3bf   :  { %3965 = vpow2.f32 %v1731_v37  ;;  %v1716_v2 = vmul.f32 -0.5, %v1700_v3  ;;  %v1717_v5 = vmul.f32 -0.5, %v1701_v38  ;;  %v3587_v19 = vpop.f32.mrb[46].mxu1 }
 0x3c0   :  { %v1618_v20 = vpop.f32.mrb[47].mxu1  ;;  %v1737_v10 = vmul.f32 1.442695, %v1718_v61  ;;  %v1672_v61 = vmul.f32 2.0, %v3584_v31 }
 0x3c1   :  { %v1733_v6 = vmul.f32 1.442695, %v1716_v2  ;;  %v1735_v7 = vmul.f32 1.442695, %v1717_v5  ;;  %v1673_v9 = vmul.f32 2.0, %v1618_v20  ;;  %v4712_v39 = vpop.permute.xlu1 %1388 }
 0x3c2   :  { %5169 = vst [vmem:[#allocation6_spill] sm:$0xff] %v4712_v39  ;;  %v1456_v4 = vadd.f32 %v4668_v26, %v4712_v39 }
 0x3c3   :  { %3967 = vpow2.f32 %v1733_v6  ;;  %v1689_v11 = vsub.f32 %v1458_v8, %v1673_v9  ;;  %v4716_v12 = vpop.permute.xlu0 %1413  ;;  %v3590_v13 = vpop.f32.mrb[48].mxu1 }
 0x3c4   :  { %5170 = vst [vmem:[#allocation7_spill] sm:$0xff] %v4716_v12  ;;  %3969 = vpow2.f32 %v1735_v7  ;;  %v1687_v43 = vsub.f32 %v1456_v4, %v1671_v63  ;;  %v1461_v34 = vadd.f32 %v4668_v26, %v4716_v12  ;;  %v1676_v37 = vmul.f32 2.0, %v3590_v13  ;;  %v1628_v3 = vpop.f32.mrb[49].mxu1 }
 0x3c5   :  { %v1705_v38 = vmax.f32 %v1689_v11, 0.0  ;;  %3819 = vmatpush3.bf16.xpose.msk.msra.mxu0 %vm4379_vm2, %v3817_v0  ;;  %v4725_v36 = vpop.permute.xlu1 %1393  ;;  %3971 = vpow2.f32 %v1737_v10  ;;  %v1674_v11 = vmul.f32 2.0, %v3587_v19  ;;  %v2068_v19 = vld [vmem:[%s5154_s11] sm:$0xff] }
 0x3c6   :  { %5171 = vst [vmem:[#allocation8_spill] sm:$0xff] %v4725_v36  ;;  %v1703_v2 = vmax.f32 %v1687_v43, 0.0  ;;  %v1457_v5 = vadd.f32 %v4668_v26, %v4725_v36  ;;  %3820 = vmatprep.subr.bf16.mxu0 %v5157_v60  ;;  %v1692_v9 = vsub.f32 %v1461_v34, %v1676_v37 }
 0x3c7   :  { %v1721_v20 = vmul.f32 -0.5, %v1705_v38  ;;  %v4730_v6 = vpop.permute.xlu0 %1423  ;;  %v3593_v7 = vpop.f32.mrb[50].mxu1 }
 0x3c8   :  { %5172 = vst [vmem:[#allocation9_spill] sm:$0xff] %v4730_v6  ;;  %v1719_v8 = vmul.f32 -0.5, %v1703_v2  ;;  %v1688_v35 = vsub.f32 %v1457_v5, %v1672_v61  ;;  %v1638_v40 = vpop.f32.mrb[51].mxu1  ;;  %v1463_v0 = vadd.f32 %v4668_v26, %v4730_v6  ;;  %v1678_v31 = vmul.f32 2.0, %v3593_v7  ;;  %v3161_v61 = vld [vmem:[#allocation4] ss:$0 sm:$0xff] }
 0x3c9   :  { %v4732_v63 = vpop.eup %3965  ;;  %v4736_v4 = vpop.permute.xlu1 %1403  ;;  %v1743_v34 = vmul.f32 1.442695, %v1721_v20  ;;  %v1708_v2 = vmax.f32 %v1692_v9, 0.0  ;;  %v5175_v9 = vpack.c.bf16 %v4663_v25, %v4648_v14  ;;  %v5177_v25 = vmov 0.0|0.0  }
 0x3ca   :  { %5173 = vst [vmem:[#allocation10_spill] sm:$0xff] %v4736_v4  ;;  %v1739_v13 = vmul.f32 1.442695, %v1719_v8  ;;  %v1704_v43 = vmax.f32 %v1688_v35, 0.0  ;;  %v1459_v10 = vadd.f32 %v4668_v26, %v4736_v4  ;;  %3716 = vmatprep.mubr.msk.f32.mxu1 %vm92_vm0, %v4732_v63  ;;  %v2069_v8 = vld [vmem:[%s5154_s11 + $0x8] sm:$0xff]  ;;  %v1694_v20 = vsub.f32 %v1463_v0, %v1678_v31 }
 0x3cb   :  { %v4742_v37 = vpop.permute.xlu0 %1433  ;;  %v3596_v38 = vpop.f32.mrb[52].mxu1  ;;  %v1677_v4 = vmul.f32 2.0, %v1638_v40 }
 0x3cc   :  { %5174 = vst [vmem:[#allocation11_spill] sm:$0xff] %v4742_v37  ;;  %3973 = vpow2.f32 %v1739_v13  ;;  %v1720_v5 = vmul.f32 -0.5, %v1704_v43  ;;  %v1690_v7 = vsub.f32 %v1459_v10, %v1674_v11  ;;  %v1648_v28 = vpop.f32.mrb[53].mxu1  ;;  %v1465_v60 = vadd.f32 %v4668_v26, %v4742_v37 }
 0x3cd   :  { %v4750_v35 = vpop.eup %3967  ;;  %v1680_v32 = vmul.f32 2.0, %v3596_v38  ;;  %3823 = vmatpush3.bf16.xpose.msk.msra.mxu0 %vm4379_vm2, %v5175_v9  ;;  %v4759_v11 = vpop.permute.xlu1 %1408  ;;  %v1675_v43 = vmul.f32 2.0, %v1628_v3  ;;  %3975 = vpow2.f32 %v1743_v34  ;;  %v3840_v38 = vpack.c.bf16 %v2069_v8, %v2068_v19 }
 0x3ce   :  { %5176 = vst [vmem:[#allocation12_spill] sm:$0xff] %v4759_v11  ;;  %v4761_v13 = vpop.eup %3969  ;;  %v1741_v10 = vmul.f32 1.442695, %v1720_v5  ;;  %v1706_v6 = vmax.f32 %v1690_v7, 0.0  ;;  %v1460_v0 = vadd.f32 %v4668_v26, %v4759_v11  ;;  %2516 = vperm.xlu0 %3953, %v3161_v61   ;;  %3717 = vmatmul.mubr.msk.f32.vlgmr.msra.gmra.mrb[72].mxu1 %vm92_vm0, %v4750_v35  ;;  %v1724_v3 = vmul.f32 -0.5, %v1708_v2 }
 0x3cf   :  { %v4767_v31 = vpop.permute.xlu0 %1443  ;;  %v3599_v14 = vpop.f32.mrb[54].mxu1  ;;  %3719 = vmatprep.mubr.msk.f32.mxu1 %vm92_vm0, %v4761_v13  ;;  %3824 = vmatprep.subr.bf16.mxu0 %v5177_v25  ;;  %v1710_v61 = vmax.f32 %v1694_v20, 0.0  ;;  %v1696_v11 = vsub.f32 %v1465_v60, %v1680_v32 }
 0x3d0   :  { %3977 = vpow2.f32 %v1741_v10  ;;  %v1722_v5 = vmul.f32 -0.5, %v1706_v6  ;;  %v1691_v7 = vsub.f32 %v1460_v0, %v1675_v43  ;;  %v1658_v9 = vpop.f32.mrb[55].mxu1  ;;  %v4772_v37 = vpop.eup %3971  ;;  %v1467_v34 = vadd.f32 %v4668_v26, %v4767_v31 }
 0x3d1   :  { %v1682_v12 = vmul.f32 2.0, %v3599_v14  ;;  %v4776_v30 = vpop.permute.xlu1 %1418  ;;  %v1749_v8 = vmul.f32 1.442695, %v1724_v3  ;;  %v1726_v60 = vmul.f32 -0.5, %v1710_v61  ;;  %v1712_v32 = vmax.f32 %v1696_v11, 0.0 }
 0x3d2   :  { %v1745_v39 = vmul.f32 1.442695, %v1722_v5  ;;  %v1707_v36 = vmax.f32 %v1691_v7, 0.0  ;;  %v1462_v2 = vadd.f32 %v4668_v26, %v4776_v30  ;;  %3720 = vmatmul.mubr.msk.f32.gmra.mrb[74].mxu1 %vm92_vm0, %v4772_v37  ;;  %v5178_v43 = vpack.c.bf16 %v4656_v22, %v4654_v17 }
 0x3d3   :  { %v1698_v20 = vsub.f32 %v1467_v34, %v1682_v12  ;;  %v1679_v0 = vmul.f32 2.0, %v1648_v28  ;;  %v1753_v17 = vmul.f32 1.442695, %v1726_v60  ;;  %v1728_v22 = vmul.f32 -0.5, %v1712_v32 }
 0x3d4   :  { %3979 = vpow2.f32 %v1745_v39  ;;  %v1723_v6 = vmul.f32 -0.5, %v1707_v36  ;;  %v1693_v19 = vsub.f32 %v1462_v2, %v1677_v4  ;;  %v1681_v28 = vmul.f32 2.0, %v1658_v9 }
 0x3d5   :  { %3827 = vmatpush3.bf16.xpose.msk.msra.mxu0 %vm4379_vm2, %v5178_v43  ;;  %v4787_v40 = vpop.permute.xlu1 %1428  ;;  %v1714_v11 = vmax.f32 %v1698_v20, 0.0 }
 0x3d6   :  { %v3974_v10 = vpop.eup %3973  ;;  %v1747_v14 = vmul.f32 1.442695, %v1723_v6  ;;  %v1709_v25 = vmax.f32 %v1693_v19, 0.0  ;;  %v1464_v39 = vadd.f32 %v4668_v26, %v4787_v40  ;;  %3841 = vmatprep.subr.bf16.mxu0 %v3840_v38  ;;  %v4065_v19 = vmov 1.0  }
 0x3d7   :  { %3722 = vmatprep.mubr.msk.f32.mxu1 %vm92_vm0, %v3974_v10  ;;  %v3976_v4 = vpop.eup %3975  ;;  %v1730_v60 = vmul.f32 -0.5, %v1714_v11 }
 0x3d8   :  { %3981 = vpow2.f32 %v1747_v14  ;;  %v1725_v12 = vmul.f32 -0.5, %v1709_v25  ;;  %v1695_v36 = vsub.f32 %v1464_v39, %v1679_v0 }
 0x3d9   :  { %3983 = vpow2.f32 %v1749_v8  ;;  %v4792_v3 = vpop.permute.xlu1 %1438  ;;  %v1757_v8 = vmul.f32 1.442695, %v1728_v22  ;;  %v1761_v0 = vmul.f32 1.442695, %v1730_v60 }
 0x3da   :  { %v3978_v5 = vpop.eup %3977  ;;  %v1751_v7 = vmul.f32 1.442695, %v1725_v12  ;;  %v1711_v61 = vmax.f32 %v1695_v36, 0.0  ;;  %v1466_v34 = vadd.f32 %v4668_v26, %v4792_v3 }
 0x3db   :  { %3723 = vmatmul.mubr.msk.f32.gmra.mrb[76].mxu1 %vm92_vm0, %v3978_v5 }
 0x3dc   :  { %3985 = vpow2.f32 %v1751_v7  ;;  %v1727_v2 = vmul.f32 -0.5, %v1711_v61  ;;  %v1697_v6 = vsub.f32 %v1466_v34, %v1681_v28  ;;  %3570 = vmatmul.mubr.msk.f32.vlgmr.msra.gmra.mrb[56].mxu0 %vm92_vm0, %v4065_v19  ;;  %3725 = vmatprep.mubr.msk.f32.mxu1 %vm92_vm0, %v3976_v4 }
 0x3dd   :  { %3987 = vpow2.f32 %v1753_v17  ;;  %3843 = vmatpush3.bf16.msra.mxu0 %v3840_v38  ;;  %3632 = vmatprep.mubr.msk.f32.mxu0 %vm92_vm0, %v4732_v63 }
 0x3de   :  { %v3980_v9 = vpop.eup %3979  ;;  %v1755_v32 = vmul.f32 1.442695, %v1727_v2  ;;  %v1713_v20 = vmax.f32 %v1697_v6, 0.0  ;;  %3846 = vmatprep.subr.msk.bf16.mxu0 %vm4379_vm2, %v4569_v1 }
 0x3df   :  { %3726 = vmatmul.mubr.msk.f32.gmra.mrb[78].mxu1 %vm92_vm0, %v3980_v9 }
 0x3e0   :  { %3989 = vpow2.f32 %v1755_v32  ;;  %v1729_v43 = vmul.f32 -0.5, %v1713_v20  ;;  %3633 = vmatmul.mubr.msk.f32.vlgmr.msra.gmra.mrb[58].mxu0 %vm92_vm0, %v4750_v35 }
 0x3e1   :  { %3991 = vpow2.f32 %v1757_v8  ;;  %3635 = vmatprep.mubr.msk.f32.mxu0 %vm92_vm0, %v4761_v13 }
 0x3e2   :  { %v3982_v63 = vpop.eup %3981  ;;  %v1759_v38 = vmul.f32 1.442695, %v1729_v43 }
 0x3e3   :  { %v3984_v14 = vpop.eup %3983  ;;  %3728 = vmatprep.mubr.msk.f32.mxu1 %vm92_vm0, %v3982_v63 }
 0x3e4   :  { %3993 = vpow2.f32 %v1759_v38  ;;  %3636 = vmatmul.mubr.msk.f32.gmra.mrb[60].mxu0 %vm92_vm0, %v4772_v37  ;;  %3729 = vmatmul.mubr.msk.f32.gmra.mrb[80].mxu1 %vm92_vm0, %v3984_v14 }
 0x3e5   :  { %3995 = vpow2.f32 %v1761_v0  ;;  %3638 = vmatprep.mubr.msk.f32.mxu0 %vm92_vm0, %v3974_v10 }
 0x3e6   :  { %v3986_v35 = vpop.eup %3985  ;;  %3849 = vmatpush3.bf16.xpose.msk.msra.mxu0 %vm4379_vm2, %v4569_v1 }
 0x3e7   :  { %v3988_v13 = vpop.eup %3987  ;;  %3852 = vmatprep.subr.msk.bf16.mxu0 %vm4379_vm2, %v4567_v62  ;;  %3731 = vmatprep.mubr.msk.f32.mxu1 %vm92_vm0, %v3986_v35 }
 0x3e8   :  { %3639 = vmatmul.mubr.msk.f32.gmra.mrb[62].mxu0 %vm92_vm0, %v3978_v5  ;;  %3732 = vmatmul.mubr.msk.f32.gmra.mrb[82].mxu1 %vm92_vm0, %v3988_v13 }
 0x3e9   :  { %3641 = vmatprep.mubr.msk.f32.mxu0 %vm92_vm0, %v3976_v4 }
 0x3ea   :  { %v3990_v37 = vpop.eup %3989 }
 0x3eb   :  { %v3992_v10 = vpop.eup %3991  ;;  %3734 = vmatprep.mubr.msk.f32.mxu1 %vm92_vm0, %v3990_v37 }
 0x3ec   :  { %3642 = vmatmul.mubr.msk.f32.gmra.mrb[64].mxu0 %vm92_vm0, %v3980_v9  ;;  %3735 = vmatmul.mubr.msk.f32.gmra.mrb[84].mxu1 %vm92_vm0, %v3992_v10 }
 0x3ed   :  { %3644 = vmatprep.mubr.msk.f32.mxu0 %vm92_vm0, %v3982_v63 }
 0x3ee   :  { %v3994_v1 = vpop.eup %3993  ;;  %3855 = vmatpush3.bf16.xpose.msk.msra.mxu0 %vm4379_vm2, %v4567_v62 }
 0x3ef   :  { %v3996_v25 = vpop.eup %3995  ;;  %3858 = vmatprep.subr.msk.bf16.mxu0 %vm4379_vm2, %v4592_v21  ;;  %3737 = vmatprep.mubr.msk.f32.mxu1 %vm92_vm0, %v3994_v1 }
 0x3f0   :  { %3645 = vmatmul.mubr.msk.f32.gmra.mrb[66].mxu0 %vm92_vm0, %v3984_v14  ;;  %3738 = vmatmul.mubr.msk.f32.gmra.mrb[86].mxu1 %vm92_vm0, %v3996_v25 }
 0x3f1   :  { %3647 = vmatprep.mubr.msk.f32.mxu0 %vm92_vm0, %v3986_v35 }
 0x3f4   :  { %3648 = vmatmul.mubr.msk.f32.gmra.mrb[68].mxu0 %vm92_vm0, %v3988_v13 }
 0x3f5   :  { %3650 = vmatprep.mubr.msk.f32.mxu0 %vm92_vm0, %v3990_v37 }
 0x3f6   :  { %3861 = vmatpush3.bf16.xpose.msk.msra.mxu0 %vm4379_vm2, %v4592_v21 }
 0x3f7   :  { %3864 = vmatprep.subr.msk.bf16.mxu0 %vm4379_vm2, %v4586_v18 }
 0x3f8   :  { %3651 = vmatmul.mubr.msk.f32.gmra.mrb[70].mxu0 %vm92_vm0, %v3992_v10 }
 0x3f9   :  { %3653 = vmatprep.mubr.msk.f32.mxu0 %vm92_vm0, %v3994_v1 }
 0x3fc   :  { %3654 = vmatmul.mubr.msk.f32.gmra.mrb[72].mxu0 %vm92_vm0, %v3996_v25 }
 0x3fd   :  { %3688 = vmatprep.mubr.msk.f32.mxu0 %vm92_vm0, %v4469_v45 }
 0x3fe   :  { %3867 = vmatpush3.bf16.xpose.msk.msra.mxu0 %vm4379_vm2, %v4586_v18 }
 0x3ff   :  { %3870 = vmatprep.subr.msk.bf16.mxu0 %vm4379_vm2, %v4621_v44 }
 0x406   :  { %3873 = vmatpush3.bf16.xpose.msk.msra.mxu0 %vm4379_vm2, %v4621_v44 }
 0x407   :  { %3876 = vmatprep.subr.msk.bf16.mxu0 %vm4379_vm2, %v4617_v29 }
 0x40e   :  { %3879 = vmatpush3.bf16.xpose.msk.msra.mxu0 %vm4379_vm2, %v4617_v29 }
 0x40f   :  { %3882 = vmatprep.subr.msk.bf16.mxu0 %vm4379_vm2, %v4658_v24 }
 0x416   :  { %3885 = vmatpush3.bf16.xpose.msk.msra.mxu0 %vm4379_vm2, %v4658_v24 }
 0x417   :  { %3888 = vmatprep.subr.msk.bf16.mxu0 %vm4379_vm2, %v4650_v15 }
 0x41e   :  { %3891 = vmatpush3.bf16.xpose.msk.msra.mxu0 %vm4379_vm2, %v4650_v15 }
 0x425   :  { %3689 = vmatmul.mubr.msk.f32.vlgmr.msra.gmra.mrb[74].mxu0 %vm92_vm0, %v4473_v46 }
 0x426   :  { %3691 = vmatprep.mubr.msk.f32.mxu0 %vm92_vm0, %v4477_v47 }
 0x427   :  { %v1196_v45 = vpop.xlane.xlu1 %1195 }
 0x429   :  { %3692 = vmatmul.mubr.msk.f32.gmra.mrb[76].mxu0 %vm92_vm0, %v4484_v49  ;;  %v1199_v46 = vpop.xlane.xlu0 %1198 }
 0x42a   :  { %3694 = vmatprep.mubr.msk.f32.mxu0 %vm92_vm0, %v4488_v48 }
 0x42b   :  { %v1205_v47 = vpop.xlane.xlu1 %1204 }
 0x42d   :  { %3695 = vmatmul.mubr.msk.f32.gmra.mrb[78].mxu0 %vm92_vm0, %v4492_v50  ;;  %v1202_v49 = vpop.xlane.xlu0 %1201 }
 0x42e   :  { %3697 = vmatprep.mubr.msk.f32.mxu0 %vm92_vm0, %v4496_v51  ;;  %v1764_v51 = vadd.f32 %v4668_v26, %v1199_v46  ;;  %v1765_v44 = vadd.f32 %v4668_v26, %v1202_v49 }
 0x431   :  { %3698 = vmatmul.mubr.msk.f32.gmra.mrb[80].mxu0 %vm92_vm0, %v4500_v41  ;;  %v1211_v48 = vpop.xlane.xlu1 %1210  ;;  %v1208_v41 = vpop.xlane.xlu0 %1207 }
 0x432   :  { %3700 = vmatprep.mubr.msk.f32.mxu0 %vm92_vm0, %v4504_v52  ;;  %v1768_v11 = vadd.f32 %v4668_v26, %v1211_v48  ;;  %v1767_v34 = vadd.f32 %v4668_v26, %v1208_v41 }
 0x435   :  { %3701 = vmatmul.mubr.msk.f32.gmra.mrb[82].mxu0 %vm92_vm0, %v4508_v53  ;;  %v1214_v39 = vpop.xlane.xlu0 %1213 }
 0x436   :  { %3703 = vmatprep.mubr.msk.f32.mxu0 %vm92_vm0, %v4512_v54  ;;  %v1763_v54 = vadd.f32 %v4668_v26, %v1196_v45  ;;  %v1769_v37 = vadd.f32 %v4668_v26, %v1214_v39 }
 0x439   :  { %3704 = vmatmul.mubr.msk.f32.gmra.mrb[84].mxu0 %vm92_vm0, %v4516_v55  ;;  %v1220_v63 = vpop.xlane.xlu0 %1219 }
 0x43a   :  { %3706 = vmatprep.mubr.msk.f32.mxu0 %vm92_vm0, %v4520_v56 }
 0x43d   :  { %3707 = vmatmul.mubr.msk.f32.gmra.mrb[86].mxu0 %vm92_vm0, %v4524_v57  ;;  %v1217_v57 = vpop.xlane.xlu1 %1216 }
 0x43e   :  { %3709 = vmatprep.mubr.msk.f32.mxu0 %vm92_vm0, %v4528_v58  ;;  %v1770_v0 = vadd.f32 %v4668_v26, %v1217_v57 }
 0x441   :  { %3710 = vmatmul.mubr.msk.f32.gmra.mrb[88].mxu0 %vm92_vm0, %v4532_v59  ;;  %v1766_v59 = vadd.f32 %v4668_v26, %v1205_v47  ;;  %v1223_v2 = vpop.xlane.xlu1 %1222 }
 0x445   :  { %v1229_v47 = vpop.xlane.xlu1 %1228 }
 0x446   :  { %v1774_v39 = vadd.f32 %v4668_v26, %v1229_v47 }
 0x46c   :  { %v3606_v50 = vpop.f32.mrb[56].mxu1 }
 0x46d   :  { %v1973_v52 = vmul.f32 2.0, %v3606_v50  ;;  %v1893_v53 = vpop.f32.mrb[57].mxu1 }
 0x46e   :  { %v1972_v55 = vmul.f32 2.0, %v1893_v53 }
 0x46f   :  { %v1989_v56 = vsub.f32 %v1764_v51, %v1973_v52  ;;  %v1772_v51 = vadd.f32 %v4668_v26, %v1223_v2 }
 0x470   :  { %v1988_v58 = vsub.f32 %v1763_v54, %v1972_v55  ;;  %v3609_v62 = vpop.f32.mrb[58].mxu1  ;;  %v1771_v55 = vadd.f32 %v4668_v26, %v1220_v63 }
 0x471   :  { %v2005_v18 = vmax.f32 %v1989_v56, 0.0  ;;  %v1975_v21 = vmul.f32 2.0, %v3609_v62  ;;  %v1903_v29 = vpop.f32.mrb[59].mxu1  ;;  %v1226_v62 = vpop.xlane.xlu0 %1225 }
 0x472   :  { %v2004_v15 = vmax.f32 %v1988_v58, 0.0  ;;  %v1974_v24 = vmul.f32 2.0, %v1903_v29 }
 0x473   :  { %v2021_v12 = vmul.f32 -0.5, %v2005_v18  ;;  %v1991_v36 = vsub.f32 %v1766_v59, %v1975_v21  ;;  %v1235_v21 = vpop.xlane.xlu1 %1234 }
 0x474   :  { %v2020_v4 = vmul.f32 -0.5, %v2004_v15  ;;  %v1990_v17 = vsub.f32 %v1765_v44, %v1974_v24  ;;  %v3612_v22 = vpop.f32.mrb[60].mxu1 }
 0x475   :  { %v2038_v5 = vmul.f32 1.442695, %v2021_v12  ;;  %v2007_v28 = vmax.f32 %v1991_v36, 0.0  ;;  %v1977_v7 = vmul.f32 2.0, %v3612_v22  ;;  %v1913_v61 = vpop.f32.mrb[61].mxu1 }
 0x476   :  { %v2036_v6 = vmul.f32 1.442695, %v2020_v4  ;;  %v2006_v19 = vmax.f32 %v1990_v17, 0.0  ;;  %v1976_v8 = vmul.f32 2.0, %v1913_v61  ;;  %v1232_v61 = vpop.xlane.xlu0 %1231 }
 0x477   :  { %3997 = vpow2.f32 %v2038_v5  ;;  %v2023_v60 = vmul.f32 -0.5, %v2007_v28  ;;  %v1993_v9 = vsub.f32 %v1768_v11, %v1977_v7  ;;  %v1773_v11 = vadd.f32 %v4668_v26, %v1226_v62 }
 0x478   :  { %3999 = vpow2.f32 %v2036_v6  ;;  %v2022_v32 = vmul.f32 -0.5, %v2006_v19  ;;  %v1992_v20 = vsub.f32 %v1767_v34, %v1976_v8  ;;  %v3615_v43 = vpop.f32.mrb[62].mxu1 }
 0x479   :  { %v2042_v38 = vmul.f32 1.442695, %v2023_v60  ;;  %v2009_v14 = vmax.f32 %v1993_v9, 0.0  ;;  %v1979_v35 = vmul.f32 2.0, %v3615_v43  ;;  %v1923_v13 = vpop.f32.mrb[63].mxu1 }
 0x47a   :  { %v2040_v10 = vmul.f32 1.442695, %v2022_v32  ;;  %v2008_v1 = vmax.f32 %v1992_v20, 0.0  ;;  %v1978_v25 = vmul.f32 2.0, %v1923_v13  ;;  %v1776_v32 = vadd.f32 %v4668_v26, %v1235_v21 }
 0x47b   :  { %4001 = vpow2.f32 %v2042_v38  ;;  %v2025_v45 = vmul.f32 -0.5, %v2009_v14  ;;  %v1995_v46 = vsub.f32 %v1770_v0, %v1979_v35  ;;  %v1775_v14 = vadd.f32 %v4668_v26, %v1232_v61  ;;  %v1241_v35 = vpop.xlane.xlu1 %1240 }
 0x47c   :  { %4003 = vpow2.f32 %v2040_v10  ;;  %v2024_v49 = vmul.f32 -0.5, %v2008_v1  ;;  %v1994_v48 = vsub.f32 %v1769_v37, %v1978_v25  ;;  %v3618_v50 = vpop.f32.mrb[64].mxu1 }
 0x47d   :  { %v2046_v41 = vmul.f32 1.442695, %v2025_v45  ;;  %v2011_v52 = vmax.f32 %v1995_v46, 0.0  ;;  %v1981_v53 = vmul.f32 2.0, %v3618_v50  ;;  %v1933_v54 = vpop.f32.mrb[65].mxu1  ;;  %v1238_v50 = vpop.xlane.xlu0 %1237 }
 0x47e   :  { %v2044_v56 = vmul.f32 1.442695, %v2024_v49  ;;  %v2010_v57 = vmax.f32 %v1994_v48, 0.0  ;;  %v1980_v58 = vmul.f32 2.0, %v1933_v54 }
 0x47f   :  { %4005 = vpow2.f32 %v2046_v41  ;;  %v2027_v59 = vmul.f32 -0.5, %v2011_v52  ;;  %v1997_v18 = vsub.f32 %v1772_v51, %v1981_v53  ;;  %v1778_v51 = vadd.f32 %v4668_v26, %v1241_v35 }
 0x480   :  { %4007 = vpow2.f32 %v2044_v56  ;;  %v2026_v29 = vmul.f32 -0.5, %v2010_v57  ;;  %v1996_v44 = vsub.f32 %v1771_v55, %v1980_v58  ;;  %v3621_v15 = vpop.f32.mrb[66].mxu1  ;;  %v1777_v56 = vadd.f32 %v4668_v26, %v1238_v50 }
 0x481   :  { %v3998_v24 = vpop.eup %3997  ;;  %v2050_v12 = vmul.f32 1.442695, %v2027_v59  ;;  %v2013_v36 = vmax.f32 %v1997_v18, 0.0  ;;  %v1983_v4 = vmul.f32 2.0, %v3621_v15  ;;  %v1943_v17 = vpop.f32.mrb[67].mxu1 }
 0x482   :  { %v4000_v22 = vpop.eup %3999  ;;  %v2048_v5 = vmul.f32 1.442695, %v2026_v29  ;;  %v2012_v28 = vmax.f32 %v1996_v44, 0.0  ;;  %v1982_v7 = vmul.f32 2.0, %v1943_v17 }
 0x483   :  { %4009 = vpow2.f32 %v2050_v12  ;;  %v2029_v34 = vmul.f32 -0.5, %v2013_v36  ;;  %v1999_v2 = vsub.f32 %v1774_v39, %v1983_v4  ;;  %v3896_v6 = vpack.c.bf16 %v3998_v24, %v4000_v22 }
 0x484   :  { %4011 = vpow2.f32 %v2048_v5  ;;  %v2028_v19 = vmul.f32 -0.5, %v2012_v28  ;;  %v1998_v8 = vsub.f32 %v1773_v11, %v1982_v7  ;;  %v3624_v60 = vpop.f32.mrb[68].mxu1 }
 0x485   :  { %v4002_v9 = vpop.eup %4001  ;;  %v2054_v20 = vmul.f32 1.442695, %v2029_v34  ;;  %v2015_v43 = vmax.f32 %v1999_v2, 0.0  ;;  %v1985_v0 = vmul.f32 2.0, %v3624_v60  ;;  %v1953_v63 = vpop.f32.mrb[69].mxu1  ;;  %3898 = vmatprep.subr.msk.bf16.mxu1 %vm4379_vm2, %v3896_v6 }
 0x486   :  { %v4004_v38 = vpop.eup %4003  ;;  %v2052_v13 = vmul.f32 1.442695, %v2028_v19  ;;  %v2014_v37 = vmax.f32 %v1998_v8, 0.0  ;;  %v1984_v10 = vmul.f32 2.0, %v1953_v63  ;;  %3901 = vmatpush3.bf16.xpose.msk.msra.mxu1 %vm4379_vm2, %v3896_v6 }
 0x487   :  { %4013 = vpow2.f32 %v2054_v20  ;;  %v2031_v1 = vmul.f32 -0.5, %v2015_v43  ;;  %v2001_v25 = vsub.f32 %v1776_v32, %v1985_v0  ;;  %v3902_v45 = vpack.c.bf16 %v4002_v9, %v4004_v38 }
 0x488   :  { %4015 = vpow2.f32 %v2052_v13  ;;  %v2030_v46 = vmul.f32 -0.5, %v2014_v37  ;;  %v2000_v47 = vsub.f32 %v1775_v14, %v1984_v10  ;;  %v3627_v49 = vpop.f32.mrb[70].mxu1 }
 0x489   :  { %v4006_v48 = vpop.eup %4005  ;;  %v2058_v41 = vmul.f32 1.442695, %v2031_v1  ;;  %v2017_v52 = vmax.f32 %v2001_v25, 0.0  ;;  %v1987_v53 = vmul.f32 2.0, %v3627_v49  ;;  %v1963_v54 = vpop.f32.mrb[71].mxu1  ;;  %3904 = vmatprep.subr.msk.bf16.mxu1 %vm4379_vm2, %v3902_v45 }
 0x48a   :  { %v4008_v55 = vpop.eup %4007  ;;  %v2056_v57 = vmul.f32 1.442695, %v2030_v46  ;;  %v2016_v58 = vmax.f32 %v2000_v47, 0.0  ;;  %v1986_v62 = vmul.f32 2.0, %v1963_v54 }
 0x48b   :  { %4017 = vpow2.f32 %v2058_v41  ;;  %v2033_v59 = vmul.f32 -0.5, %v2017_v52  ;;  %v2003_v18 = vsub.f32 %v1778_v51, %v1987_v53  ;;  %v3908_v21 = vpack.c.bf16 %v4006_v48, %v4008_v55 }
 0x48c   :  { %4019 = vpow2.f32 %v2056_v57  ;;  %v2032_v29 = vmul.f32 -0.5, %v2016_v58  ;;  %v2002_v44 = vsub.f32 %v1777_v56, %v1986_v62 }
 0x48d   :  { %v4010_v15 = vpop.eup %4009  ;;  %v2062_v24 = vmul.f32 1.442695, %v2033_v59  ;;  %v2019_v39 = vmax.f32 %v2003_v18, 0.0 }
 0x48e   :  { %v4012_v12 = vpop.eup %4011  ;;  %v2060_v36 = vmul.f32 1.442695, %v2032_v29  ;;  %v2018_v4 = vmax.f32 %v2002_v44, 0.0  ;;  %3907 = vmatpush3.bf16.xpose.msk.msra.mxu1 %vm4379_vm2, %v3902_v45 }
 0x48f   :  { %4021 = vpow2.f32 %v2062_v24  ;;  %v2035_v26 = vmul.f32 -0.5, %v2019_v39  ;;  %3910 = vmatprep.subr.msk.bf16.mxu1 %vm4379_vm2, %v3908_v21  ;;  %v3914_v17 = vpack.c.bf16 %v4010_v15, %v4012_v12  ;;  %v2280_v24 = vlaneseq }
 0x490   :  { %4023 = vpow2.f32 %v2060_v36  ;;  %v2034_v22 = vmul.f32 -0.5, %v2018_v4 }
 0x491   :  { %v4014_v11 = vpop.eup %4013  ;;  %v2066_v5 = vmul.f32 1.442695, %v2035_v26  ;;  %v2281_v39 = vshrl.u32 %v2280_v24, 7  ;;  %v5186_v24 = vld [vmem:[#allocation11_spill] sm:$0xff] }
 0x492   :  { %v4016_v28 = vpop.eup %4015  ;;  %v2064_v7 = vmul.f32 1.442695, %v2034_v22 }
 0x493   :  { %4025 = vpow2.f32 %v2066_v5  ;;  %v3920_v61 = vpack.c.bf16 %v4014_v11, %v4016_v28  ;;  %v2282_v12 = vsub.s32 0, %v2281_v39 }
 0x494   :  { %4027 = vpow2.f32 %v2064_v7 }
 0x495   :  { %v4018_v34 = vpop.eup %4017 }
 0x496   :  { %v4020_v2 = vpop.eup %4019  ;;  %3913 = vmatpush3.bf16.xpose.msk.msra.mxu1 %vm4379_vm2, %v3908_v21 }
 0x497   :  { %3916 = vmatprep.subr.msk.bf16.mxu1 %vm4379_vm2, %v3914_v17  ;;  %v3926_v6 = vpack.c.bf16 %v4018_v34, %v4020_v2 }
 0x499   :  { %v4022_v19 = vpop.eup %4021 }
 0x49a   :  { %v4024_v8 = vpop.eup %4023 }
 0x49b   :  { %v3932_v60 = vpack.c.bf16 %v4022_v19, %v4024_v8 }
 0x49d   :  { %v4026_v9 = vpop.eup %4025 }
 0x49e   :  { %v4028_v32 = vpop.eup %4027  ;;  %3919 = vmatpush3.bf16.xpose.msk.msra.mxu1 %vm4379_vm2, %v3914_v17 }
 0x49f   :  { %3922 = vmatprep.subr.msk.bf16.mxu1 %vm4379_vm2, %v3920_v61  ;;  %v3938_v20 = vpack.c.bf16 %v4026_v9, %v4028_v32  ;;  %v5179_v32 = vld [vmem:[#allocation8_spill] sm:$0xff] }
 0x4a1   :  { %v3718_v43 = vpop.f32.mrb[72].mxu1 }
 0x4a2   :  { %v2635_v0 = vpop.f32.mrb[73].mxu1 }
 0x4a3   :  { %3772 = vmatprep.mubr.msk.f32.mxu1 %vm92_vm0, %v2635_v0 }
 0x4a5   :  { %v3721_v63 = vpop.f32.mrb[74].mxu1 }
 0x4a6   :  { %v2645_v38 = vpop.f32.mrb[75].mxu1  ;;  %3925 = vmatpush3.bf16.xpose.msk.msra.mxu1 %vm4379_vm2, %v3920_v61 }
 0x4a7   :  { %3928 = vmatprep.subr.msk.bf16.mxu1 %vm4379_vm2, %v3926_v6 }
 0x4ae   :  { %v3724_v14 = vpop.f32.mrb[76].mxu1  ;;  %3931 = vmatpush3.bf16.xpose.msk.msra.mxu1 %vm4379_vm2, %v3926_v6 }
 0x4af   :  { %v4949_v35 = vpop.f32.mrb[56].mxu0  ;;  %v2655_v13 = vpop.f32.mrb[77].mxu1  ;;  %3934 = vmatprep.subr.msk.bf16.mxu1 %vm4379_vm2, %v3932_v60 }
 0x4b0   :  { %v3571_v37 = vpop.f32.mrb[57].mxu0  ;;  %v2283_v36 = vrot.slane %v4949_v35, %v2282_v12 }
 0x4b1   :  { %v5181_v37 = vld [vmem:[#allocation10_spill] sm:$0xff] }
 0x4b2   :  { %v3727_v10 = vpop.f32.mrb[78].mxu1  ;;  %v5040_v26 = vadd.f32 %v2283_v36, %v4698_v23  ;;  %v2284_v11 = vadd.f32 %v2283_v36, %v4670_v27  ;;  %v2287_v34 = vadd.f32 %v2283_v36, %v4679_v33  ;;  %v2286_v19 = vadd.f32 %v2283_v36, %v4652_v16  ;;  %v5180_v27 = vld [vmem:[#allocation6_spill] sm:$0xff] }
 0x4b3   :  { %v3634_v1 = vpop.f32.mrb[58].mxu0  ;;  %v2665_v25 = vpop.f32.mrb[79].mxu1  ;;  %v2291_v33 = vadd.f32 %v2283_v36, %v5181_v37  ;;  %v2297_v39 = vadd.f32 %v2283_v36, %v5186_v24 }
 0x4b4   :  { %2265 = vst.msk [vmem:[%s5155_s13 + $0x8] sm:$0xff] %vm631_vm3, %v3634_v1  ;;  %v2184_v45 = vpop.f32.mrb[59].mxu0 }
 0x4b5   :  { %2264 = vst.msk [vmem:[%s5155_s13] sm:$0xff] %vm631_vm3, %v2184_v45 }
 0x4b6   :  { %3937 = vmatpush3.bf16.xpose.msk.msra.mxu1 %vm4379_vm2, %v3932_v60 }
 0x4b7   :  { %v3637_v46 = vpop.f32.mrb[60].mxu0  ;;  %v3730_v47 = vpop.f32.mrb[80].mxu1  ;;  %3940 = vmatprep.subr.msk.bf16.mxu1 %vm4379_vm2, %v3938_v20 }
 0x4b8   :  { %2267 = vst.msk [vmem:[%s5155_s13 + $0x18] sm:$0xff] %vm631_vm3, %v3637_v46  ;;  %v2194_v49 = vpop.f32.mrb[61].mxu0  ;;  %v2675_v48 = vpop.f32.mrb[81].mxu1 }
 0x4b9   :  { %2266 = vst.msk [vmem:[%s5155_s13 + $0x10] sm:$0xff] %vm631_vm3, %v2194_v49 }
 0x4bb   :  { %v3640_v50 = vpop.f32.mrb[62].mxu0  ;;  %v3733_v51 = vpop.f32.mrb[82].mxu1 }
 0x4bc   :  { %2269 = vst.msk [vmem:[%s5155_s13 + $0x28] sm:$0xff] %vm631_vm3, %v3640_v50  ;;  %v2204_v41 = vpop.f32.mrb[63].mxu0  ;;  %v2685_v52 = vpop.f32.mrb[83].mxu1 }
 0x4bd   :  { %2268 = vst.msk [vmem:[%s5155_s13 + $0x20] sm:$0xff] %vm631_vm3, %v2204_v41 }
 0x4be   :  { %3943 = vmatpush3.bf16.xpose.msk.msra.mxu1 %vm4379_vm2, %v3938_v20  ;;  %v2289_v20 = vadd.f32 %v2283_v36, %v5179_v32 }
 0x4bf   :  { %v3643_v53 = vpop.f32.mrb[64].mxu0  ;;  %v3736_v54 = vpop.f32.mrb[84].mxu1 }
 0x4c0   :  { %2271 = vst.msk [vmem:[%s5155_s13 + $0x38] sm:$0xff] %vm631_vm3, %v3643_v53  ;;  %v2214_v55 = vpop.f32.mrb[65].mxu0  ;;  %v2695_v56 = vpop.f32.mrb[85].mxu1 }
 0x4c1   :  { %2270 = vst.msk [vmem:[%s5155_s13 + $0x30] sm:$0xff] %vm631_vm3, %v2214_v55 }
 0x4c3   :  { %v3646_v57 = vpop.f32.mrb[66].mxu0  ;;  %v3739_v58 = vpop.f32.mrb[86].mxu1 }
 0x4c4   :  { %2273 = vst.msk [vmem:[%s5155_s13 + $0x48] sm:$0xff] %vm631_vm3, %v3646_v57  ;;  %v2224_v42 = vpop.f32.mrb[67].mxu0  ;;  %v2705_v62 = vpop.f32.mrb[87].mxu1 }
 0x4c5   :  { %2272 = vst.msk [vmem:[%s5155_s13 + $0x40] sm:$0xff] %vm631_vm3, %v2224_v42  ;;  %3773 = vmatmul.mubr.msk.f32.vlgmr.msra.gmra.mrb[88].mxu1 %vm92_vm0, %v3718_v43 }
 0x4c6   :  { %3775 = vmatprep.mubr.msk.f32.mxu1 %vm92_vm0, %v2645_v38 }
 0x4c7   :  { %v3649_v59 = vpop.f32.mrb[68].mxu0 }
 0x4c8   :  { %2275 = vst.msk [vmem:[%s5155_s13 + $0x58] sm:$0xff] %vm631_vm3, %v3649_v59  ;;  %v2234_v18 = vpop.f32.mrb[69].mxu0 }
 0x4c9   :  { %2274 = vst.msk [vmem:[%s5155_s13 + $0x50] sm:$0xff] %vm631_vm3, %v2234_v18  ;;  %3776 = vmatmul.mubr.msk.f32.gmra.mrb[90].mxu1 %vm92_vm0, %v3721_v63  ;;  %v2288_v63 = vadd.f32 %v2283_v36, %v5180_v27  ;;  %v2294_v18 = vadd.f32 %v2283_v36, %v4776_v30 }
 0x4ca   :  { %3778 = vmatprep.mubr.msk.f32.mxu1 %vm92_vm0, %v2655_v13 }
 0x4cb   :  { %v3652_v21 = vpop.f32.mrb[70].mxu0 }
 0x4cc   :  { %2277 = vst.msk [vmem:[%s5155_s13 + $0x68] sm:$0xff] %vm631_vm3, %v3652_v21  ;;  %v2244_v29 = vpop.f32.mrb[71].mxu0 }
 0x4cd   :  { %2276 = vst.msk [vmem:[%s5155_s13 + $0x60] sm:$0xff] %vm631_vm3, %v2244_v29  ;;  %3779 = vmatmul.mubr.msk.f32.gmra.mrb[92].mxu1 %vm92_vm0, %v3724_v14 }
 0x4ce   :  { %3781 = vmatprep.mubr.msk.f32.mxu1 %vm92_vm0, %v2665_v25  ;;  %v5182_v25 = vld [vmem:[#allocation5_spill] sm:$0xff] }
 0x4cf   :  { %v3655_v44 = vpop.f32.mrb[72].mxu0  ;;  %v2290_v16 = vadd.f32 %v2283_v36, %v5182_v25 }
 0x4d0   :  { %2279 = vst.msk [vmem:[%s5155_s13 + $0x78] sm:$0xff] %vm631_vm3, %v3655_v44  ;;  %v2254_v15 = vpop.f32.mrb[73].mxu0 }
 0x4d1   :  { %2278 = vst.msk [vmem:[%s5155_s13 + $0x70] sm:$0xff] %vm631_vm3, %v2254_v15  ;;  %3782 = vmatmul.mubr.msk.f32.gmra.mrb[94].mxu1 %vm92_vm0, %v3727_v10 }
 0x4d2   :  { %3784 = vmatprep.mubr.msk.f32.mxu1 %vm92_vm0, %v2675_v48  ;;  %v5183_v48 = vld [vmem:[#allocation7_spill] sm:$0xff] }
 0x4d3   :  { %v2293_v50 = vadd.f32 %v2283_v36, %v5183_v48 }
 0x4d5   :  { %3785 = vmatmul.mubr.msk.f32.gmra.mrb[96].mxu1 %vm92_vm0, %v3730_v47 }
 0x4d6   :  { %3787 = vmatprep.mubr.msk.f32.mxu1 %vm92_vm0, %v2685_v52  ;;  %v5184_v52 = vld [vmem:[#allocation12_spill] sm:$0xff] }
 0x4d7   :  { %v2292_v53 = vadd.f32 %v2283_v36, %v5184_v52 }
 0x4d9   :  { %3788 = vmatmul.mubr.msk.f32.gmra.mrb[98].mxu1 %vm92_vm0, %v3733_v51 }
 0x4da   :  { %3790 = vmatprep.mubr.msk.f32.mxu1 %vm92_vm0, %v2695_v56 }
 0x4dd   :  { %3791 = vmatmul.mubr.msk.f32.gmra.mrb[100].mxu1 %vm92_vm0, %v3736_v54 }
 0x4de   :  { %3793 = vmatprep.mubr.msk.f32.mxu1 %vm92_vm0, %v2705_v62 }
 0x4e1   :  { %3794 = vmatmul.mubr.msk.f32.gmra.mrb[102].mxu1 %vm92_vm0, %v3739_v58  ;;  %v5185_v58 = vld [vmem:[#allocation9_spill] sm:$0xff] }
 0x4e2   :  { %v2295_v42 = vadd.f32 %v2283_v36, %v5185_v58 }
 0x4f8   :  { %v3690_v4 = vpop.f32.mrb[74].mxu0 }
 0x4f9   :  { %v2446_v17 = vmul.f32 2.0, %v3690_v4  ;;  %v2366_v22 = vpop.f32.mrb[75].mxu0 }
 0x4fa   :  { %v2445_v5 = vmul.f32 2.0, %v2366_v22 }
 0x4fb   :  { %v2462_v28 = vsub.f32 %v5040_v26, %v2446_v17  ;;  %v2296_v26 = vadd.f32 %v2283_v36, %v4787_v40 }
 0x4fc   :  { %v2461_v7 = vsub.f32 %v2284_v11, %v2445_v5  ;;  %v3693_v61 = vpop.f32.mrb[76].mxu0 }
 0x4fd   :  { %v2448_v2 = vmul.f32 2.0, %v3693_v61  ;;  %v2376_v6 = vpop.f32.mrb[77].mxu0  ;;  %v5057_v61 = vadd.f32 %v2283_v36, %v4767_v31 }
 0x4fe   :  { %v2447_v8 = vmul.f32 2.0, %v2376_v6 }
 0x4ff   :  { %v2464_v60 = vsub.f32 %v2287_v34, %v2448_v2  ;;  %v5062_v2 = vadd.f32 %v2283_v36, %v4792_v3 }
 0x500   :  { %v2463_v9 = vsub.f32 %v2286_v19, %v2447_v8  ;;  %v3696_v23 = vpop.f32.mrb[78].mxu0  ;;  %v2478_v8 = vmax.f32 %v2462_v28, 0.0 }
 0x501   :  { %v2450_v43 = vmul.f32 2.0, %v3696_v23  ;;  %v2386_v0 = vpop.f32.mrb[79].mxu0  ;;  %v2477_v23 = vmax.f32 %v2461_v7, 0.0 }
 0x502   :  { %v2449_v38 = vmul.f32 2.0, %v2386_v0  ;;  %v2495_v32 = vmul.f32 0.5, %v2478_v8  ;;  %v5070_v0 = vpop.permute.xlu0 %2516 }
 0x503   :  { %v2466_v14 = vsub.f32 %v2289_v20, %v2450_v43  ;;  %v2480_v20 = vmax.f32 %v2464_v60, 0.0  ;;  %v2494_v31 = vmul.f32 0.5, %v2477_v23  ;;  %v2479_v43 = vmax.f32 %v2463_v9, 0.0 }
 0x504   :  { %v2465_v35 = vsub.f32 %v2288_v63, %v2449_v38  ;;  %v3699_v13 = vpop.f32.mrb[80].mxu0  ;;  %v2520_v27 = vsub.f32 %v5070_v0, %v2495_v32 }
 0x505   :  { %v2452_v10 = vmul.f32 2.0, %v3699_v13  ;;  %v2396_v1 = vpop.f32.mrb[81].mxu0  ;;  %v2497_v3 = vmul.f32 0.5, %v2480_v20  ;;  %v2482_v36 = vmax.f32 %v2466_v14, 0.0  ;;  %v2519_v63 = vsub.f32 %v5070_v0, %v2494_v31 }
 0x506   :  { %v2451_v45 = vmul.f32 2.0, %v2396_v1  ;;  %v2496_v38 = vmul.f32 0.5, %v2479_v43  ;;  %v2481_v13 = vmax.f32 %v2465_v35, 0.0 }
 0x507   :  { %v2468_v46 = vsub.f32 %v2291_v33, %v2452_v10  ;;  %v2537_v10 = vmul.f32 1.442695, %v2520_v27  ;;  %v2522_v28 = vsub.f32 %v5070_v0, %v2497_v3  ;;  %v2499_v7 = vmul.f32 0.5, %v2482_v36 }
 0x508   :  { %v2467_v47 = vsub.f32 %v2290_v16, %v2451_v45  ;;  %v3702_v49 = vpop.f32.mrb[82].mxu0  ;;  %v2535_v1 = vmul.f32 1.442695, %v2519_v63  ;;  %v2521_v60 = vsub.f32 %v5070_v0, %v2496_v38  ;;  %v2498_v9 = vmul.f32 0.5, %v2481_v13 }
 0x509   :  { %v2454_v51 = vmul.f32 2.0, %v3702_v49  ;;  %v2406_v41 = vpop.f32.mrb[83].mxu0  ;;  %v2484_v37 = vmax.f32 %v2468_v46, 0.0  ;;  %4029 = vpow2.f32 %v2537_v10  ;;  %v2541_v49 = vmul.f32 1.442695, %v2522_v28 }
 0x50a   :  { %v2453_v54 = vmul.f32 2.0, %v2406_v41  ;;  %v2483_v33 = vmax.f32 %v2467_v47, 0.0  ;;  %v2524_v14 = vsub.f32 %v5070_v0, %v2499_v7  ;;  %4031 = vpow2.f32 %v2535_v1 }
 0x50b   :  { %v2470_v55 = vsub.f32 %v2293_v50, %v2454_v51  ;;  %v2501_v25 = vmul.f32 0.5, %v2484_v37  ;;  %v2539_v48 = vmul.f32 1.442695, %v2521_v60  ;;  %v2523_v35 = vsub.f32 %v5070_v0, %v2498_v9 }
 0x50c   :  { %v2469_v56 = vsub.f32 %v2292_v53, %v2453_v54  ;;  %v3705_v57 = vpop.f32.mrb[84].mxu0  ;;  %v2500_v16 = vmul.f32 0.5, %v2483_v33  ;;  %4033 = vpow2.f32 %v2541_v49  ;;  %v2545_v41 = vmul.f32 1.442695, %v2524_v14 }
 0x50d   :  { %v2456_v62 = vmul.f32 2.0, %v3705_v57  ;;  %v2416_v59 = vpop.f32.mrb[85].mxu0  ;;  %v2486_v45 = vmax.f32 %v2470_v55, 0.0  ;;  %v2526_v47 = vsub.f32 %v5070_v0, %v2501_v25  ;;  %4035 = vpow2.f32 %v2539_v48 }
 0x50e   :  { %v2455_v21 = vmul.f32 2.0, %v2416_v59  ;;  %v2485_v46 = vmax.f32 %v2469_v56, 0.0  ;;  %v2525_v50 = vsub.f32 %v5070_v0, %v2500_v16  ;;  %v2543_v53 = vmul.f32 1.442695, %v2523_v35 }
 0x50f   :  { %v2472_v29 = vsub.f32 %v2295_v42, %v2456_v62  ;;  %v2503_v51 = vmul.f32 0.5, %v2486_v45  ;;  %v2549_v57 = vmul.f32 1.442695, %v2526_v47  ;;  %4037 = vpow2.f32 %v2545_v41 }
 0x510   :  { %v2471_v44 = vsub.f32 %v2294_v18, %v2455_v21  ;;  %v3708_v15 = vpop.f32.mrb[86].mxu0  ;;  %v2502_v54 = vmul.f32 0.5, %v2485_v46  ;;  %v2547_v58 = vmul.f32 1.442695, %v2525_v50  ;;  %4039 = vpow2.f32 %v2543_v53 }
 0x511   :  { %v2458_v12 = vmul.f32 2.0, %v3708_v15  ;;  %v2426_v4 = vpop.f32.mrb[87].mxu0  ;;  %v2488_v52 = vmax.f32 %v2472_v29, 0.0  ;;  %v2528_v42 = vsub.f32 %v5070_v0, %v2503_v51  ;;  %4041 = vpow2.f32 %v2549_v57 }
 0x512   :  { %v2457_v17 = vmul.f32 2.0, %v2426_v4  ;;  %v2487_v55 = vmax.f32 %v2471_v44, 0.0  ;;  %v2527_v56 = vsub.f32 %v5070_v0, %v2502_v54  ;;  %4043 = vpow2.f32 %v2547_v58 }
 0x513   :  { %v2474_v22 = vsub.f32 %v2297_v39, %v2458_v12  ;;  %v2505_v62 = vmul.f32 0.5, %v2488_v52  ;;  %v4030_v15 = vpop.eup %4029  ;;  %v2553_v39 = vmul.f32 1.442695, %v2528_v42 }
 0x514   :  { %v2473_v11 = vsub.f32 %v2296_v26, %v2457_v17  ;;  %v3711_v5 = vpop.f32.mrb[88].mxu0  ;;  %v2504_v18 = vmul.f32 0.5, %v2487_v55  ;;  %v4032_v29 = vpop.eup %4031 }
 0x515   :  { %v5059_v34 = vmul.f32 2.0, %v3711_v5  ;;  %v2436_v30 = vpop.f32.mrb[89].mxu0  ;;  %v2490_v59 = vmax.f32 %v2474_v22, 0.0  ;;  %v2530_v4 = vsub.f32 %v5070_v0, %v2505_v62  ;;  %v2551_v5 = vmul.f32 1.442695, %v2527_v56 }
 0x516   :  { %v5064_v6 = vmul.f32 2.0, %v2436_v30  ;;  %v2489_v21 = vmax.f32 %v2473_v11, 0.0  ;;  %v2529_v30 = vsub.f32 %v5070_v0, %v2504_v18  ;;  %v4034_v23 = vpop.eup %4033  ;;  %4045 = vpow2.f32 %v2553_v39 }
 0x517   :  { %v2476_v19 = vsub.f32 %v5057_v61, %v5059_v34  ;;  %v2507_v26 = vmul.f32 0.5, %v2490_v59  ;;  %v4036_v34 = vpop.eup %4035  ;;  %v2557_v20 = vmul.f32 1.442695, %v2530_v4  ;;  %4047 = vpow2.f32 %v2551_v5 }
 0x518   :  { %v2475_v40 = vsub.f32 %v5062_v2, %v5064_v6  ;;  %v2506_v11 = vmul.f32 0.5, %v2489_v21  ;;  %v2555_v6 = vmul.f32 1.442695, %v2529_v30 }
 0x519   :  { %v2492_v17 = vmax.f32 %v2476_v19, 0.0  ;;  %v2532_v31 = vsub.f32 %v5070_v0, %v2507_v26  ;;  %v4038_v3 = vpop.eup %4037  ;;  %4049 = vpow2.f32 %v2557_v20 }
 0x51a   :  { %v2491_v8 = vmax.f32 %v2475_v40, 0.0  ;;  %v2531_v40 = vsub.f32 %v5070_v0, %v2506_v11  ;;  %v4040_v63 = vpop.eup %4039  ;;  %4051 = vpow2.f32 %v2555_v6 }
 0x51b   :  { %v2509_v43 = vmul.f32 0.5, %v2492_v17  ;;  %v4042_v37 = vpop.eup %4041  ;;  %v2561_v33 = vmul.f32 1.442695, %v2532_v31 }
 0x51c   :  { %v2508_v27 = vmul.f32 0.5, %v2491_v8  ;;  %v4044_v7 = vpop.eup %4043  ;;  %v2559_v1 = vmul.f32 1.442695, %v2531_v40 }
 0x51d   :  { %v2534_v10 = vsub.f32 %v5070_v0, %v2509_v43  ;;  %4053 = vpow2.f32 %v2561_v33 }
 0x51e   :  { %v2533_v60 = vsub.f32 %v5070_v0, %v2508_v27  ;;  %4055 = vpow2.f32 %v2559_v1 }
 0x51f   :  { %v2565_v45 = vmul.f32 1.442695, %v2534_v10 }
 0x520   :  { %v4046_v14 = vpop.eup %4045  ;;  %v2563_v48 = vmul.f32 1.442695, %v2533_v60 }
 0x521   :  { %v4048_v35 = vpop.eup %4047  ;;  %4057 = vpow2.f32 %v2565_v45 }
 0x522   :  { %4059 = vpow2.f32 %v2563_v48 }
 0x523   :  { %v4050_v51 = vpop.eup %4049 }
 0x524   :  { %v4052_v52 = vpop.eup %4051 }
 0x527   :  { %v4054_v57 = vpop.eup %4053 }
 0x528   :  { %v4056_v42 = vpop.eup %4055 }
 0x52b   :  { %v4058_v18 = vpop.eup %4057 }
 0x598   :  { %v3774_v24 = vpop.f32.mrb[88].mxu1 }
 0x599   :  { %v2956_v12 = vadd.f32 %v4030_v15, %v3774_v24  ;;  %v2876_v44 = vpop.f32.mrb[89].mxu1  ;;  %v4060_v15 = vpop.eup %4059 }
 0x59a   :  { %v2955_v22 = vadd.f32 %v4032_v29, %v2876_v44 }
 0x59b   :  { %2972 = vst [vmem:[%s5156_s14 + $0x8] sm:$0xff] %v2956_v12 }
 0x59c   :  { %2971 = vst [vmem:[%s5156_s14] sm:$0xff] %v2955_v22  ;;  %v3777_v61 = vpop.f32.mrb[90].mxu1 }
 0x59d   :  { %v2958_v19 = vadd.f32 %v4034_v23, %v3777_v61  ;;  %v2886_v32 = vpop.f32.mrb[91].mxu1 }
 0x59e   :  { %v2957_v2 = vadd.f32 %v4036_v34, %v2886_v32 }
 0x59f   :  { %2974 = vst [vmem:[%s5156_s14 + $0x18] sm:$0xff] %v2958_v19 }
 0x5a0   :  { %2973 = vst [vmem:[%s5156_s14 + $0x10] sm:$0xff] %v2957_v2  ;;  %v3780_v36 = vpop.f32.mrb[92].mxu1 }
 0x5a1   :  { %v2960_v38 = vadd.f32 %v4038_v3, %v3780_v36  ;;  %v2896_v13 = vpop.f32.mrb[93].mxu1 }
 0x5a2   :  { %v2959_v28 = vadd.f32 %v4040_v63, %v2896_v13 }
 0x5a3   :  { %2976 = vst [vmem:[%s5156_s14 + $0x28] sm:$0xff] %v2960_v38 }
 0x5a4   :  { %2975 = vst [vmem:[%s5156_s14 + $0x20] sm:$0xff] %v2959_v28  ;;  %v3783_v9 = vpop.f32.mrb[94].mxu1 }
 0x5a5   :  { %v2962_v25 = vadd.f32 %v4042_v37, %v3783_v9  ;;  %v2906_v16 = vpop.f32.mrb[95].mxu1 }
 0x5a6   :  { %v2961_v49 = vadd.f32 %v4044_v7, %v2906_v16 }
 0x5a7   :  { %2978 = vst [vmem:[%s5156_s14 + $0x38] sm:$0xff] %v2962_v25 }
 0x5a8   :  { %2977 = vst [vmem:[%s5156_s14 + $0x30] sm:$0xff] %v2961_v49  ;;  %v3786_v0 = vpop.f32.mrb[96].mxu1 }
 0x5a9   :  { %v2964_v46 = vadd.f32 %v4046_v14, %v3786_v0  ;;  %v2916_v47 = vpop.f32.mrb[97].mxu1 }
 0x5aa   :  { %v2963_v50 = vadd.f32 %v4048_v35, %v2916_v47 }
 0x5ab   :  { %2980 = vst [vmem:[%s5156_s14 + $0x48] sm:$0xff] %v2964_v46 }
 0x5ac   :  { %2979 = vst [vmem:[%s5156_s14 + $0x40] sm:$0xff] %v2963_v50  ;;  %v3789_v41 = vpop.f32.mrb[98].mxu1 }
 0x5ad   :  { %v2966_v53 = vadd.f32 %v4050_v51, %v3789_v41  ;;  %v2926_v54 = vpop.f32.mrb[99].mxu1 }
 0x5ae   :  { %v2965_v55 = vadd.f32 %v4052_v52, %v2926_v54 }
 0x5af   :  { %2982 = vst [vmem:[%s5156_s14 + $0x58] sm:$0xff] %v2966_v53 }
 0x5b0   :  { %2981 = vst [vmem:[%s5156_s14 + $0x50] sm:$0xff] %v2965_v55  ;;  %v3792_v58 = vpop.f32.mrb[100].mxu1 }
 0x5b1   :  { %v2968_v62 = vadd.f32 %v4054_v57, %v3792_v58  ;;  %v2936_v59 = vpop.f32.mrb[101].mxu1 }
 0x5b2   :  { %v2967_v56 = vadd.f32 %v4056_v42, %v2936_v59 }
 0x5b3   :  { %2984 = vst [vmem:[%s5156_s14 + $0x68] sm:$0xff] %v2968_v62 }
 0x5b4   :  { %2983 = vst [vmem:[%s5156_s14 + $0x60] sm:$0xff] %v2967_v56  ;;  %v3795_v21 = vpop.f32.mrb[102].mxu1 }
 0x5b5   :  { %v2970_v24 = vadd.f32 %v4058_v18, %v3795_v21  ;;  %v2946_v29 = vpop.f32.mrb[103].mxu1 }
 0x5b6   :  { %v2969_v39 = vadd.f32 %v4060_v15, %v2946_v29 }
 0x5b7   :  { %2986 = vst [vmem:[%s5156_s14 + $0x78] sm:$0xff] %v2970_v24 }
 0x5b8   :  { %2985 = vst [vmem:[%s5156_s14 + $0x70] sm:$0xff] %v2969_v39 }

</bundles_post_ra>
